<compile_context>
chip_gen: v6e
topology: v6e:2x2x1
jax: 0.10.0
libtpu: 0.0.40
codegen_flags: <defaults>
</compile_context>

<pallas_src>
import functools

import numpy as np
import jax
import jax.numpy as jnp
from jax import lax
from jax.experimental import pallas as pl
from jax.experimental.pallas import tpu as pltpu


# -----------------------------------------------------------------------------
# 3x3 'same' conv + folded BN + SiLU over a row window of a zero-padded ref.
# -----------------------------------------------------------------------------
def _conv3x3_bn_silu(xp_ref, row_start, h_out, w_out, cin, w_ref, s_ref, b_ref):
    """xp_ref: Ref[(rows_pad, w_out + 2, cin)] with a 1-column zero halo; rows
    [row_start, row_start + h_out + 2) provide the 1-row halo.
    w_ref: Ref[(9*cin, cout)], rows ordered (dy, dx, cin).
    Returns (h_out * w_out, cout) f32 after scale/bias and SiLU."""
    rows = h_out * w_out
    cout = w_ref.shape[-1]
    offsets = [(dy, dx) for dy in range(3) for dx in range(3)]

    def tap(dy, dx):
        # Slice straight from the Ref: per-tap loads keep vreg pressure
        # bounded and let the scheduler stream loads into the MXU.
        t = xp_ref[pl.ds(row_start + dy, h_out), pl.ds(dx, w_out), :]
        return t.reshape(rows, cin)

    if cin >= 128:
        # K = cin already saturates the MXU contraction depth (128 on v5e,
        # 256 on v6e/v7x): accumulate 9 K=cin dots instead of building a
        # (rows, 9*cin) im2col slab (huge VMEM temp + 9 relayout copies).
        acc = jnp.zeros((rows, cout), jnp.float32)
        for i, (dy, dx) in enumerate(offsets):
            acc = acc + jnp.dot(tap(dy, dx), w_ref[i * cin:(i + 1) * cin, :],
                                preferred_element_type=jnp.float32)
        y = acc
    else:
        # Small cin (toy shapes): one MXU push with K = 9*cin beats 9 skinny
        # matmuls and the slab stays tiny.
        slab = jnp.concatenate([tap(dy, dx) for dy, dx in offsets], axis=-1)
        y = jnp.dot(slab, w_ref[...], preferred_element_type=jnp.float32)

    y = y * s_ref[...] + b_ref[...]          # folded inference BatchNorm (f32)
    return y * jax.nn.sigmoid(y)             # SiLU (f32, EUP)


# -----------------------------------------------------------------------------
# Fused Bottleneck kernel.  One grid step = (image b, row tile t).
# -----------------------------------------------------------------------------
def _bottleneck_kernel(add_residual, TH, W, C1, Cm, C2, n_tiles,
                       x_ref, w1_ref, s1_ref, b1_ref, w2_ref, s2_ref, b2_ref,
                       o_ref, y1p_ref):
    t = pl.program_id(1)
    row0 = pl.multiple_of(t * TH, TH)        # first output row of this tile

    # ---- cv1 over the tile plus a 1-row halo (TH + 2 output rows) ----------
    # x_ref holds the whole image, already zero-padded (+2 rows, +1 col per
    # side) and cast to bf16 by the wrapper -> no in-kernel padding here.
    y1 = _conv3x3_bn_silu(x_ref, row0, TH + 2, W, C1, w1_ref, s1_ref, b1_ref)

    # ---- stage-2 input: y1 (+ halo) staged in VMEM, never sent to HBM ------
    # Zero only the two 1-column halo strips (cheap); the interior is fully
    # overwritten every step.  (A program_id == 0 "zero once" guard would be
    # unsafe under megacore: each TensorCore has its own scratch instance.)
    y1p_ref[:, 0:1, :] = jnp.zeros((TH + 2, 1, Cm), y1p_ref.dtype)
    y1p_ref[:, W + 1:W + 2, :] = jnp.zeros((TH + 2, 1, Cm), y1p_ref.dtype)
    y1p_ref[:, pl.ds(1, W), :] = y1.reshape(TH + 2, W, Cm).astype(y1p_ref.dtype)

    # cv2's vertical 'same' zero padding at the image top / bottom edges.
    @pl.when(t == 0)
    def _():
        y1p_ref[0:1, :, :] = jnp.zeros((1, W + 2, Cm), y1p_ref.dtype)

    @pl.when(t == n_tiles - 1)
    def _():
        y1p_ref[TH + 1:TH + 2, :, :] = jnp.zeros((1, W + 2, Cm), y1p_ref.dtype)

    # ---- cv2 over the TH output rows of this tile --------------------------
    y2 = _conv3x3_bn_silu(y1p_ref, 0, TH, W, Cm, w2_ref, s2_ref, b2_ref)

    if add_residual:
        res = x_ref[pl.ds(row0 + 2, TH), pl.ds(1, W), :]     # bf16 residual
        y2 = y2 + res.reshape(TH * W, C2).astype(jnp.float32)

    o_ref[...] = y2.reshape(TH, W, C2).astype(o_ref.dtype)


# -----------------------------------------------------------------------------
# VMEM sizing / row-tile selection.
# -----------------------------------------------------------------------------
_VMEM_BUDGET = 40 << 20   # keep block + scratch + temps under v7x's 64 MiB/TC


def _vmem_estimate_bytes(H, W, C1, Cm, C2, TH):
    bf16, f32 = 2, 4
    x_blk = (H + 4) * (W + 2) * C1 * bf16
    out_blk = TH * W * C2 * f32
    wts = (9 * C1 * Cm + 9 * Cm * C2) * bf16 + 2 * (Cm + C2) * f32
    scratch = (TH + 2) * (W + 2) * Cm * bf16
    r1, r2 = (TH + 2) * W, TH * W
    k1 = C1 if C1 >= 128 else 9 * C1          # live tap/slab width, stage 1
    k2 = Cm if Cm >= 128 else 9 * Cm          # live tap/slab width, stage 2
    tmp = r1 * (Cm * f32 + k1 * bf16) + r2 * (C2 * f32 + k2 * bf16)
    # pipelined inputs/outputs are double-buffered
    return 2 * (x_blk + out_blk + wts) + scratch + tmp


def _choose_row_tile(H, W, C1, Cm, C2, budget=_VMEM_BUDGET):
    divisors = [d for d in range(H, 0, -1) if H % d == 0]
    fitting = [d for d in divisors
               if _vmem_estimate_bytes(H, W, C1, Cm, C2, d) <= budget]
    if not fitting:
        return divisors[-1]        # degenerate 1-row tiles
    # Prefer >= 2 row tiles (both v7x TensorCores get work even at batch=1)
    # as long as tiles stay tall enough that the cv1 2-row halo recompute is
    # a small fraction of the work.
    for d in fitting:
        if d < H and d >= 8:
            return d
    return fitting[0]
    # TODO(synk): support row tiles that do not divide H (bounds masking).


# -----------------------------------------------------------------------------
# Wrapper: takes NCHW like PyTorch, returns NCHW.
# -----------------------------------------------------------------------------
def bottleneck_forward(x_nchw, params, shortcut=True, row_tile=None):
    N, C1, H, W = x_nchw.shape
    w1, w2 = params["w1"], params["w2"]                  # HWIO: (3,3,Cin,Cout)
    Cm, C2 = w1.shape[-1], w2.shape[-1]
    add = bool(shortcut and C1 == C2)

    TH = row_tile if row_tile is not None else _choose_row_tile(H, W, C1, Cm, C2)
    assert H % TH == 0, "row_tile must divide H"
    n_tiles = H // TH

    # NCHW -> NHWC, bf16, with the conv 'same' zero padding baked in
    # (2 halo rows for the fused cv1->cv2 stage, 1 halo column): the kernel
    # DMAs half the bytes and does no interior zero-fill / cast work.
    x = jnp.transpose(x_nchw, (0, 2, 3, 1)).astype(jnp.bfloat16)
    x = jnp.pad(x, ((0, 0), (2, 2), (1, 1), (0, 0)))     # (N, H+4, W+2, C1)

    # im2col weight layout: rows ordered (dy, dx, cin) -> (9*Cin, Cout), bf16.
    w1_2d = w1.reshape(9 * C1, Cm).astype(jnp.bfloat16)
    w2_2d = w2.reshape(9 * Cm, C2).astype(jnp.bfloat16)
    s1 = params["s1"].reshape(1, Cm).astype(jnp.float32)
    b1 = params["b1"].reshape(1, Cm).astype(jnp.float32)
    s2 = params["s2"].reshape(1, C2).astype(jnp.float32)
    b2 = params["b2"].reshape(1, C2).astype(jnp.float32)

    kernel = functools.partial(_bottleneck_kernel, add, TH, W, C1, Cm, C2,
                               n_tiles)

    est = _vmem_estimate_bytes(H, W, C1, Cm, C2, TH)
    vmem_limit = int(min(128 << 20, max(32 << 20, 2 * est + (16 << 20))))

    cost = pl.CostEstimate(
        flops=2 * N * W * ((H + 2 * n_tiles) * 9 * C1 * Cm + H * 9 * Cm * C2),
        transcendentals=N * W * ((H + 2 * n_tiles) * Cm + H * C2),
        bytes_accessed=x.size * 2 + N * H * W * C2 * 4
                       + (w1_2d.size + w2_2d.size) * 2
                       + (s1.size + b1.size + s2.size + b2.size) * 4)

    y = pl.pallas_call(
        kernel,
        out_shape=jax.ShapeDtypeStruct((N, H, W, C2), x_nchw.dtype),
        grid=(N, n_tiles),
        in_specs=[
            # Whole padded image; block index constant in t -> DMA'd ~once
            # per image (Pallas elides the copy when the index is unchanged).
            pl.BlockSpec((None, H + 4, W + 2, C1), lambda b, t: (b, 0, 0, 0)),
            pl.BlockSpec((9 * C1, Cm), lambda b, t: (0, 0)),   # w1
            pl.BlockSpec((1, Cm), lambda b, t: (0, 0)),        # s1
            pl.BlockSpec((1, Cm), lambda b, t: (0, 0)),        # b1
            pl.BlockSpec((9 * Cm, C2), lambda b, t: (0, 0)),   # w2
            pl.BlockSpec((1, C2), lambda b, t: (0, 0)),        # s2
            pl.BlockSpec((1, C2), lambda b, t: (0, 0)),        # b2
        ],
        out_specs=pl.BlockSpec((None, TH, W, C2), lambda b, t: (b, t, 0, 0)),
        scratch_shapes=[
            pltpu.VMEM((TH + 2, W + 2, Cm), jnp.bfloat16),     # y1 + halo
        ],
        compiler_params=pltpu.CompilerParams(
            dimension_semantics=("parallel", "parallel"),
            vmem_limit_bytes=vmem_limit),
        cost_estimate=cost,
    )(x, w1_2d, s1, b1, w2_2d, s2, b2)

    return jnp.transpose(y, (0, 3, 1, 2))                 # NHWC -> NCHW


# -----------------------------------------------------------------------------
# Deterministic parameter construction (conv weight + folded BatchNorm).
# -----------------------------------------------------------------------------
def _fold_bn(gamma, beta, mean, var, eps=1e-5):
    scale = gamma / jnp.sqrt(var + eps)
    bias = beta - mean * scale
    return scale, bias


def make_params(key, c1, c2, e=0.5):
    c_ = max(int(c2 * e), 1)
    k = jax.random.split(key, 10)

    def conv_w(subkey, cin, cout):
        std = 1.0 / np.sqrt(cin * 9)
        return std * jax.random.normal(subkey, (3, 3, cin, cout), jnp.float32)

    def bn(sk0, sk1, sk2, sk3, c):
        gamma = 1.0 + 0.1 * jax.random.normal(sk0, (c,), jnp.float32)
        beta = 0.1 * jax.random.normal(sk1, (c,), jnp.float32)
        mean = 0.1 * jax.random.normal(sk2, (c,), jnp.float32)
        var = jax.random.uniform(sk3, (c,), jnp.float32, 0.5, 1.5)
        return _fold_bn(gamma, beta, mean, var)

    w1 = conv_w(k[0], c1, c_)
    s1, b1 = bn(k[1], k[2], k[3], k[4], c_)
    w2 = conv_w(k[5], c_, c2)
    s2, b2 = bn(k[6], k[7], k[8], k[9], c2)
    return {"w1": w1, "s1": s1, "b1": b1, "w2": w2, "s2": s2, "b2": b2}


# -----------------------------------------------------------------------------
# Pure-JAX reference (same bf16 matmul / residual quantization as the kernel).
# -----------------------------------------------------------------------------
def _ref_conv_block(x_bf16, w_hwio, scale, bias):
    y = lax.conv_general_dilated(
        x_bf16, w_hwio.astype(jnp.bfloat16),
        window_strides=(1, 1), padding="SAME",
        dimension_numbers=("NHWC", "HWIO", "NHWC"),
        preferred_element_type=jnp.float32)
    y = y * scale + bias
    return y * jax.nn.sigmoid(y)


def _ref_bottleneck(x_nchw, params, shortcut=True):
    c1 = x_nchw.shape[1]
    c2 = params["w2"].shape[-1]
    add = shortcut and (c1 == c2)
    xb = jnp.transpose(x_nchw, (0, 2, 3, 1)).astype(jnp.bfloat16)
    y = _ref_conv_block(xb, params["w1"], params["s1"], params["b1"])
    y = _ref_conv_block(y.astype(jnp.bfloat16), params["w2"],
                        params["s2"], params["b2"])
    if add:
        y = y + xb.astype(jnp.float32)
    return jnp.transpose(y, (0, 3, 1, 2)).astype(x_nchw.dtype)


if __name__ == "__main__":
    key = jax.random.PRNGKey(0)
    kx, kp1, kp2 = jax.random.split(key, 3)

    # Small shapes: batch=2, 16x16 spatial, c1=c2=8 (residual active).
    N, C, H, W = 2, 8, 16, 16
    x = jax.random.normal(kx, (N, C, H, W), jnp.float32)   # NCHW like PyTorch

    # Config 1: residual path, auto row tiling (2 row tiles of 8 rows).
    p1 = make_params(kp1, c1=C, c2=C, e=0.5)
    out = jax.block_until_ready(bottleneck_forward(x, p1, shortcut=True))
    ref = jax.block_until_ready(_ref_bottleneck(x, p1, shortcut=True))
    assert out.shape == (N, C, H, W)
    np.testing.assert_allclose(np.asarray(out), np.asarray(ref),
                               rtol=5e-3, atol=5e-3)

    # Config 2: same params, single-tile path (row_tile == H).
    out1 = jax.block_until_ready(
        bottleneck_forward(x, p1, shortcut=True, row_tile=H))
    np.testing.assert_allclose(np.asarray(out1), np.asarray(ref),
                               rtol=5e-3, atol=5e-3)

    # Config 3: c1 != c2 -> no residual path.
    p2 = make_params(kp2, c1=C, c2=2 * C, e=0.5)
    out2 = jax.block_until_ready(
        bottleneck_forward(x, p2, shortcut=True, row_tile=8))
    ref2 = jax.block_until_ready(_ref_bottleneck(x, p2, shortcut=True))
    assert out2.shape == (N, 2 * C, H, W)
    np.testing.assert_allclose(np.asarray(out2), np.asarray(ref2),
                               rtol=5e-3, atol=5e-3)

    print("KERNEL_OK")
</pallas_src>

<mosaic_0001>
module attributes {stable_mosaic.version = 11 : i64} {
  func.func @_bottleneck_kernel(%arg0: i32, %arg1: i32, %arg2: memref<1x20x18x8xbf16, #tpu.memory_space<vmem>>, %arg3: memref<72x4xbf16, #tpu.memory_space<vmem>>, %arg4: memref<1x4xf32, #tpu.memory_space<vmem>>, %arg5: memref<1x4xf32, #tpu.memory_space<vmem>>, %arg6: memref<36x8xbf16, #tpu.memory_space<vmem>>, %arg7: memref<1x8xf32, #tpu.memory_space<vmem>>, %arg8: memref<1x8xf32, #tpu.memory_space<vmem>>, %arg9: memref<1x8x16x8xf32, #tpu.memory_space<vmem>>, %arg10: memref<10x18x4xbf16, #tpu.memory_space<vmem>>) attributes {dimension_semantics = [#tpu.dimension_semantics<parallel>, #tpu.dimension_semantics<parallel>], iteration_bounds = array<i64: 2, 2>, scalar_prefetch = 0 : i64, scratch_operands = 1 : i64, tpu.core_type = #tpu.core_type<tc>, window_params = [{transform_indices = @transform_0, window_bounds = array<i64: 1, 20, 18, 8>}, {pipeline_mode = #tpu.pipeline_mode<synchronous>, transform_indices = @transform_1, window_bounds = array<i64: 72, 4>}, {pipeline_mode = #tpu.pipeline_mode<synchronous>, transform_indices = @transform_2, window_bounds = array<i64: 1, 4>}, {pipeline_mode = #tpu.pipeline_mode<synchronous>, transform_indices = @transform_3, window_bounds = array<i64: 1, 4>}, {pipeline_mode = #tpu.pipeline_mode<synchronous>, transform_indices = @transform_4, window_bounds = array<i64: 36, 8>}, {pipeline_mode = #tpu.pipeline_mode<synchronous>, transform_indices = @transform_5, window_bounds = array<i64: 1, 8>}, {pipeline_mode = #tpu.pipeline_mode<synchronous>, transform_indices = @transform_6, window_bounds = array<i64: 1, 8>}, {transform_indices = @transform_7, window_bounds = array<i64: 1, 8, 16, 8>}]} {
    %c8_i32 = arith.constant 8 : i32
    %0 = arith.muli %arg1, %c8_i32 : i32
    %1 = tpu.assume_multiple %0, 8 : i32
    %c0_i32 = arith.constant 0 : i32
    %2 = arith.addi %1, %c0_i32 : i32
    %c0 = arith.constant 0 : index
    %3 = arith.index_cast %2 : i32 to index
    %c0_0 = arith.constant 0 : index
    %c0_1 = arith.constant 0 : index
    %4 = vector.load %arg2[%c0, %3, %c0_0, %c0_1] : memref<1x20x18x8xbf16, #tpu.memory_space<vmem>>, vector<1x10x16x8xbf16>
    %5 = vector.shape_cast %4 : vector<1x10x16x8xbf16> to vector<10x16x8xbf16>
    %6 = vector.shape_cast %5 : vector<10x16x8xbf16> to vector<160x8xbf16>
    %c0_i32_2 = arith.constant 0 : i32
    %7 = arith.addi %1, %c0_i32_2 : i32
    %c0_3 = arith.constant 0 : index
    %8 = arith.index_cast %7 : i32 to index
    %c1 = arith.constant 1 : index
    %c0_4 = arith.constant 0 : index
    %9 = vector.load %arg2[%c0_3, %8, %c1, %c0_4] : memref<1x20x18x8xbf16, #tpu.memory_space<vmem>>, vector<1x10x16x8xbf16>
    %10 = vector.shape_cast %9 : vector<1x10x16x8xbf16> to vector<10x16x8xbf16>
    %11 = vector.shape_cast %10 : vector<10x16x8xbf16> to vector<160x8xbf16>
    %c0_i32_5 = arith.constant 0 : i32
    %12 = arith.addi %1, %c0_i32_5 : i32
    %c0_6 = arith.constant 0 : index
    %13 = arith.index_cast %12 : i32 to index
    %c2 = arith.constant 2 : index
    %c0_7 = arith.constant 0 : index
    %14 = vector.load %arg2[%c0_6, %13, %c2, %c0_7] : memref<1x20x18x8xbf16, #tpu.memory_space<vmem>>, vector<1x10x16x8xbf16>
    %15 = vector.shape_cast %14 : vector<1x10x16x8xbf16> to vector<10x16x8xbf16>
    %16 = vector.shape_cast %15 : vector<10x16x8xbf16> to vector<160x8xbf16>
    %c1_i32 = arith.constant 1 : i32
    %17 = arith.addi %1, %c1_i32 : i32
    %c0_8 = arith.constant 0 : index
    %18 = arith.index_cast %17 : i32 to index
    %c0_9 = arith.constant 0 : index
    %c0_10 = arith.constant 0 : index
    %19 = vector.load %arg2[%c0_8, %18, %c0_9, %c0_10] : memref<1x20x18x8xbf16, #tpu.memory_space<vmem>>, vector<1x10x16x8xbf16>
    %20 = vector.shape_cast %19 : vector<1x10x16x8xbf16> to vector<10x16x8xbf16>
    %21 = vector.shape_cast %20 : vector<10x16x8xbf16> to vector<160x8xbf16>
    %c1_i32_11 = arith.constant 1 : i32
    %22 = arith.addi %1, %c1_i32_11 : i32
    %c0_12 = arith.constant 0 : index
    %23 = arith.index_cast %22 : i32 to index
    %c1_13 = arith.constant 1 : index
    %c0_14 = arith.constant 0 : index
    %24 = vector.load %arg2[%c0_12, %23, %c1_13, %c0_14] : memref<1x20x18x8xbf16, #tpu.memory_space<vmem>>, vector<1x10x16x8xbf16>
    %25 = vector.shape_cast %24 : vector<1x10x16x8xbf16> to vector<10x16x8xbf16>
    %26 = vector.shape_cast %25 : vector<10x16x8xbf16> to vector<160x8xbf16>
    %c1_i32_15 = arith.constant 1 : i32
    %27 = arith.addi %1, %c1_i32_15 : i32
    %c0_16 = arith.constant 0 : index
    %28 = arith.index_cast %27 : i32 to index
    %c2_17 = arith.constant 2 : index
    %c0_18 = arith.constant 0 : index
    %29 = vector.load %arg2[%c0_16, %28, %c2_17, %c0_18] : memref<1x20x18x8xbf16, #tpu.memory_space<vmem>>, vector<1x10x16x8xbf16>
    %30 = vector.shape_cast %29 : vector<1x10x16x8xbf16> to vector<10x16x8xbf16>
    %31 = vector.shape_cast %30 : vector<10x16x8xbf16> to vector<160x8xbf16>
    %c2_i32 = arith.constant 2 : i32
    %32 = arith.addi %1, %c2_i32 : i32
    %c0_19 = arith.constant 0 : index
    %33 = arith.index_cast %32 : i32 to index
    %c0_20 = arith.constant 0 : index
    %c0_21 = arith.constant 0 : index
    %34 = vector.load %arg2[%c0_19, %33, %c0_20, %c0_21] : memref<1x20x18x8xbf16, #tpu.memory_space<vmem>>, vector<1x10x16x8xbf16>
    %35 = vector.shape_cast %34 : vector<1x10x16x8xbf16> to vector<10x16x8xbf16>
    %36 = vector.shape_cast %35 : vector<10x16x8xbf16> to vector<160x8xbf16>
    %c2_i32_22 = arith.constant 2 : i32
    %37 = arith.addi %1, %c2_i32_22 : i32
    %c0_23 = arith.constant 0 : index
    %38 = arith.index_cast %37 : i32 to index
    %c1_24 = arith.constant 1 : index
    %c0_25 = arith.constant 0 : index
    %39 = vector.load %arg2[%c0_23, %38, %c1_24, %c0_25] : memref<1x20x18x8xbf16, #tpu.memory_space<vmem>>, vector<1x10x16x8xbf16>
    %40 = vector.shape_cast %39 : vector<1x10x16x8xbf16> to vector<10x16x8xbf16>
    %41 = vector.shape_cast %40 : vector<10x16x8xbf16> to vector<160x8xbf16>
    %c2_i32_26 = arith.constant 2 : i32
    %42 = arith.addi %1, %c2_i32_26 : i32
    %c0_27 = arith.constant 0 : index
    %43 = arith.index_cast %42 : i32 to index
    %c2_28 = arith.constant 2 : index
    %c0_29 = arith.constant 0 : index
    %44 = vector.load %arg2[%c0_27, %43, %c2_28, %c0_29] : memref<1x20x18x8xbf16, #tpu.memory_space<vmem>>, vector<1x10x16x8xbf16>
    %45 = vector.shape_cast %44 : vector<1x10x16x8xbf16> to vector<10x16x8xbf16>
    %46 = vector.shape_cast %45 : vector<10x16x8xbf16> to vector<160x8xbf16>
    %47 = tpu.concatenate %6, %11, %16, %21, %26, %31, %36, %41, %46 in 1 : vector<160x8xbf16>, vector<160x8xbf16>, vector<160x8xbf16>, vector<160x8xbf16>, vector<160x8xbf16>, vector<160x8xbf16>, vector<160x8xbf16>, vector<160x8xbf16>, vector<160x8xbf16> -> vector<160x72xbf16>
    %c0_30 = arith.constant 0 : index
    %c0_31 = arith.constant 0 : index
    %48 = vector.load %arg3[%c0_30, %c0_31] : memref<72x4xbf16, #tpu.memory_space<vmem>>, vector<72x4xbf16>
    %cst = arith.constant dense<0.000000e+00> : vector<160x4xf32>
    %49 = tpu.matmul %47, %48, %cst {dimension_numbers = #tpu.dot_dimension_numbers<[1], [0], [0], [1], [0, 0, 1, 1], [], []>} : vector<160x72xbf16>, vector<72x4xbf16>, vector<160x4xf32> -> vector<160x4xf32>
    %c0_32 = arith.constant 0 : index
    %c0_33 = arith.constant 0 : index
    %50 = vector.load %arg4[%c0_32, %c0_33] : memref<1x4xf32, #tpu.memory_space<vmem>>, vector<1x4xf32>
    %51 = vector.broadcast %50 : vector<1x4xf32> to vector<160x4xf32>
    %52 = arith.mulf %49, %51 : vector<160x4xf32>
    %c0_34 = arith.constant 0 : index
    %c0_35 = arith.constant 0 : index
    %53 = vector.load %arg5[%c0_34, %c0_35] : memref<1x4xf32, #tpu.memory_space<vmem>>, vector<1x4xf32>
    %54 = vector.broadcast %53 : vector<1x4xf32> to vector<160x4xf32>
    %55 = arith.addf %52, %54 : vector<160x4xf32>
    %56 = arith.negf %55 : vector<160x4xf32>
    %57 = math.exp %56 : vector<160x4xf32>
    %cst_36 = arith.constant 1.000000e+00 : f32
    %58 = vector.broadcast %cst_36 : f32 to vector<160x4xf32>
    %59 = arith.addf %58, %57 : vector<160x4xf32>
    %60 = arith.divf %58, %59 : vector<160x4xf32>
    %61 = arith.mulf %55, %60 : vector<160x4xf32>
    %cst_37 = arith.constant 0.000000e+00 : bf16
    %62 = vector.broadcast %cst_37 : bf16 to vector<10x1x4xbf16>
    %c0_38 = arith.constant 0 : index
    %c0_39 = arith.constant 0 : index
    %c0_40 = arith.constant 0 : index
    %63 = vector.load %arg10[%c0_38, %c0_39, %c0_40] : memref<10x18x4xbf16, #tpu.memory_space<vmem>>, vector<10x1x4xbf16>
    tpu.vector_store %arg10[%c0_38, %c0_39, %c0_40], %62 {strides = array<i32>} : memref<10x18x4xbf16, #tpu.memory_space<vmem>>, vector<10x1x4xbf16>,
    %cst_41 = arith.constant 0.000000e+00 : bf16
    %64 = vector.broadcast %cst_41 : bf16 to vector<10x1x4xbf16>
    %c0_42 = arith.constant 0 : index
    %c17 = arith.constant 17 : index
    %c0_43 = arith.constant 0 : index
    %65 = vector.load %arg10[%c0_42, %c17, %c0_43] : memref<10x18x4xbf16, #tpu.memory_space<vmem>>, vector<10x1x4xbf16>
    tpu.vector_store %arg10[%c0_42, %c17, %c0_43], %64 {strides = array<i32>} : memref<10x18x4xbf16, #tpu.memory_space<vmem>>, vector<10x1x4xbf16>,
    %66 = vector.shape_cast %61 : vector<160x4xf32> to vector<10x16x4xf32>
    %67 = arith.truncf %66 : vector<10x16x4xf32> to vector<10x16x4xbf16>
    %c0_44 = arith.constant 0 : index
    %c1_45 = arith.constant 1 : index
    %c0_46 = arith.constant 0 : index
    %68 = vector.load %arg10[%c0_44, %c1_45, %c0_46] : memref<10x18x4xbf16, #tpu.memory_space<vmem>>, vector<10x16x4xbf16>
    tpu.vector_store %arg10[%c0_44, %c1_45, %c0_46], %67 {strides = array<i32>} : memref<10x18x4xbf16, #tpu.memory_space<vmem>>, vector<10x16x4xbf16>,
    %c0_i32_47 = arith.constant 0 : i32
    %69 = arith.cmpi eq, %arg1, %c0_i32_47 : i32
    %70 = arith.extui %69 : i1 to i32
    %c0_i32_48 = arith.constant 0 : i32
    %71 = arith.cmpi ne, %70, %c0_i32_48 : i32
    scf.if %71 {
      %cst_94 = arith.constant 0.000000e+00 : bf16
      %119 = vector.broadcast %cst_94 : bf16 to vector<1x18x4xbf16>
      %c0_95 = arith.constant 0 : index
      %c0_96 = arith.constant 0 : index
      %c0_97 = arith.constant 0 : index
      %120 = vector.load %arg10[%c0_95, %c0_96, %c0_97] : memref<10x18x4xbf16, #tpu.memory_space<vmem>>, vector<1x18x4xbf16>
      tpu.vector_store %arg10[%c0_95, %c0_96, %c0_97], %119 {strides = array<i32>} : memref<10x18x4xbf16, #tpu.memory_space<vmem>>, vector<1x18x4xbf16>,
    } else {
    }
    %c1_i32_49 = arith.constant 1 : i32
    %72 = arith.cmpi eq, %arg1, %c1_i32_49 : i32
    %73 = arith.extui %72 : i1 to i32
    %c0_i32_50 = arith.constant 0 : i32
    %74 = arith.cmpi ne, %73, %c0_i32_50 : i32
    scf.if %74 {
      %cst_94 = arith.constant 0.000000e+00 : bf16
      %119 = vector.broadcast %cst_94 : bf16 to vector<1x18x4xbf16>
      %c9 = arith.constant 9 : index
      %c0_95 = arith.constant 0 : index
      %c0_96 = arith.constant 0 : index
      %120 = vector.load %arg10[%c9, %c0_95, %c0_96] : memref<10x18x4xbf16, #tpu.memory_space<vmem>>, vector<1x18x4xbf16>
      tpu.vector_store %arg10[%c9, %c0_95, %c0_96], %119 {strides = array<i32>} : memref<10x18x4xbf16, #tpu.memory_space<vmem>>, vector<1x18x4xbf16>,
    } else {
    }
    %c0_51 = arith.constant 0 : index
    %c0_52 = arith.constant 0 : index
    %c0_53 = arith.constant 0 : index
    %75 = vector.load %arg10[%c0_51, %c0_52, %c0_53] : memref<10x18x4xbf16, #tpu.memory_space<vmem>>, vector<8x16x4xbf16>
    %76 = vector.shape_cast %75 : vector<8x16x4xbf16> to vector<128x4xbf16>
    %c0_54 = arith.constant 0 : index
    %c1_55 = arith.constant 1 : index
    %c0_56 = arith.constant 0 : index
    %77 = vector.load %arg10[%c0_54, %c1_55, %c0_56] : memref<10x18x4xbf16, #tpu.memory_space<vmem>>, vector<8x16x4xbf16>
    %78 = vector.shape_cast %77 : vector<8x16x4xbf16> to vector<128x4xbf16>
    %c0_57 = arith.constant 0 : index
    %c2_58 = arith.constant 2 : index
    %c0_59 = arith.constant 0 : index
    %79 = vector.load %arg10[%c0_57, %c2_58, %c0_59] : memref<10x18x4xbf16, #tpu.memory_space<vmem>>, vector<8x16x4xbf16>
    %80 = vector.shape_cast %79 : vector<8x16x4xbf16> to vector<128x4xbf16>
    %c1_60 = arith.constant 1 : index
    %c0_61 = arith.constant 0 : index
    %c0_62 = arith.constant 0 : index
    %81 = vector.load %arg10[%c1_60, %c0_61, %c0_62] : memref<10x18x4xbf16, #tpu.memory_space<vmem>>, vector<8x16x4xbf16>
    %82 = vector.shape_cast %81 : vector<8x16x4xbf16> to vector<128x4xbf16>
    %c1_63 = arith.constant 1 : index
    %c1_64 = arith.constant 1 : index
    %c0_65 = arith.constant 0 : index
    %83 = vector.load %arg10[%c1_63, %c1_64, %c0_65] : memref<10x18x4xbf16, #tpu.memory_space<vmem>>, vector<8x16x4xbf16>
    %84 = vector.shape_cast %83 : vector<8x16x4xbf16> to vector<128x4xbf16>
    %c1_66 = arith.constant 1 : index
    %c2_67 = arith.constant 2 : index
    %c0_68 = arith.constant 0 : index
    %85 = vector.load %arg10[%c1_66, %c2_67, %c0_68] : memref<10x18x4xbf16, #tpu.memory_space<vmem>>, vector<8x16x4xbf16>
    %86 = vector.shape_cast %85 : vector<8x16x4xbf16> to vector<128x4xbf16>
    %c2_69 = arith.constant 2 : index
    %c0_70 = arith.constant 0 : index
    %c0_71 = arith.constant 0 : index
    %87 = vector.load %arg10[%c2_69, %c0_70, %c0_71] : memref<10x18x4xbf16, #tpu.memory_space<vmem>>, vector<8x16x4xbf16>
    %88 = vector.shape_cast %87 : vector<8x16x4xbf16> to vector<128x4xbf16>
    %c2_72 = arith.constant 2 : index
    %c1_73 = arith.constant 1 : index
    %c0_74 = arith.constant 0 : index
    %89 = vector.load %arg10[%c2_72, %c1_73, %c0_74] : memref<10x18x4xbf16, #tpu.memory_space<vmem>>, vector<8x16x4xbf16>
    %90 = vector.shape_cast %89 : vector<8x16x4xbf16> to vector<128x4xbf16>
    %c2_75 = arith.constant 2 : index
    %c2_76 = arith.constant 2 : index
    %c0_77 = arith.constant 0 : index
    %91 = vector.load %arg10[%c2_75, %c2_76, %c0_77] : memref<10x18x4xbf16, #tpu.memory_space<vmem>>, vector<8x16x4xbf16>
    %92 = vector.shape_cast %91 : vector<8x16x4xbf16> to vector<128x4xbf16>
    %93 = tpu.concatenate %76, %78, %80, %82, %84, %86, %88, %90, %92 in 1 : vector<128x4xbf16>, vector<128x4xbf16>, vector<128x4xbf16>, vector<128x4xbf16>, vector<128x4xbf16>, vector<128x4xbf16>, vector<128x4xbf16>, vector<128x4xbf16>, vector<128x4xbf16> -> vector<128x36xbf16>
    %c0_78 = arith.constant 0 : index
    %c0_79 = arith.constant 0 : index
    %94 = vector.load %arg6[%c0_78, %c0_79] : memref<36x8xbf16, #tpu.memory_space<vmem>>, vector<36x8xbf16>
    %cst_80 = arith.constant dense<0.000000e+00> : vector<128x8xf32>
    %95 = tpu.matmul %93, %94, %cst_80 {dimension_numbers = #tpu.dot_dimension_numbers<[1], [0], [0], [1], [0, 0, 1, 1], [], []>} : vector<128x36xbf16>, vector<36x8xbf16>, vector<128x8xf32> -> vector<128x8xf32>
    %c0_81 = arith.constant 0 : index
    %c0_82 = arith.constant 0 : index
    %96 = vector.load %arg7[%c0_81, %c0_82] : memref<1x8xf32, #tpu.memory_space<vmem>>, vector<1x8xf32>
    %97 = vector.broadcast %96 : vector<1x8xf32> to vector<128x8xf32>
    %98 = arith.mulf %95, %97 : vector<128x8xf32>
    %c0_83 = arith.constant 0 : index
    %c0_84 = arith.constant 0 : index
    %99 = vector.load %arg8[%c0_83, %c0_84] : memref<1x8xf32, #tpu.memory_space<vmem>>, vector<1x8xf32>
    %100 = vector.broadcast %99 : vector<1x8xf32> to vector<128x8xf32>
    %101 = arith.addf %98, %100 : vector<128x8xf32>
    %102 = arith.negf %101 : vector<128x8xf32>
    %103 = math.exp %102 : vector<128x8xf32>
    %cst_85 = arith.constant 1.000000e+00 : f32
    %104 = vector.broadcast %cst_85 : f32 to vector<128x8xf32>
    %105 = arith.addf %104, %103 : vector<128x8xf32>
    %106 = arith.divf %104, %105 : vector<128x8xf32>
    %107 = arith.mulf %101, %106 : vector<128x8xf32>
    %c2_i32_86 = arith.constant 2 : i32
    %108 = arith.addi %1, %c2_i32_86 : i32
    %c0_87 = arith.constant 0 : index
    %109 = arith.index_cast %108 : i32 to index
    %c1_88 = arith.constant 1 : index
    %c0_89 = arith.constant 0 : index
    %110 = vector.load %arg2[%c0_87, %109, %c1_88, %c0_89] : memref<1x20x18x8xbf16, #tpu.memory_space<vmem>>, vector<1x8x16x8xbf16>
    %111 = vector.shape_cast %110 : vector<1x8x16x8xbf16> to vector<8x16x8xbf16>
    %112 = vector.shape_cast %111 : vector<8x16x8xbf16> to vector<128x8xbf16>
    %113 = arith.extf %112 : vector<128x8xbf16> to vector<128x8xf32>
    %114 = arith.addf %107, %113 : vector<128x8xf32>
    %115 = vector.shape_cast %114 : vector<128x8xf32> to vector<8x16x8xf32>
    %c0_90 = arith.constant 0 : index
    %c0_91 = arith.constant 0 : index
    %c0_92 = arith.constant 0 : index
    %c0_93 = arith.constant 0 : index
    %116 = vector.load %arg9[%c0_90, %c0_91, %c0_92, %c0_93] : memref<1x8x16x8xf32, #tpu.memory_space<vmem>>, vector<1x8x16x8xf32>
    %117 = vector.shape_cast %116 : vector<1x8x16x8xf32> to vector<8x16x8xf32>
    %118 = vector.shape_cast %115 : vector<8x16x8xf32> to vector<1x8x16x8xf32>
    tpu.vector_store %arg9[%c0_90, %c0_91, %c0_92, %c0_93], %118 {strides = array<i32>} : memref<1x8x16x8xf32, #tpu.memory_space<vmem>>, vector<1x8x16x8xf32>,
    return
  }
  func.func @transform_0(%arg0: i32, %arg1: i32) -> (i32, i32, i32, i32) {
    %c0_i32 = arith.constant 0 : i32
    %c0_i32_0 = arith.constant 0 : i32
    %c0_i32_1 = arith.constant 0 : i32
    %c0_i32_2 = arith.constant 0 : i32
    return %arg0, %c0_i32, %c0_i32_0, %c0_i32_1 : i32, i32, i32, i32
  }
  func.func @transform_1(%arg0: i32, %arg1: i32) -> (i32, i32) {
    %c0_i32 = arith.constant 0 : i32
    %c0_i32_0 = arith.constant 0 : i32
    %c0_i32_1 = arith.constant 0 : i32
    return %c0_i32, %c0_i32_0 : i32, i32
  }
  func.func @transform_2(%arg0: i32, %arg1: i32) -> (i32, i32) {
    %c0_i32 = arith.constant 0 : i32
    %c0_i32_0 = arith.constant 0 : i32
    %c0_i32_1 = arith.constant 0 : i32
    return %c0_i32, %c0_i32_0 : i32, i32
  }
  func.func @transform_3(%arg0: i32, %arg1: i32) -> (i32, i32) {
    %c0_i32 = arith.constant 0 : i32
    %c0_i32_0 = arith.constant 0 : i32
    %c0_i32_1 = arith.constant 0 : i32
    return %c0_i32, %c0_i32_0 : i32, i32
  }
  func.func @transform_4(%arg0: i32, %arg1: i32) -> (i32, i32) {
    %c0_i32 = arith.constant 0 : i32
    %c0_i32_0 = arith.constant 0 : i32
    %c0_i32_1 = arith.constant 0 : i32
    return %c0_i32, %c0_i32_0 : i32, i32
  }
  func.func @transform_5(%arg0: i32, %arg1: i32) -> (i32, i32) {
    %c0_i32 = arith.constant 0 : i32
    %c0_i32_0 = arith.constant 0 : i32
    %c0_i32_1 = arith.constant 0 : i32
    return %c0_i32, %c0_i32_0 : i32, i32
  }
  func.func @transform_6(%arg0: i32, %arg1: i32) -> (i32, i32) {
    %c0_i32 = arith.constant 0 : i32
    %c0_i32_0 = arith.constant 0 : i32
    %c0_i32_1 = arith.constant 0 : i32
    return %c0_i32, %c0_i32_0 : i32, i32
  }
  func.func @transform_7(%arg0: i32, %arg1: i32) -> (i32, i32, i32, i32) {
    %c0_i32 = arith.constant 0 : i32
    %c0_i32_0 = arith.constant 0 : i32
    %c0_i32_1 = arith.constant 0 : i32
    return %arg0, %arg1, %c0_i32, %c0_i32_0 : i32, i32, i32, i32
  }
}

</mosaic_0001>

<bundles_post_ra>
// kernel: tpu_custom_call.1
= control target key start
LH: loop header
LB: loop body
LE: loop exit
PB: predicated region body
PF: predicated region fallthrough
CT: control target
= control target key end

     0   :  { %s5894_s24 = smov 0   ;;  %s5896_s25 = smov 0   ;;  %s7905_s0 = inlined_call_operand.vmem [shape: bf16[2,20,18,8], index: 0, kind: input, shape index: {}]   ;;  %s7906_s1 = inlined_call_operand.vmem [shape: bf16[72,4], index: 1, kind: input, shape index: {}]   ;;  %s7907_s2 = inlined_call_operand.vmem [shape: f32[1,4], index: 2, kind: input, shape index: {}]   ;;  %s7908_s3 = inlined_call_operand.vmem [shape: f32[1,4], index: 3, kind: input, shape index: {}]   ;;  %s7909_s4 = inlined_call_operand.vmem [shape: bf16[36,8], index: 4, kind: input, shape index: {}]   ;;  %s7910_s5 = inlined_call_operand.vmem [shape: f32[1,8], index: 5, kind: input, shape index: {}]   ;;  %s7911_s6 = inlined_call_operand.vmem [shape: f32[1,8], index: 6, kind: input, shape index: {}]   ;;  %s7912_s7 = inlined_call_operand.vmem [shape: f32[2,16,16,8], index: 7, kind: output, shape index: {}]  }
   0x1   :  { %s5898_s26 = smov 0   ;;  %s5900_s27 = smov 0  }
   0x2   :  { %s5902_s28 = smov 0  }
   0x3 LB: > { %s26_s29 = sadd.s32 1, %s5830_s26  ;;  %s29_s30 = sadd.s32 1, %s5834_s27  ;;  %s5838_s28 = sphi %s5902_s28, %s17_s28   ;;  %s5834_s27 = sphi %s5900_s27, %s7928_s27   ;;  %s5830_s26 = sphi %s5898_s26, %s7927_s26   ;;  %s5826_s25 = sphi %s5896_s25, %s7926_s25   ;;  %s5822_s24 = sphi %s5894_s24, %s7925_s24  }
   0x4   : > { %p27_p0 = scmp.ge.s32.totalorder %s26_s29, 2  ;;  %p4988_p1 = scmp.ge.s32.totalorder %s5838_s28, 1 }
   0x5   : > { %p251_p2 = scmp.lt.s32.totalorder %s5838_s28, 5 }
   0x6   : > { %s7930_s29 = smov (%p27_p0, %s26_s29), 0  ;;  %s7932_s30 = smov (!%p27_p0, %s29_s30), %s5834_s27 }
   0x7   : > { %p252_p3 = pnand %p4988_p1, %p251_p2  ;;  %p31_p4 = scmp.ge.s32.totalorder %s7932_s30, 2 }
   0x8   : > { %p288_p5 = scmp.lt.s32.totalorder (!%p252_p3), %s5826_s25, 1  ;;  %s4990_s8 = sshll.u32 (!%p252_p3), %s5822_s24, 3 }
   0x9   : > { %s7934_s30 = smov (%p31_p4, %s7932_s30), 0  ;;  %255 = sbr.rel (%p252_p3) target bundleno = 1111 (0x457), region = 48 }
   0xa   : > { %p296_p6 = scmp.lt.s32.totalorder (!%p252_p3), %s4990_s8, 15  ;;  %s5411_s9 = smul.u32 (!%p252_p3), 96, %s5822_s24 }
   0xb   : > { %s5840_s22 = smov (!%p252_p3), 24   ;;  %s5841_s23 = smov (!%p252_p3), 48  }
   0xc   : > { %p5258_p7 = scmp.ne.s32.totalorder (!%p252_p3), %s5822_s24, 0 }
   0xe   : > { %s7936_s25 = smov (!%p288_p5, %s5826_s25), 1  ;;  %s7938_s8 = smov (!%p296_p6, %s4990_s8), 15  ;;  %vm622_vm0 = vcmask 1042432   ;;  %vm623_vm1 = vcmask 1046532   ;;  %vm339_vm3 = vsmask.f32 3328 }
   0xf   : > { %s5512_s10 = smul.u32 240, %s7936_s25  ;;  %s4992_s11 = sshll.u32 %s7936_s25, 5  ;;  %vm5980_vm2 = vmor %vm622_vm0, %vm623_vm1  ;;  %vm340_vm4 = vsmask.f32 7440  ;;  %vm1923_vm6 = vcmask 64512   ;;  %vm1954_vm7 = vcmask 130048  }
  0x10   : > { %s4991_s12 = sshll.u32 %s7938_s8, 1  ;;  %s5842_s25 = smov 40   ;;  %vm6027_vm5 = vmor %vm339_vm3, %vm340_vm4  ;;  %vm2158_vm8 = vcmask 1043456   ;;  %vm1975_vm9 = vcmask 195584   ;;  %vm1996_vm10 = vcmask 261120   ;;  %vm2017_vm11 = vcmask 326656  }
  0x11   : > { %s292_s15 = scalar_lea.vmem %s7905_s0, %s5512_s10  ;;  %s300_s16 = sadd.s32 %s4992_s11, %s4991_s12  ;;  %vm2038_vm12 = vcmask 392192   ;;  %vm2059_vm13 = vcmask 457728   ;;  %vm2080_vm14 = vcmask 523264   ;;  %vm2137_vm15 = vcmask 588800  }
  0x12   : > { %s4993_s17 = sshll.u32 %s300_s16, 3  ;;  %s5931_s18 = scalar_lea.vmem %s292_s15, %s5411_s9  ;;  %vm2469_vm0 = vcmask 24576   ;;  %vm2470_vm1 = vsmask.f32 256  ;;  %vm2502_vm4 = vsmask.f32 7938 }
  0x13   : > { %s5936_s21 = scalar_lea.vmem %s7912_s7, %s4993_s17  ;;  %v5011_v0 = vld [vmem:[%s5931_s18 + $0x18] sm:$0xf]  ;;  %v5940_v1 = vld [vmem:[%s5931_s18 + $0x1c] sm:$0xf]  ;;  %v5009_v2 = vld [vmem:[%s5931_s18 + $0xc] sm:$0xf] }
  0x14   : > { %v763_v3 = vshll.u32 %v5940_v1, 16  ;;  %v767_v4 = vshrl.u32 %v5940_v1, 16  ;;  %v5142_v5 = vcombine.low %v5011_v0, %v5940_v1  ;;  %v754_v6 = vshrl.u32 %v5011_v0, 16  ;;  %v5947_v7 = vld [vmem:[%s5931_s18 + $0x10] sm:$0xf]  ;;  %s5843_s8 = smov 16   ;;  %vm6852_vm3 = vmand %vm2469_vm0, %vm2470_vm1 }
  0x15   : > { %v757_v8 = vshll.u32 %v5011_v0, 16  ;;  %v739_v9 = vshll.u32 %v5947_v7, 16  ;;  %v743_v10 = vshrl.u32 %v5947_v7, 16  ;;  %v5141_v11 = vcombine.low %v5009_v2, %v5947_v7  ;;  %v5063_v12 = vld [vmem:[%s5931_s18 + $0x24] sm:$0xf]  ;;  %s5844_s9 = smov 8  }
  0x16   : > { %v5953_v13 = vrot.slane %v767_v4, 4  ;;  %1645 = vrot.lane.b32.xlu1 %v5142_v5, %s5840_s22  ;;  %v756_v14 = vrot.slane %v754_v6, 4  ;;  %v730_v15 = vshrl.u32 %v5009_v2, 16  ;;  %v733_v16 = vshll.u32 %v5009_v2, 16  ;;  %v5957_v17 = vld [vmem:[%s5931_s18 + $0x28] sm:$0xf] }
  0x17   : > { %v759_v18 = vrot.slane %v757_v8, 5  ;;  %v5959_v19 = vrot.slane %v743_v10, 4  ;;  %1643 = vrot.lane.b32.xlu0 %v5141_v11, %s5840_s22  ;;  %v1138_v20 = vshrl.u32 %v5063_v12, 16  ;;  %v1141_v21 = vshll.u32 %v5063_v12, 16  ;;  %v5061_v22 = vld [vmem:[%s5931_s18 + $0x18] sm:$0xf] }
  0x18   : > { %v732_v23 = vrot.slane %v730_v15, 4  ;;  %v735_v24 = vrot.slane %v733_v16, 5  ;;  %v1151_v25 = vshrl.u32 %v5957_v17, 16  ;;  %v5172_v26 = vcombine.low %v5063_v12, %v5957_v17  ;;  %v5966_v27 = vld [vmem:[%s5931_s18 + $0x1c] sm:$0xf]  ;;  %s5845_s10 = smov 32  }
  0x19   : > { %v760_v28 = vor.u32 %v759_v18, %v756_v14  ;;  %v5968_v29 = vrot.slane %v1138_v20, 4  ;;  %v5970_v30 = vrot.slane %v1141_v21, 5  ;;  %v1114_v31 = vshrl.u32 %v5061_v22, 16  ;;  %v5973_v32 = vld [vmem:[%s5931_s18 + $0x14] sm:$0x1]  ;;  %s5846_s11 = smov 56  }
  0x1a   : > { %v736_v33 = vor.u32 %v735_v24, %v732_v23  ;;  %1805 = vrot.lane.b32.xlu1 %v5172_v26, %s5841_s23  ;;  %v1117_v34 = vshll.u32 %v5061_v22, 16  ;;  %v1127_v35 = vshrl.u32 %v5966_v27, 16  ;;  %v5171_v36 = vcombine.low %v5061_v22, %v5966_v27  ;;  %v5039_v38 = vld [vmem:[%s5931_s18 + $0xc] sm:$0xe]  ;;  %v310_v39 = vld [vmem:[%s5931_s18 + $0x4] sm:$0xf] }
  0x1b   : > { %v5986_v40 = vrot.slane %v760_v28, 4  ;;  %v5988_v41 = vrot.slane %v1114_v31, 4  ;;  %v5049_v42 = vrot.slane %v5039_v38, 9  ;;  %v1011_v43 = vrot.slane %v5947_v7, 5  ;;  %v329_v44 = vld [vmem:[%s5931_s18 + $0x8] sm:$0x1] }
  0x1c   : > { %v5992_v45 = vrot.slane %v736_v33, 4  ;;  %v5994_v46 = vrot.slane %v1117_v34, 5  ;;  %1803 = vrot.lane.b32.xlu0 %v5171_v36, %s5841_s23  ;;  %v1014_v47 = vrot.slane %v5973_v32, 5  ;;  %v582_v48 = vld [vmem:[%s5931_s18] sm:$0xe]  ;;  %v627_v49 = vrot.slane %v310_v39, 5 }
  0x1d   : > { %v1012_v50 = vsel %vm5980_vm2, %v5049_v42, %v1011_v43  ;;  %v1013_v51 = vrot.slane %v1011_v43, 4  ;;  %v4997_v52 = vrot.slane %v582_v48, 9  ;;  %v630_v53 = vrot.slane %v329_v44, 5  ;;  %v312_v54 = vld [vmem:[%s5931_s18 + $0x10] sm:$0xf]  ;;  %s5847_s12 = smov 64  }
  0x1e   : > { %v629_v55 = vrot.slane %v627_v49, 4  ;;  %v330_v56 = vld [vmem:[%s5931_s18 + $0x14] sm:$0x1]  ;;  %v583_v57 = vld [vmem:[%s5931_s18 + $0xc] sm:$0xe]  ;;  %v634_v58 = vrot.slane %v312_v54, 5  ;;  %v1144_v59 = vor.u32 %v5970_v30, %v5968_v29  ;;  %v1120_v60 = vor.u32 %v5994_v46, %v5988_v41 }
  0x1f   : > { %v1015_v61 = vsel %vm5980_vm2, %v1013_v51, %v1014_v47  ;;  %v628_v62 = vsel %vm5980_vm2, %v4997_v52, %v627_v49  ;;  %v4998_v63 = vrot.slane %v583_v57, 9  ;;  %v637_v0 = vrot.slane %v330_v56, 5  ;;  %v309_v2 = vld [vmem:[%s5931_s18] sm:$0xf]  ;;  %v5040_v10 = vld [vmem:[%s5931_s18 + $0x18] sm:$0xe] }
  0x20   : > { %v5161_v4 = vcombine.low %v1012_v50, %v1015_v61  ;;  %v631_v5 = vsel %vm5980_vm2, %v629_v55, %v630_v53  ;;  %v636_v6 = vrot.slane %v634_v58, 4  ;;  %v343_v8 = vshrl.u32 %v309_v2, 16  ;;  %v5030_v16 = vld [vmem:[%s5931_s18 + $0x20] sm:$0x1]  ;;  %v311_v23 = vld [vmem:[%s5931_s18 + $0xc] sm:$0xf] }
  0x21   : > { %v5131_v11 = vcombine.low %v628_v62, %v631_v5  ;;  %v635_v12 = vsel %vm5980_vm2, %v4998_v63, %v634_v58  ;;  %v346_v14 = vshll.u32 %v309_v2, 16  ;;  %v352_v15 = vshll.u32 %v310_v39, 16  ;;  %v5081_v30 = vld [vmem:[%s5931_s18 + $0x20] sm:$0x1] }
  0x22   : > { %1743 = vrot.lane.b32.xlu0 %v5161_v4, %s5842_s25  ;;  %v638_v18 = vsel %vm5980_vm2, %v636_v6, %v637_v0  ;;  %v345_v20 = vrot.slane %v343_v8, 4  ;;  %v356_v21 = vshrl.u32 %v310_v39, 16  ;;  %v362_v22 = vshll.u32 %v329_v44, 16 }
  0x23   : > { %1583 = vrot.lane.b32.xlu1 %v5131_v11, %s5843_s8  ;;  %v5132_v24 = vcombine.low %v635_v12, %v638_v18  ;;  %v348_v26 = vrot.slane %v346_v14, 5  ;;  %v354_v28 = vrot.slane %v352_v15, 5  ;;  %v5050_v31 = vrot.slane %v5040_v10, 9 }
  0x24   : > { %v358_v33 = vrot.slane %v356_v21, 4  ;;  %v364_v34 = vrot.slane %v362_v22, 5  ;;  %v1018_v36 = vrot.slane %v5940_v1, 5  ;;  %v1021_v38 = vrot.slane %v5030_v16, 5  ;;  %v6054_v21 = vld [vmem:[%s5931_s18 + $0x2c] sm:$0x1] }
  0x25   : > { %v349_v42 = vor.u32 %v348_v26, %v345_v20  ;;  %v367_v43 = vshrl.u32 %v311_v23, 16  ;;  %v370_v47 = vshll.u32 %v311_v23, 16  ;;  %v376_v48 = vshll.u32 %v312_v54, 16 }
  0x26   : > { %v359_v44 = vor.u32 %v358_v33, %v354_v28  ;;  %v1019_v49 = vsel %vm5980_vm2, %v5050_v31, %v1018_v36  ;;  %v1020_v50 = vrot.slane %v1018_v36, 4  ;;  %v380_v51 = vshrl.u32 %v312_v54, 16 }
  0x27   : > { %1585 = vrot.lane.b32.xlu1 %v5132_v24, %s5843_s8  ;;  %v350_v52 = vrot.slane %v349_v42, 4  ;;  %v369_v53 = vrot.slane %v367_v43, 4  ;;  %v372_v55 = vrot.slane %v370_v47, 5  ;;  %v378_v57 = vrot.slane %v376_v48, 5 }
  0x28   : > { %v360_v58 = vrot.slane %v359_v44, 4  ;;  %v1022_v61 = vsel %vm5980_vm2, %v1020_v50, %v1021_v38  ;;  %v382_v62 = vrot.slane %v380_v51, 4  ;;  %v386_v63 = vshll.u32 %v330_v56, 16  ;;  %v6083_v38 = vld [vmem:[%s5931_s18 + $0x1c] sm:$0xf] }
  0x29   : > { %v355_v0 = vsel %vm6027_vm5, %v350_v52, %v354_v28  ;;  %v5162_v2 = vcombine.low %v1019_v49, %v1022_v61  ;;  %v373_v4 = vor.u32 %v372_v55, %v369_v53  ;;  %v765_v54 = vrot.slane %v763_v3, 5  ;;  %v6089_v44 = vld [vmem:[%s5931_s18 + $0x20] sm:$0x1]  ;;  %v5091_v53 = vld [vmem:[%s5931_s18 + $0x18] sm:$0xe] }
  0x2a   : > { %v365_v5 = vsel %vm6027_vm5, %v360_v58, %v364_v34  ;;  %v383_v6 = vor.u32 %v382_v62, %v378_v57  ;;  %v388_v8 = vrot.slane %v386_v63, 5  ;;  %v773_v10 = vshll.u32 %v5030_v16, 16  ;;  %v315_v62 = vld [vmem:[%s5931_s18 + $0x24] sm:$0xf] }
  0x2b   : > { %v5121_v11 = vcombine.low %v355_v0, %v365_v5  ;;  %1745 = vrot.lane.b32.xlu1 %v5162_v2, %s5842_s25  ;;  %v374_v12 = vrot.slane %v373_v4, 4  ;;  %v766_v56 = vsel %vm6027_vm5, %v5986_v40, %v765_v54  ;;  %v770_v14 = vor.u32 %v5953_v13, %v765_v54 }
  0x2c   : > { %v384_v15 = vrot.slane %v383_v6, 4  ;;  %v775_v1 = vrot.slane %v773_v10, 5  ;;  %v741_v3 = vrot.slane %v739_v9, 5  ;;  %v749_v18 = vshll.u32 %v5973_v32, 16 }
  0x2d   : > { %1533 = vrot.lane.b32.xlu0 %v5121_v11, %s5844_s9  ;;  %v379_v16 = vsel %vm6027_vm5, %v374_v12, %v378_v57  ;;  %v771_v20 = vrot.slane %v770_v14, 4  ;;  %v1145_v13 = vrot.slane %v1144_v59, 4  ;;  %v1147_v7 = vshll.u32 %v5957_v17, 16  ;;  %v313_v59 = vld [vmem:[%s5931_s18 + $0x18] sm:$0xf] }
  0x2e   : > { %v389_v9 = vsel %vm6027_vm5, %v384_v15, %v388_v8  ;;  %v742_v32 = vsel %vm6027_vm5, %v5992_v45, %v741_v3  ;;  %v746_v40 = vor.u32 %v5959_v19, %v741_v3  ;;  %v751_v22 = vrot.slane %v749_v18, 5 }
  0x2f   : > { %v5122_v23 = vcombine.low %v379_v16, %v389_v9  ;;  %v776_v24 = vsel %vm6027_vm5, %v771_v20, %v775_v1  ;;  %v1149_v26 = vrot.slane %v1147_v7, 5  ;;  %v1153_v29 = vrot.slane %v1151_v25, 4  ;;  %v332_v16 = vld [vmem:[%s5931_s18 + $0x2c] sm:$0x1]  ;;  %v5092_v9 = vld [vmem:[%s5931_s18 + $0x24] sm:$0xe] }
  0x30   : > { %v5152_v28 = vcombine.low %v766_v56, %v776_v24  ;;  %v747_v31 = vrot.slane %v746_v40, 4  ;;  %v1157_v33 = vshll.u32 %v6054_v21, 16  ;;  %v1121_v19 = vrot.slane %v1120_v60, 4  ;;  %v316_v56 = vld [vmem:[%s5931_s18 + $0x28] sm:$0xf] }
  0x31   : > { %1535 = vrot.lane.b32.xlu0 %v5122_v23, %s5844_s9  ;;  %v1150_v45 = vsel %vm6027_vm5, %v1145_v13, %v1149_v26  ;;  %v1154_v34 = vor.u32 %v1153_v29, %v1149_v26  ;;  %v1123_v36 = vshll.u32 %v5966_v27, 16  ;;  %v1129_v25 = vrot.slane %v1127_v35, 4 }
  0x32   : > { %1695 = vrot.lane.b32.xlu1 %v5152_v28, %s5845_s10  ;;  %v752_v41 = vsel %vm6027_vm5, %v747_v31, %v751_v22  ;;  %v1159_v46 = vrot.slane %v1157_v33, 5  ;;  %v1133_v60 = vshll.u32 %v5081_v30, 16  ;;  %v391_v42 = vshrl.u32 %v313_v59, 16 }
  0x33   : > { %v5151_v43 = vcombine.low %v742_v32, %v752_v41  ;;  %v1155_v47 = vrot.slane %v1154_v34, 4  ;;  %v1125_v48 = vrot.slane %v1123_v36, 5  ;;  %v394_v49 = vshll.u32 %v313_v59, 16  ;;  %v585_v59 = vld [vmem:[%s5931_s18 + $0x24] sm:$0xe] }
  0x34   : > { %v1135_v35 = vrot.slane %v1133_v60, 5  ;;  %v393_v50 = vrot.slane %v391_v42, 4  ;;  %v400_v51 = vshll.u32 %v6083_v38, 16  ;;  %v404_v52 = vshrl.u32 %v6083_v38, 16 }
  0x35   : > { %1693 = vrot.lane.b32.xlu0 %v5151_v43, %s5845_s10  ;;  %v1160_v55 = vsel %vm6027_vm5, %v1155_v47, %v1159_v46  ;;  %v1126_v57 = vsel %vm6027_vm5, %v1121_v19, %v1125_v48  ;;  %v1130_v58 = vor.u32 %v1129_v25, %v1125_v48  ;;  %v396_v61 = vrot.slane %v394_v49, 5  ;;  %v6123_v47 = vld [vmem:[%s5931_s18 + $0x30] sm:$0xf] }
  0x36   : > { %v5182_v63 = vcombine.low %v1150_v45, %v1160_v55  ;;  %v402_v0 = vrot.slane %v400_v51, 5  ;;  %v406_v2 = vrot.slane %v404_v52, 4  ;;  %v410_v4 = vshll.u32 %v6089_v44, 16  ;;  %v584_v45 = vld [vmem:[%s5931_s18 + $0x18] sm:$0xe] }
  0x37   : > { %v1131_v54 = vrot.slane %v1130_v58, 4  ;;  %v397_v5 = vor.u32 %v396_v61, %v393_v50  ;;  %v5101_v6 = vrot.slane %v5091_v53, 9  ;;  %v1395_v8 = vrot.slane %v5966_v27, 5  ;;  %v5016_v58 = vld [vmem:[%s5931_s18 + $0x34] sm:$0xf] }
  0x38   : > { %1855 = vrot.lane.b32.xlu1 %v5182_v63, %s5846_s11  ;;  %v407_v10 = vor.u32 %v406_v2, %v402_v0  ;;  %v412_v11 = vrot.slane %v410_v4, 5  ;;  %v1398_v12 = vrot.slane %v5081_v30, 5  ;;  %v415_v14 = vshrl.u32 %v315_v62, 16  ;;  %v6146_v4 = vld [vmem:[%s5931_s18 + $0x28] sm:$0xf] }
  0x39   : > { %v1136_v15 = vsel %vm6027_vm5, %v1131_v54, %v1135_v35  ;;  %v398_v1 = vrot.slane %v397_v5, 4  ;;  %v1396_v3 = vsel %vm5980_vm2, %v5101_v6, %v1395_v8  ;;  %v1397_v18 = vrot.slane %v1395_v8, 4 }
  0x3a   : > { %v5181_v27 = vcombine.low %v1126_v57, %v1136_v15  ;;  %v408_v20 = vrot.slane %v407_v10, 4  ;;  %v417_v13 = vrot.slane %v415_v14, 4  ;;  %v418_v7 = vshll.u32 %v315_v62, 16  ;;  %v5013_v62 = vld [vmem:[%s5931_s18 + $0x24] sm:$0xf] }
  0x3b   : > { %v403_v32 = vsel %vm6027_vm5, %v398_v1, %v402_v0  ;;  %v1399_v40 = vsel %vm5980_vm2, %v1397_v18, %v1398_v12  ;;  %v424_v22 = vshll.u32 %v316_v56, 16  ;;  %v428_v23 = vshrl.u32 %v316_v56, 16  ;;  %v6158_v18 = vld [vmem:[%s5931_s18 + $0x2c] sm:$0x1] }
  0x3c   : > { %1853 = vrot.lane.b32.xlu0 %v5181_v27, %s5846_s11  ;;  %v413_v24 = vsel %vm6027_vm5, %v408_v20, %v412_v11  ;;  %v5191_v26 = vcombine.low %v1396_v3, %v1399_v40  ;;  %v420_v29 = vrot.slane %v418_v7, 5  ;;  %v434_v30 = vshll.u32 %v332_v16, 16  ;;  %v5042_v7 = vld [vmem:[%s5931_s18 + $0x30] sm:$0xe] }
  0x3d   : > { %v5123_v28 = vcombine.low %v403_v32, %v413_v24  ;;  %v426_v31 = vrot.slane %v424_v22, 5  ;;  %v430_v33 = vrot.slane %v428_v23, 4  ;;  %v5102_v19 = vrot.slane %v5092_v9, 9 }
  0x3e   : > { %v421_v34 = vor.u32 %v420_v29, %v417_v13  ;;  %v436_v36 = vrot.slane %v434_v30, 5  ;;  %v1402_v25 = vrot.slane %v5957_v17, 5  ;;  %v1405_v41 = vrot.slane %v6054_v21, 5  ;;  %v5041_v30 = vld [vmem:[%s5931_s18 + $0x24] sm:$0xe] }
  0x3f   : > { %1537 = vrot.lane.b32.xlu1 %v5123_v28, %s5844_s9  ;;  %v431_v46 = vor.u32 %v430_v33, %v426_v31  ;;  %v5000_v60 = vrot.slane %v585_v59, 9  ;;  %v648_v42 = vrot.slane %v316_v56, 5  ;;  %v651_v43 = vrot.slane %v332_v16, 5  ;;  %v5032_v56 = vld [vmem:[%s5931_s18 + $0x38] sm:$0x1] }
  0x40   : > { %1903 = vrot.lane.b32.xlu0 %v5191_v26, %s5847_s12  ;;  %v422_v48 = vrot.slane %v421_v34, 4  ;;  %v1403_v49 = vsel %vm5980_vm2, %v5102_v19, %v1402_v25  ;;  %v1404_v17 = vrot.slane %v1402_v25, 4  ;;  %v4999_v21 = vrot.slane %v584_v45, 9 }
  0x41   : > { %v432_v35 = vrot.slane %v431_v46, 4  ;;  %v649_v50 = vsel %vm5980_vm2, %v5000_v60, %v648_v42  ;;  %v650_v51 = vrot.slane %v648_v42, 4  ;;  %v641_v52 = vrot.slane %v6083_v38, 5  ;;  %v6167_v42 = vld [vmem:[%s5931_s18 + $0x3c] sm:$0xf] }
  0x42   : > { %v427_v53 = vsel %vm6027_vm5, %v422_v48, %v426_v31  ;;  %v1406_v55 = vsel %vm5980_vm2, %v1404_v17, %v1405_v41  ;;  %v644_v57 = vrot.slane %v6089_v44, 5  ;;  %v802_v61 = vshrl.u32 %v6123_v47, 16 }
  0x43   : > { %v437_v63 = vsel %vm6027_vm5, %v432_v35, %v436_v36  ;;  %v5192_v0 = vcombine.low %v1403_v49, %v1406_v55  ;;  %v652_v38 = vsel %vm5980_vm2, %v650_v51, %v651_v43  ;;  %v642_v2 = vsel %vm5980_vm2, %v4999_v21, %v641_v52 }
  0x44   : > { %v5124_v54 = vcombine.low %v427_v53, %v437_v63  ;;  %v5134_v44 = vcombine.low %v649_v50, %v652_v38  ;;  %v643_v5 = vrot.slane %v641_v52, 4  ;;  %v804_v6 = vrot.slane %v802_v61, 4  ;;  %v6184_v53 = vld [vmem:[%s5931_s18 + $0x40] sm:$0xf]  ;;  %v6194_v38 = vld [vmem:[%s5931_s18 + $0x34] sm:$0xf] }
  0x45   : > { %1905 = vrot.lane.b32.xlu0 %v5192_v0, %s5847_s12  ;;  %v805_v8 = vshll.u32 %v6123_v47, 16  ;;  %v815_v10 = vshrl.u32 %v5016_v58, 16  ;;  %v5144_v11 = vcombine.low %v6123_v47, %v5016_v58  ;;  %v778_v12 = vshrl.u32 %v5013_v62, 16 }
  0x46   : > { %1539 = vrot.lane.b32.xlu1 %v5124_v54, %s5844_s9  ;;  %v645_v14 = vsel %vm5980_vm2, %v643_v5, %v644_v57  ;;  %v781_v15 = vshll.u32 %v5013_v62, 16  ;;  %v791_v1 = vshrl.u32 %v6146_v4, 16  ;;  %v5143_v3 = vcombine.low %v5013_v62, %v6146_v4 }
  0x47   : > { %v5133_v16 = vcombine.low %v642_v2, %v645_v14  ;;  %v807_v27 = vrot.slane %v805_v8, 5  ;;  %v780_v20 = vrot.slane %v778_v12, 4  ;;  %v811_v13 = vshll.u32 %v5016_v58, 16 }
  0x48   : > { %v783_v9 = vrot.slane %v781_v15, 5  ;;  %v817_v32 = vrot.slane %v815_v10, 4  ;;  %v821_v40 = vshll.u32 %v5032_v56, 16  ;;  %v787_v22 = vshll.u32 %v6146_v4, 16 }
  0x49   : > { %1587 = vrot.lane.b32.xlu0 %v5133_v16, %s5843_s8  ;;  %v808_v23 = vor.u32 %v807_v27, %v804_v6  ;;  %v813_v24 = vrot.slane %v811_v13, 5  ;;  %v793_v26 = vrot.slane %v791_v1, 4  ;;  %v797_v29 = vshll.u32 %v6158_v18, 16  ;;  %v6209_v1 = vld [vmem:[%s5931_s18 + $0x38] sm:$0x1] }
  0x4a   : > { %1589 = vrot.lane.b32.xlu1 %v5134_v44, %s5843_s8  ;;  %v823_v59 = vrot.slane %v821_v40, 5  ;;  %v784_v28 = vor.u32 %v783_v9, %v780_v20  ;;  %v789_v31 = vrot.slane %v787_v22, 5  ;;  %v5052_v33 = vrot.slane %v5042_v7, 9  ;;  %v317_v20 = vld [vmem:[%s5931_s18 + $0x30] sm:$0xf] }
  0x4b   : > { %v809_v19 = vrot.slane %v808_v23, 4  ;;  %v818_v45 = vor.u32 %v817_v32, %v813_v24  ;;  %v799_v34 = vrot.slane %v797_v29, 5  ;;  %v1032_v36 = vrot.slane %v5016_v58, 5  ;;  %v5065_v58 = vld [vmem:[%s5931_s18 + $0x30] sm:$0xf] }
  0x4c   : > { %v785_v25 = vrot.slane %v784_v28, 4  ;;  %v794_v41 = vor.u32 %v793_v26, %v789_v31  ;;  %v1035_v46 = vrot.slane %v5032_v56, 5  ;;  %v5051_v60 = vrot.slane %v5041_v30, 9  ;;  %v6218_v26 = vld [vmem:[%s5931_s18 + $0x34] sm:$0xf] }
  0x4d   : > { %1647 = vrot.lane.b32.xlu0 %v5143_v3, %s5840_s22  ;;  %v814_v43 = vsel %vm6027_vm5, %v809_v19, %v813_v24  ;;  %v819_v47 = vrot.slane %v818_v45, 4  ;;  %v1033_v48 = vsel %vm5980_vm2, %v5052_v33, %v1032_v36  ;;  %v1034_v49 = vrot.slane %v1032_v36, 4  ;;  %v5093_v36 = vld [vmem:[%s5931_s18 + $0x30] sm:$0xe] }
  0x4e   : > { %1649 = vrot.lane.b32.xlu1 %v5144_v11, %s5840_s22  ;;  %v790_v17 = vsel %vm6027_vm5, %v785_v25, %v789_v31  ;;  %v795_v21 = vrot.slane %v794_v41, 4  ;;  %v1025_v35 = vrot.slane %v6146_v4, 5  ;;  %v1028_v50 = vrot.slane %v6158_v18, 5  ;;  %v6201_v11 = vld [vmem:[%s5931_s18 + $0x44] sm:$0x1] }
  0x4f   : > { %v824_v51 = vsel %vm6027_vm5, %v819_v47, %v823_v59  ;;  %v1036_v52 = vsel %vm5980_vm2, %v1034_v49, %v1035_v46  ;;  %v1186_v55 = vshrl.u32 %v6167_v42, 16  ;;  %v1189_v57 = vshll.u32 %v6167_v42, 16  ;;  %v6222_v59 = vld [vmem:[%s5931_s18 + $0x38] sm:$0x1] }
  0x50   : > { %v5154_v61 = vcombine.low %v814_v43, %v824_v51  ;;  %v800_v62 = vsel %vm6027_vm5, %v795_v21, %v799_v34  ;;  %v5164_v63 = vcombine.low %v1033_v48, %v1036_v52  ;;  %v1026_v0 = vsel %vm5980_vm2, %v5051_v60, %v1025_v35 }
  0x51   : > { %v5153_v2 = vcombine.low %v790_v17, %v800_v62  ;;  %v1027_v4 = vrot.slane %v1025_v35, 4  ;;  %v1188_v54 = vrot.slane %v1186_v55, 4  ;;  %v1191_v44 = vrot.slane %v1189_v57, 5 }
  0x52   : > { %1699 = vrot.lane.b32.xlu1 %v5154_v61, %s5845_s10  ;;  %v1199_v5 = vshrl.u32 %v6184_v53, 16  ;;  %v5174_v6 = vcombine.low %v6167_v42, %v6184_v53  ;;  %v1162_v8 = vshrl.u32 %v5065_v58, 16  ;;  %v1165_v10 = vshll.u32 %v5065_v58, 16 }
  0x53   : > { %1697 = vrot.lane.b32.xlu0 %v5153_v2, %s5845_s10  ;;  %v1029_v12 = vsel %vm5980_vm2, %v1027_v4, %v1028_v50  ;;  %v1175_v56 = vshrl.u32 %v6194_v38, 16  ;;  %v5173_v14 = vcombine.low %v5065_v58, %v6194_v38  ;;  %v1192_v15 = vor.u32 %v1191_v44, %v1188_v54  ;;  %v319_v50 = vld [vmem:[%s5931_s18 + $0x3c] sm:$0xf]  ;;  %v320_v58 = vld [vmem:[%s5931_s18 + $0x40] sm:$0xf] }
  0x54   : > { %v5163_v3 = vcombine.low %v1026_v0, %v1029_v12  ;;  %v1164_v18 = vrot.slane %v1162_v8, 4  ;;  %v1167_v16 = vrot.slane %v1165_v10, 5  ;;  %v1195_v27 = vshll.u32 %v6184_v53, 16  ;;  %v334_v2 = vld [vmem:[%s5931_s18 + $0x44] sm:$0x1] }
  0x55   : > { %v1193_v13 = vrot.slane %v1192_v15, 4  ;;  %v1201_v7 = vrot.slane %v1199_v5, 4  ;;  %v1205_v9 = vshll.u32 %v6201_v11, 16  ;;  %v1171_v32 = vshll.u32 %v6194_v38, 16  ;;  %v5094_v12 = vld [vmem:[%s5931_s18 + $0x3c] sm:$0xe] }
  0x56   : > { %1749 = vrot.lane.b32.xlu1 %v5164_v63, %s5842_s25  ;;  %v1197_v40 = vrot.slane %v1195_v27, 5  ;;  %v1168_v22 = vor.u32 %v1167_v16, %v1164_v18  ;;  %v1177_v23 = vrot.slane %v1175_v56, 4  ;;  %v1181_v24 = vshll.u32 %v6209_v1, 16 }
  0x57   : > { %1747 = vrot.lane.b32.xlu0 %v5163_v3, %s5842_s25  ;;  %v1207_v29 = vrot.slane %v1205_v9, 5  ;;  %v1173_v30 = vrot.slane %v1171_v32, 5  ;;  %v439_v28 = vshrl.u32 %v317_v20, 16  ;;  %v442_v31 = vshll.u32 %v317_v20, 16  ;;  %v587_v20 = vld [vmem:[%s5931_s18 + $0x3c] sm:$0xe] }
  0x58   : > { %v1198_v33 = vsel %vm6027_vm5, %v1193_v13, %v1197_v40  ;;  %v1202_v19 = vor.u32 %v1201_v7, %v1197_v40  ;;  %v1169_v45 = vrot.slane %v1168_v22, 4  ;;  %v1183_v34 = vrot.slane %v1181_v24, 5  ;;  %v586_v40 = vld [vmem:[%s5931_s18 + $0x30] sm:$0xe] }
  0x59   : > { %v1178_v25 = vor.u32 %v1177_v23, %v1173_v30  ;;  %v441_v41 = vrot.slane %v439_v28, 4  ;;  %v444_v46 = vrot.slane %v442_v31, 5  ;;  %v448_v60 = vshll.u32 %v6218_v26, 16 }
  0x5a   : > { %1809 = vrot.lane.b32.xlu1 %v5174_v6, %s5841_s23  ;;  %v1203_v42 = vrot.slane %v1202_v19, 4  ;;  %v1174_v43 = vsel %vm6027_vm5, %v1169_v45, %v1173_v30  ;;  %v452_v47 = vshrl.u32 %v6218_v26, 16  ;;  %v458_v48 = vshll.u32 %v6222_v59, 16  ;;  %v6260_v19 = vld [vmem:[%s5931_s18 + $0x48] sm:$0xf] }
  0x5b   : > { %1807 = vrot.lane.b32.xlu0 %v5173_v14, %s5841_s23  ;;  %v1179_v49 = vrot.slane %v1178_v25, 4  ;;  %v445_v17 = vor.u32 %v444_v46, %v441_v41  ;;  %v450_v21 = vrot.slane %v448_v60, 5  ;;  %v5103_v35 = vrot.slane %v5093_v36, 9 }
  0x5c   : > { %v1208_v51 = vsel %vm6027_vm5, %v1203_v42, %v1207_v29  ;;  %v454_v52 = vrot.slane %v452_v47, 4  ;;  %v460_v55 = vrot.slane %v458_v48, 5  ;;  %v1409_v57 = vrot.slane %v6194_v38, 5  ;;  %v5020_v47 = vld [vmem:[%s5931_s18 + $0x4c] sm:$0xf] }
  0x5d   : > { %v5184_v61 = vcombine.low %v1198_v33, %v1208_v51  ;;  %v1184_v62 = vsel %vm6027_vm5, %v1179_v49, %v1183_v34  ;;  %v446_v63 = vrot.slane %v445_v17, 4  ;;  %v1412_v0 = vrot.slane %v6209_v1, 5  ;;  %v5017_v49 = vld [vmem:[%s5931_s18 + $0x3c] sm:$0xf] }
  0x5e   : > { %v5183_v4 = vcombine.low %v1174_v43, %v1184_v62  ;;  %v455_v54 = vor.u32 %v454_v52, %v450_v21  ;;  %v1410_v44 = vsel %vm5980_vm2, %v5103_v35, %v1409_v57  ;;  %v1411_v5 = vrot.slane %v1409_v57, 4 }
  0x5f   : > { %1859 = vrot.lane.b32.xlu1 %v5184_v61, %s5846_s11  ;;  %v451_v38 = vsel %vm6027_vm5, %v446_v63, %v450_v21  ;;  %v463_v6 = vshrl.u32 %v319_v50, 16  ;;  %v466_v8 = vshll.u32 %v319_v50, 16  ;;  %v472_v10 = vshll.u32 %v320_v58, 16  ;;  %v6283_v50 = vld [vmem:[%s5931_s18 + $0x40] sm:$0xf] }
  0x60   : > { %1857 = vrot.lane.b32.xlu0 %v5183_v4, %s5846_s11  ;;  %v456_v56 = vrot.slane %v455_v54, 4  ;;  %v1413_v14 = vsel %vm5980_vm2, %v1411_v5, %v1412_v0  ;;  %v476_v15 = vshrl.u32 %v320_v58, 16  ;;  %v482_v1 = vshll.u32 %v334_v2, 16  ;;  %v5034_v63 = vld [vmem:[%s5931_s18 + $0x50] sm:$0x1] }
  0x61   : > { %v5193_v3 = vcombine.low %v1410_v44, %v1413_v14  ;;  %v465_v18 = vrot.slane %v463_v6, 4  ;;  %v468_v16 = vrot.slane %v466_v8, 5  ;;  %v474_v27 = vrot.slane %v472_v10, 5  ;;  %v6295_v44 = vld [vmem:[%s5931_s18 + $0x44] sm:$0x1] }
  0x62   : > { %v461_v13 = vsel %vm6027_vm5, %v456_v56, %v460_v55  ;;  %v478_v7 = vrot.slane %v476_v15, 4  ;;  %v484_v9 = vrot.slane %v482_v1, 5  ;;  %v5104_v32 = vrot.slane %v5094_v12, 9  ;;  %v5044_v10 = vld [vmem:[%s5931_s18 + $0x48] sm:$0xe] }
  0x63   : > { %v5125_v22 = vcombine.low %v451_v38, %v461_v13  ;;  %v469_v23 = vor.u32 %v468_v16, %v465_v18  ;;  %v1416_v24 = vrot.slane %v6184_v53, 5  ;;  %v1419_v29 = vrot.slane %v6201_v11, 5 }
  0x64   : > { %1907 = vrot.lane.b32.xlu0 %v5193_v3, %s5847_s12  ;;  %v479_v30 = vor.u32 %v478_v7, %v474_v27  ;;  %v5002_v28 = vrot.slane %v587_v20, 9  ;;  %v662_v31 = vrot.slane %v320_v58, 5  ;;  %v665_v33 = vrot.slane %v334_v2, 5 }
  0x65   : > { %1541 = vrot.lane.b32.xlu1 %v5125_v22, %s5844_s9  ;;  %v470_v45 = vrot.slane %v469_v23, 4  ;;  %v1417_v34 = vsel %vm5980_vm2, %v5104_v32, %v1416_v24  ;;  %v1418_v36 = vrot.slane %v1416_v24, 4  ;;  %v5001_v53 = vrot.slane %v586_v40, 9 }
  0x66   : > { %v480_v11 = vrot.slane %v479_v30, 4  ;;  %v663_v25 = vsel %vm5980_vm2, %v5002_v28, %v662_v31  ;;  %v664_v41 = vrot.slane %v662_v31, 4  ;;  %v655_v46 = vrot.slane %v6218_v26, 5  ;;  %v6304_v31 = vld [vmem:[%s5931_s18 + $0x54] sm:$0xf] }
  0x67   : > { %v475_v60 = vsel %vm6027_vm5, %v470_v45, %v474_v27  ;;  %v1420_v42 = vsel %vm5980_vm2, %v1418_v36, %v1419_v29  ;;  %v658_v43 = vrot.slane %v6222_v59, 5  ;;  %v850_v48 = vshrl.u32 %v6260_v19, 16  ;;  %v5043_v27 = vld [vmem:[%s5931_s18 + $0x3c] sm:$0xe] }
  0x68   : > { %v485_v17 = vsel %vm6027_vm5, %v480_v11, %v484_v9  ;;  %v5194_v21 = vcombine.low %v1417_v34, %v1420_v42  ;;  %v666_v26 = vsel %vm5980_vm2, %v664_v41, %v665_v33  ;;  %v656_v35 = vsel %vm5980_vm2, %v5001_v53, %v655_v46 }
  0x69   : > { %v5126_v51 = vcombine.low %v475_v60, %v485_v17  ;;  %v5136_v59 = vcombine.low %v663_v25, %v666_v26  ;;  %v657_v52 = vrot.slane %v655_v46, 4  ;;  %v852_v55 = vrot.slane %v850_v48, 4  ;;  %v6321_v60 = vld [vmem:[%s5931_s18 + $0x58] sm:$0xf]  ;;  %v6331_v26 = vld [vmem:[%s5931_s18 + $0x4c] sm:$0xf] }
  0x6a   : > { %1909 = vrot.lane.b32.xlu0 %v5194_v21, %s5847_s12  ;;  %v853_v57 = vshll.u32 %v6260_v19, 16  ;;  %v863_v58 = vshrl.u32 %v5020_v47, 16  ;;  %v5146_v61 = vcombine.low %v6260_v19, %v5020_v47  ;;  %v826_v62 = vshrl.u32 %v5017_v49, 16 }
  0x6b   : > { %1543 = vrot.lane.b32.xlu1 %v5126_v51, %s5844_s9  ;;  %v659_v0 = vsel %vm5980_vm2, %v657_v52, %v658_v43  ;;  %v829_v2 = vshll.u32 %v5017_v49, 16  ;;  %v839_v4 = vshrl.u32 %v6283_v50, 16  ;;  %v5145_v54 = vcombine.low %v5017_v49, %v6283_v50 }
  0x6c   : > { %v5135_v5 = vcombine.low %v656_v35, %v659_v0  ;;  %v855_v38 = vrot.slane %v853_v57, 5  ;;  %v828_v6 = vrot.slane %v826_v62, 4  ;;  %v859_v8 = vshll.u32 %v5020_v47, 16 }
  0x6d   : > { %v831_v12 = vrot.slane %v829_v2, 5  ;;  %v865_v56 = vrot.slane %v863_v58, 4  ;;  %v869_v14 = vshll.u32 %v5034_v63, 16  ;;  %v835_v15 = vshll.u32 %v6283_v50, 16 }
  0x6e   : > { %1591 = vrot.lane.b32.xlu0 %v5135_v5, %s5843_s8  ;;  %v856_v1 = vor.u32 %v855_v38, %v852_v55  ;;  %v861_v3 = vrot.slane %v859_v8, 5  ;;  %v841_v18 = vrot.slane %v839_v4, 4  ;;  %v845_v16 = vshll.u32 %v6295_v44, 16  ;;  %v6346_v4 = vld [vmem:[%s5931_s18 + $0x50] sm:$0x1] }
  0x6f   : > { %1593 = vrot.lane.b32.xlu1 %v5136_v59, %s5843_s8  ;;  %v871_v20 = vrot.slane %v869_v14, 5  ;;  %v832_v13 = vor.u32 %v831_v12, %v828_v6  ;;  %v837_v7 = vrot.slane %v835_v15, 5  ;;  %v5054_v9 = vrot.slane %v5044_v10, 9  ;;  %v321_v6 = vld [vmem:[%s5931_s18 + $0x48] sm:$0xf] }
  0x70   : > { %v857_v32 = vrot.slane %v856_v1, 4  ;;  %v866_v40 = vor.u32 %v865_v56, %v861_v3  ;;  %v847_v22 = vrot.slane %v845_v16, 5  ;;  %v1046_v23 = vrot.slane %v5020_v47, 5  ;;  %v5069_v47 = vld [vmem:[%s5931_s18 + $0x48] sm:$0xf] }
  0x71   : > { %v833_v24 = vrot.slane %v832_v13, 4  ;;  %v842_v29 = vor.u32 %v841_v18, %v837_v7  ;;  %v1049_v30 = vrot.slane %v5034_v63, 5  ;;  %v5053_v28 = vrot.slane %v5043_v27, 9  ;;  %v6355_v18 = vld [vmem:[%s5931_s18 + $0x4c] sm:$0xf] }
  0x72   : > { %1651 = vrot.lane.b32.xlu0 %v5145_v54, %s5840_s22  ;;  %v862_v33 = vsel %vm6027_vm5, %v857_v32, %v861_v3  ;;  %v867_v19 = vrot.slane %v866_v40, 4  ;;  %v1047_v45 = vsel %vm5980_vm2, %v5054_v9, %v1046_v23  ;;  %v1048_v34 = vrot.slane %v1046_v23, 4  ;;  %v5095_v23 = vld [vmem:[%s5931_s18 + $0x48] sm:$0xe] }
  0x73   : > { %1653 = vrot.lane.b32.xlu1 %v5146_v61, %s5840_s22  ;;  %v838_v36 = vsel %vm6027_vm5, %v833_v24, %v837_v7  ;;  %v843_v53 = vrot.slane %v842_v29, 4  ;;  %v1039_v11 = vrot.slane %v6283_v50, 5  ;;  %v1042_v25 = vrot.slane %v6295_v44, 5  ;;  %v6338_v61 = vld [vmem:[%s5931_s18 + $0x5c] sm:$0x1] }
  0x74   : > { %v872_v41 = vsel %vm6027_vm5, %v867_v19, %v871_v20  ;;  %v1050_v46 = vsel %vm5980_vm2, %v1048_v34, %v1049_v30  ;;  %v1234_v42 = vshrl.u32 %v6304_v31, 16  ;;  %v1237_v43 = vshll.u32 %v6304_v31, 16  ;;  %v6359_v20 = vld [vmem:[%s5931_s18 + $0x50] sm:$0x1] }
  0x75   : > { %v5156_v48 = vcombine.low %v862_v33, %v872_v41  ;;  %v848_v49 = vsel %vm6027_vm5, %v843_v53, %v847_v22  ;;  %v5166_v17 = vcombine.low %v1047_v45, %v1050_v46  ;;  %v1040_v21 = vsel %vm5980_vm2, %v5053_v28, %v1039_v11 }
  0x76   : > { %v5155_v35 = vcombine.low %v838_v36, %v848_v49  ;;  %v1041_v50 = vrot.slane %v1039_v11, 4  ;;  %v1236_v51 = vrot.slane %v1234_v42, 4  ;;  %v1239_v59 = vrot.slane %v1237_v43, 5 }
  0x77   : > { %1703 = vrot.lane.b32.xlu1 %v5156_v48, %s5845_s10  ;;  %v1247_v52 = vshrl.u32 %v6321_v60, 16  ;;  %v5176_v55 = vcombine.low %v6304_v31, %v6321_v60  ;;  %v1210_v57 = vshrl.u32 %v5069_v47, 16  ;;  %v1213_v58 = vshll.u32 %v5069_v47, 16 }
  0x78   : > { %1701 = vrot.lane.b32.xlu0 %v5155_v35, %s5845_s10  ;;  %v1043_v62 = vsel %vm5980_vm2, %v1041_v50, %v1042_v25  ;;  %v1223_v63 = vshrl.u32 %v6331_v26, 16  ;;  %v5175_v0 = vcombine.low %v5069_v47, %v6331_v26  ;;  %v1240_v2 = vor.u32 %v1239_v59, %v1236_v51  ;;  %v323_v25 = vld [vmem:[%s5931_s18 + $0x54] sm:$0xf]  ;;  %v324_v47 = vld [vmem:[%s5931_s18 + $0x58] sm:$0xf] }
  0x79   : > { %v5165_v54 = vcombine.low %v1040_v21, %v1043_v62  ;;  %v1212_v44 = vrot.slane %v1210_v57, 4  ;;  %v1215_v5 = vrot.slane %v1213_v58, 5  ;;  %v1243_v38 = vshll.u32 %v6321_v60, 16  ;;  %v336_v35 = vld [vmem:[%s5931_s18 + $0x5c] sm:$0x1] }
  0x7a   : > { %v1241_v8 = vrot.slane %v1240_v2, 4  ;;  %v1249_v10 = vrot.slane %v1247_v52, 4  ;;  %v1253_v12 = vshll.u32 %v6338_v61, 16  ;;  %v1219_v56 = vshll.u32 %v6331_v26, 16  ;;  %v5096_v62 = vld [vmem:[%s5931_s18 + $0x54] sm:$0xe] }
  0x7b   : > { %1753 = vrot.lane.b32.xlu1 %v5166_v17, %s5842_s25  ;;  %v1245_v14 = vrot.slane %v1243_v38, 5  ;;  %v1216_v15 = vor.u32 %v1215_v5, %v1212_v44  ;;  %v1225_v1 = vrot.slane %v1223_v63, 4  ;;  %v1229_v3 = vshll.u32 %v6346_v4, 16 }
  0x7c   : > { %1751 = vrot.lane.b32.xlu0 %v5165_v54, %s5842_s25  ;;  %v1255_v16 = vrot.slane %v1253_v12, 5  ;;  %v1221_v27 = vrot.slane %v1219_v56, 5  ;;  %v487_v13 = vshrl.u32 %v321_v6, 16  ;;  %v490_v7 = vshll.u32 %v321_v6, 16  ;;  %v589_v6 = vld [vmem:[%s5931_s18 + $0x54] sm:$0xe] }
  0x7d   : > { %v1246_v9 = vsel %vm6027_vm5, %v1241_v8, %v1245_v14  ;;  %v1250_v32 = vor.u32 %v1249_v10, %v1245_v14  ;;  %v1217_v40 = vrot.slane %v1216_v15, 4  ;;  %v1231_v22 = vrot.slane %v1229_v3, 5  ;;  %v588_v14 = vld [vmem:[%s5931_s18 + $0x48] sm:$0xe] }
  0x7e   : > { %v1226_v24 = vor.u32 %v1225_v1, %v1221_v27  ;;  %v489_v29 = vrot.slane %v487_v13, 4  ;;  %v492_v30 = vrot.slane %v490_v7, 5  ;;  %v496_v28 = vshll.u32 %v6355_v18, 16 }
  0x7f   : > { %1813 = vrot.lane.b32.xlu1 %v5176_v55, %s5841_s23  ;;  %v1251_v31 = vrot.slane %v1250_v32, 4  ;;  %v1222_v33 = vsel %vm6027_vm5, %v1217_v40, %v1221_v27  ;;  %v500_v19 = vshrl.u32 %v6355_v18, 16  ;;  %v506_v45 = vshll.u32 %v6359_v20, 16  ;;  %v6397_v32 = vld [vmem:[%s5931_s18 + $0x60] sm:$0xf] }
  0x80   : > { %1811 = vrot.lane.b32.xlu0 %v5175_v0, %s5841_s23  ;;  %v1227_v34 = vrot.slane %v1226_v24, 4  ;;  %v493_v36 = vor.u32 %v492_v30, %v489_v29  ;;  %v498_v53 = vrot.slane %v496_v28, 5  ;;  %v5105_v11 = vrot.slane %v5095_v23, 9 }
  0x81   : > { %v1256_v41 = vsel %vm6027_vm5, %v1251_v31, %v1255_v16  ;;  %v502_v46 = vrot.slane %v500_v19, 4  ;;  %v508_v42 = vrot.slane %v506_v45, 5  ;;  %v1423_v43 = vrot.slane %v6331_v26, 5  ;;  %v5024_v45 = vld [vmem:[%s5931_s18 + $0x64] sm:$0xf] }
  0x82   : > { %v5186_v48 = vcombine.low %v1246_v9, %v1256_v41  ;;  %v1232_v49 = vsel %vm6027_vm5, %v1227_v34, %v1231_v22  ;;  %v494_v17 = vrot.slane %v493_v36, 4  ;;  %v1426_v21 = vrot.slane %v6346_v4, 5  ;;  %v5021_v36 = vld [vmem:[%s5931_s18 + $0x54] sm:$0xf]  ;;  %v6422_v41 = vld [vmem:[%s5931_s18 + $0x58] sm:$0xf] }
  0x83   : > { %v5185_v50 = vcombine.low %v1222_v33, %v1232_v49  ;;  %v503_v51 = vor.u32 %v502_v46, %v498_v53  ;;  %v1424_v59 = vsel %vm5980_vm2, %v5105_v11, %v1423_v43  ;;  %v1425_v52 = vrot.slane %v1423_v43, 4 }
  0x84   : > { %1863 = vrot.lane.b32.xlu1 %v5186_v48, %s5846_s11  ;;  %v499_v26 = vsel %vm6027_vm5, %v494_v17, %v498_v53  ;;  %v511_v55 = vshrl.u32 %v323_v25, 16  ;;  %v514_v57 = vshll.u32 %v323_v25, 16  ;;  %v520_v58 = vshll.u32 %v324_v47, 16 }
  0x85   : > { %1861 = vrot.lane.b32.xlu0 %v5185_v50, %s5846_s11  ;;  %v504_v63 = vrot.slane %v503_v51, 4  ;;  %v1427_v0 = vsel %vm5980_vm2, %v1425_v52, %v1426_v21  ;;  %v524_v2 = vshrl.u32 %v324_v47, 16  ;;  %v530_v4 = vshll.u32 %v336_v35, 16 }
  0x86   : > { %v5195_v54 = vcombine.low %v1424_v59, %v1427_v0  ;;  %v513_v44 = vrot.slane %v511_v55, 4  ;;  %v516_v5 = vrot.slane %v514_v57, 5  ;;  %v522_v38 = vrot.slane %v520_v58, 5  ;;  %v6438_v55 = vld [vmem:[%s5931_s18 + $0x5c] sm:$0x1] }
  0x87   : > { %v509_v8 = vsel %vm6027_vm5, %v504_v63, %v508_v42  ;;  %v526_v10 = vrot.slane %v524_v2, 4  ;;  %v532_v12 = vrot.slane %v530_v4, 5  ;;  %v5106_v56 = vrot.slane %v5096_v62, 9  ;;  %v5046_v0 = vld [vmem:[%s5931_s18 + $0x60] sm:$0xe] }
  0x88   : > { %v5127_v15 = vcombine.low %v499_v26, %v509_v8  ;;  %v517_v1 = vor.u32 %v516_v5, %v513_v44  ;;  %v1430_v3 = vrot.slane %v6321_v60, 5  ;;  %v1433_v16 = vrot.slane %v6338_v61, 5  ;;  %v6399_v40 = vpop.permute.xlu1 %1645 }
  0x89   : > { %1911 = vrot.lane.b32.xlu0 %v5195_v54, %s5847_s12  ;;  %v527_v27 = vor.u32 %v526_v10, %v522_v38  ;;  %v5004_v13 = vrot.slane %v589_v6, 9  ;;  %v676_v7 = vrot.slane %v324_v47, 5  ;;  %v679_v9 = vrot.slane %v336_v35, 5  ;;  %v6424_v46 = vpop.permute.xlu0 %1643  ;;  %v5036_v35 = vld [vmem:[%s5931_s18 + $0x68] sm:$0x1] }
  0x8a   : > { %1545 = vrot.lane.b32.xlu1 %v5127_v15, %s5844_s9  ;;  %v518_v22 = vrot.slane %v517_v1, 4  ;;  %v1431_v60 = vsel %vm5980_vm2, %v5106_v56, %v1430_v3  ;;  %v1432_v23 = vrot.slane %v1430_v3, 4  ;;  %v5003_v61 = vrot.slane %v588_v14, 9  ;;  %v5045_v10 = vld [vmem:[%s5931_s18 + $0x54] sm:$0xe] }
  0x8b   : > { %v528_v24 = vrot.slane %v527_v27, 4  ;;  %v677_v29 = vsel %vm5980_vm2, %v5004_v13, %v676_v7  ;;  %v678_v30 = vrot.slane %v676_v7, 4  ;;  %v669_v28 = vrot.slane %v6355_v18, 5 }
  0x8c   : > { %v523_v31 = vsel %vm6027_vm5, %v518_v22, %v522_v38  ;;  %v1434_v33 = vsel %vm5980_vm2, %v1432_v23, %v1433_v16  ;;  %v672_v19 = vrot.slane %v6359_v20, 5  ;;  %v898_v34 = vshrl.u32 %v6397_v32, 16  ;;  %v6430_v50 = vpop.permute.xlu1 %1805  ;;  %v6451_v23 = vld [vmem:[%s5931_s18 + $0x6c] sm:$0xf] }
  0x8d   : > { %v533_v53 = vsel %vm6027_vm5, %v528_v24, %v532_v12  ;;  %v5196_v11 = vcombine.low %v1431_v60, %v1434_v33  ;;  %v680_v18 = vsel %vm5980_vm2, %v678_v30, %v679_v9  ;;  %v670_v25 = vsel %vm5980_vm2, %v5003_v61, %v669_v28 }
  0x8e   : > { %v5128_v20 = vcombine.low %v523_v31, %v533_v53  ;;  %v5138_v42 = vcombine.low %v677_v29, %v680_v18  ;;  %v671_v43 = vrot.slane %v669_v28, 4  ;;  %v900_v47 = vrot.slane %v898_v34, 4  ;;  %v6445_v12 = vpop.permute.xlu0 %1803  ;;  %v5073_v18 = vld [vmem:[%s5931_s18 + $0x60] sm:$0xf] }
  0x8f   : > { %1913 = vrot.lane.b32.xlu0 %v5196_v11, %s5847_s12  ;;  %v901_v48 = vshll.u32 %v6397_v32, 16  ;;  %v911_v49 = vshrl.u32 %v5024_v45, 16  ;;  %v5148_v17 = vcombine.low %v6397_v32, %v5024_v45  ;;  %v874_v21 = vshrl.u32 %v5021_v36, 16 }
  0x90   : > { %1547 = vrot.lane.b32.xlu1 %v5128_v20, %s5844_s9  ;;  %v673_v51 = vsel %vm5980_vm2, %v671_v43, %v672_v19  ;;  %v877_v59 = vshll.u32 %v5021_v36, 16  ;;  %v887_v52 = vshrl.u32 %v6422_v41, 16  ;;  %v5147_v26 = vcombine.low %v5021_v36, %v6422_v41  ;;  %v6468_v36 = vld [vmem:[%s5931_s18 + $0x70] sm:$0xf] }
  0x91   : > { %v5137_v57 = vcombine.low %v670_v25, %v673_v51  ;;  %v903_v58 = vrot.slane %v901_v48, 5  ;;  %v876_v62 = vrot.slane %v874_v21, 4  ;;  %v907_v63 = vshll.u32 %v5024_v45, 16 }
  0x92   : > { %v879_v2 = vrot.slane %v877_v59, 5  ;;  %v913_v4 = vrot.slane %v911_v49, 4  ;;  %v917_v54 = vshll.u32 %v5036_v35, 16  ;;  %v883_v44 = vshll.u32 %v6422_v41, 16 }
  0x93   : > { %1595 = vrot.lane.b32.xlu0 %v5137_v57, %s5843_s8  ;;  %v904_v5 = vor.u32 %v903_v58, %v900_v47  ;;  %v909_v38 = vrot.slane %v907_v63, 5  ;;  %v889_v6 = vrot.slane %v887_v52, 4  ;;  %v893_v8 = vshll.u32 %v6438_v55, 16  ;;  %v6480_v47 = vld [vmem:[%s5931_s18 + $0x64] sm:$0xf] }
  0x94   : > { %1597 = vrot.lane.b32.xlu1 %v5138_v42, %s5843_s8  ;;  %v919_v56 = vrot.slane %v917_v54, 5  ;;  %v880_v14 = vor.u32 %v879_v2, %v876_v62  ;;  %v885_v15 = vrot.slane %v883_v44, 5  ;;  %v5056_v1 = vrot.slane %v5046_v0, 9  ;;  %v6473_v25 = vpop.permute.xlu0 %1743  ;;  %v6497_v0 = vld [vmem:[%s5931_s18 + $0x68] sm:$0x1] }
  0x95   : > { %v905_v3 = vrot.slane %v904_v5, 4  ;;  %v914_v16 = vor.u32 %v913_v4, %v909_v38  ;;  %v895_v27 = vrot.slane %v893_v8, 5  ;;  %v1060_v13 = vrot.slane %v5024_v45, 5  ;;  %v6448_v7 = vpop.permute.xlu1 %1583  ;;  %v6501_v5 = vld [vmem:[%s5931_s18 + $0x60] sm:$0xf] }
  0x96   : > { %v881_v9 = vrot.slane %v880_v14, 4  ;;  %v890_v32 = vor.u32 %v889_v6, %v885_v15  ;;  %v1063_v22 = vrot.slane %v5036_v35, 5  ;;  %v5055_v60 = vrot.slane %v5045_v10, 9 }
  0x97   : > { %1655 = vrot.lane.b32.xlu0 %v5147_v26, %s5840_s22  ;;  %v910_v61 = vsel %vm6027_vm5, %v905_v3, %v909_v38  ;;  %v915_v24 = vrot.slane %v914_v16, 4  ;;  %v1061_v29 = vsel %vm5980_vm2, %v5056_v1, %v1060_v13  ;;  %v1062_v30 = vrot.slane %v1060_v13, 4  ;;  %v6510_v16 = vld [vmem:[%s5931_s18 + $0x64] sm:$0xf] }
  0x98   : > { %1657 = vrot.lane.b32.xlu1 %v5148_v17, %s5840_s22  ;;  %v886_v28 = vsel %vm6027_vm5, %v881_v9, %v885_v15  ;;  %v891_v31 = vrot.slane %v890_v32, 4  ;;  %v1053_v33 = vrot.slane %v6422_v41, 5  ;;  %v1056_v19 = vrot.slane %v6438_v55, 5  ;;  %v6489_v55 = vld [vmem:[%s5931_s18 + $0x74] sm:$0x1] }
  0x99   : > { %v920_v45 = vsel %vm6027_vm5, %v915_v24, %v919_v56  ;;  %v1064_v34 = vsel %vm5980_vm2, %v1062_v30, %v1063_v22  ;;  %v1282_v53 = vshrl.u32 %v6451_v23, 16  ;;  %v1285_v11 = vshll.u32 %v6451_v23, 16  ;;  %v6482_v48 = vpop.permute.xlu1 %1585  ;;  %v6516_v32 = vld [vmem:[%s5931_s18 + $0x68] sm:$0x1]  ;;  %v5097_v30 = vld [vmem:[%s5931_s18 + $0x60] sm:$0xe] }
  0x9a   : > { %v5158_v20 = vcombine.low %v910_v61, %v920_v45  ;;  %v896_v41 = vsel %vm6027_vm5, %v891_v31, %v895_v27  ;;  %v5168_v42 = vcombine.low %v1061_v29, %v1064_v34  ;;  %v1054_v43 = vsel %vm5980_vm2, %v5055_v60, %v1053_v33 }
  0x9b   : > { %v5157_v49 = vcombine.low %v886_v28, %v896_v41  ;;  %v1055_v17 = vrot.slane %v1053_v33, 4  ;;  %v1284_v21 = vrot.slane %v1282_v53, 4  ;;  %v1287_v35 = vrot.slane %v1285_v11, 5 }
  0x9c   : > { %1707 = vrot.lane.b32.xlu1 %v5158_v20, %s5845_s10  ;;  %v1295_v51 = vshrl.u32 %v6468_v36, 16  ;;  %v5178_v59 = vcombine.low %v6451_v23, %v6468_v36  ;;  %v1258_v52 = vshrl.u32 %v5073_v18, 16  ;;  %v1261_v26 = vshll.u32 %v5073_v18, 16 }
  0x9d   : > { %1705 = vrot.lane.b32.xlu0 %v5157_v49, %s5845_s10  ;;  %v1057_v57 = vsel %vm5980_vm2, %v1055_v17, %v1056_v19  ;;  %v1271_v58 = vshrl.u32 %v6480_v47, 16  ;;  %v5177_v62 = vcombine.low %v5073_v18, %v6480_v47  ;;  %v1288_v63 = vor.u32 %v1287_v35, %v1284_v21  ;;  %v6512_v27 = vpop.permute.xlu1 %1745 }
  0x9e   : > { %v5167_v2 = vcombine.low %v1054_v43, %v1057_v57  ;;  %v1260_v4 = vrot.slane %v1258_v52, 4  ;;  %v1263_v54 = vrot.slane %v1261_v26, 5  ;;  %v1291_v44 = vshll.u32 %v6468_v36, 16 }
  0x9f   : > { %v1289_v38 = vrot.slane %v1288_v63, 4  ;;  %v1297_v6 = vrot.slane %v1295_v51, 4  ;;  %v1301_v8 = vshll.u32 %v6489_v55, 16  ;;  %v1267_v10 = vshll.u32 %v6480_v47, 16  ;;  %v6505_v56 = vpop.permute.xlu0 %1533 }
  0xa0   : > { %1757 = vrot.lane.b32.xlu1 %v5168_v42, %s5842_s25  ;;  %v1293_v14 = vrot.slane %v1291_v44, 5  ;;  %v1264_v15 = vor.u32 %v1263_v54, %v1260_v4  ;;  %v1273_v1 = vrot.slane %v1271_v58, 4  ;;  %v1277_v3 = vshll.u32 %v6497_v0, 16  ;;  %v5584_v58 = vld [vmem:[%s7906_s1 + $0x20] ss:$0 sps:$4 sm:$0xff]  }
  0xa1   : > { %1755 = vrot.lane.b32.xlu0 %v5167_v2, %s5842_s25  ;;  %v1303_v13 = vrot.slane %v1301_v8, 5  ;;  %v1269_v9 = vrot.slane %v1267_v10, 5  ;;  %v535_v22 = vshrl.u32 %v6501_v5, 16  ;;  %v538_v60 = vshll.u32 %v6501_v5, 16  ;;  %v6549_v54 = vld [vmem:[%s5931_s18 + $0x70] sm:$0xf]  ;;  %5510 = vmatprep.subr.msk.bf16.mxu0 %vm2158_vm8, %v5584_v58 }
  0xa2   : > { %v1294_v23 = vsel %vm6027_vm5, %v1289_v38, %v1293_v14  ;;  %v1298_v61 = vor.u32 %v1297_v6, %v1293_v14  ;;  %v1265_v24 = vrot.slane %v1264_v15, 4  ;;  %v1279_v29 = vrot.slane %v1277_v3, 5  ;;  %v5682_v38 = vld [vmem:[%s5931_s18 + $0x4] sm:$0xf]  ;;  %v5683_v6 = vld [vmem:[%s5931_s18] sm:$0xf] }
  0xa3   : > { %v1274_v28 = vor.u32 %v1273_v1, %v1269_v9  ;;  %v537_v31 = vrot.slane %v535_v22, 4  ;;  %v540_v33 = vrot.slane %v538_v60, 5  ;;  %v544_v19 = vshll.u32 %v6510_v16, 16  ;;  %v6524_v45 = vpop.permute.xlu0 %1535  ;;  %v6562_v15 = vld [vmem:[%s5931_s18 + $0x74] sm:$0x1] }
  0xa4   : > { %1817 = vrot.lane.b32.xlu1 %v5178_v59, %s5841_s23  ;;  %v1299_v34 = vrot.slane %v1298_v61, 4  ;;  %v1270_v53 = vsel %vm6027_vm5, %v1265_v24, %v1269_v9  ;;  %v548_v11 = vshrl.u32 %v6510_v16, 16  ;;  %v554_v18 = vshll.u32 %v6516_v32, 16  ;;  %v6535_v51 = vpop.permute.xlu1 %1695  ;;  %v5098_v60 = vld [vmem:[%s5931_s18 + $0x6c] sm:$0xe] }
  0xa5   : > { %1815 = vrot.lane.b32.xlu0 %v5177_v62, %s5841_s23  ;;  %v1275_v20 = vrot.slane %v1274_v28, 4  ;;  %v541_v41 = vor.u32 %v540_v33, %v537_v31  ;;  %v546_v42 = vrot.slane %v544_v19, 5  ;;  %v5107_v43 = vrot.slane %v5097_v30, 9  ;;  %v6544_v62 = vld [vmem:[%s5931_s18 + $0x6c] sm:$0xf]  ;;  %v5586_v19 = vld [vmem:[%s7906_s1 + $0x18] sm:$0xff]  }
  0xa6   : > { %v1304_v49 = vsel %vm6027_vm5, %v1299_v34, %v1303_v13  ;;  %v550_v17 = vrot.slane %v548_v11, 4  ;;  %v556_v21 = vrot.slane %v554_v18, 5  ;;  %v1437_v35 = vrot.slane %v6480_v47, 5  ;;  %v591_v34 = vld [vmem:[%s5931_s18 + $0x6c] sm:$0xe] }
  0xa7   : > { %v5188_v59 = vcombine.low %v1294_v23, %v1304_v49  ;;  %v1280_v52 = vsel %vm6027_vm5, %v1275_v20, %v1279_v29  ;;  %v542_v26 = vrot.slane %v541_v41, 4  ;;  %v1440_v57 = vrot.slane %v6497_v0, 5  ;;  %v6551_v44 = vpop.permute.xlu0 %1693  ;;  %v5684_v49 = vld [vmem:[%s5931_s18 + $0x10] sm:$0xf] }
  0xa8   : > { %v5187_v63 = vcombine.low %v1270_v53, %v1280_v52  ;;  %v551_v2 = vor.u32 %v550_v17, %v546_v42  ;;  %v1438_v47 = vsel %vm5980_vm2, %v5107_v43, %v1437_v35  ;;  %v1439_v4 = vrot.slane %v1437_v35, 4  ;;  %v5685_v17 = vld [vmem:[%s5931_s18 + $0xc] sm:$0xf]  ;;  %v590_v35 = vld [vmem:[%s5931_s18 + $0x60] sm:$0xe] }
  0xa9   : > { %1867 = vrot.lane.b32.xlu1 %v5188_v59, %s5846_s11  ;;  %v547_v0 = vsel %vm6027_vm5, %v542_v26, %v546_v42  ;;  %v5111_v8 = vcombine.low %v5683_v6, %v5682_v38  ;;  %v559_v1 = vshrl.u32 %v6544_v62, 16  ;;  %v562_v9 = vshll.u32 %v6544_v62, 16 }
  0xaa   : > { %1865 = vrot.lane.b32.xlu0 %v5187_v63, %s5846_s11  ;;  %v552_v10 = vrot.slane %v551_v2, 4  ;;  %v1441_v14 = vsel %vm5980_vm2, %v1439_v4, %v1440_v57  ;;  %v568_v22 = vshll.u32 %v6549_v54, 16  ;;  %v572_v29 = vshrl.u32 %v6549_v54, 16  ;;  %v6578_v30 = vpop.permute.xlu1 %1855  ;;  %v5587_v2 = vld [vmem:[%s7906_s1 + $0x10] sm:$0xff]  }
  0xab   : > { %v5197_v3 = vcombine.low %v1438_v47, %v1441_v14  ;;  %v1926_v13 = vsel %vm1923_vm6, %v5111_v8, %v6505_v56  ;;  %v561_v24 = vrot.slane %v559_v1, 4  ;;  %v564_v28 = vrot.slane %v562_v9, 5 }
  0xac   : > { %v557_v23 = vsel %vm6027_vm5, %v552_v10, %v556_v21  ;;  %v6575_v61 = vsel %vm1954_vm7, %v1926_v13, %v6448_v7  ;;  %v570_v31 = vrot.slane %v568_v22, 5  ;;  %v578_v33 = vshll.u32 %v6562_v15, 16  ;;  %v5027_v13 = vld [vmem:[%s5931_s18 + $0x78] sm:$0xf] }
  0xad   : > { %v5129_v56 = vcombine.low %v547_v0, %v557_v23  ;;  %v574_v7 = vrot.slane %v572_v29, 4  ;;  %v5108_v53 = vrot.slane %v5098_v60, 9  ;;  %v1444_v11 = vrot.slane %v6468_v36, 5  ;;  %v5590_v60 = vld [vmem:[%s7906_s1 + $0x8] sm:$0xff]   ;;  %v6632_v29 = vld [vmem:[%s5931_s18 + $0x7c] sm:$0xf] }
  0xae   : > { %1915 = vrot.lane.b32.xlu0 %v5197_v3, %s5847_s12  ;;  %v1447_v18 = vrot.slane %v6489_v55, 5  ;;  %v6588_v20 = vpop.permute.xlu0 %1853  ;;  %v565_v41 = vor.u32 %v564_v28, %v561_v24  ;;  %v580_v42 = vrot.slane %v578_v33, 5  ;;  %v2160_v43 = vsel %vm2158_vm8, %v5584_v58, 0  ;;  %vm6860_vm8 = vmand %vm2469_vm0, %vm2502_vm4 }
  0xaf   : > { %1549 = vrot.lane.b32.xlu1 %v5129_v56, %s5844_s9  ;;  %v5112_v21 = vcombine.low %v5685_v17, %v5684_v49  ;;  %v575_v59 = vor.u32 %v574_v7, %v570_v31  ;;  %v1445_v52 = vsel %vm5980_vm2, %v5108_v53, %v1444_v11  ;;  %v1446_v26 = vrot.slane %v1444_v11, 4  ;;  %5459 = vmatpush3.bf16.msra.mxu0 %v2160_v43  ;;  %v6648_v11 = vld [vmem:[%s5931_s18 + $0x70] sm:$0xf]  ;;  %v5592_v43 = vld [vmem:[%s7906_s1] sm:$0xff]  }
  0xb0   : > { %v5006_v36 = vrot.slane %v591_v34, 9  ;;  %v566_v55 = vrot.slane %v565_v41, 4  ;;  %5460 = vmatprep.subr.bf16.mxu0 %v5586_v19  ;;  %v690_v63 = vrot.slane %v6549_v54, 5  ;;  %v693_v58 = vrot.slane %v6562_v15, 5 }
  0xb1   : > { %v1929_v57 = vsel %vm1923_vm6, %v5112_v21, %v6524_v45  ;;  %v576_v47 = vrot.slane %v575_v59, 4  ;;  %v1448_v4 = vsel %vm5980_vm2, %v1446_v26, %v1447_v18  ;;  %v5005_v38 = vrot.slane %v590_v35, 9  ;;  %v6608_v6 = vpop.permute.xlu1 %1537  ;;  %v5038_v59 = vld [vmem:[%s5931_s18 + $0x80] sm:$0x1] }
  0xb2   : > { %v1958_v0 = vsel %vm1954_vm7, %v1929_v57, %v6482_v48  ;;  %v6610_v45 = vpop.permute.xlu0 %1903  ;;  %v571_v8 = vsel %vm6027_vm5, %v566_v55, %v570_v31  ;;  %v5198_v10 = vcombine.low %v1445_v52, %v1448_v4  ;;  %v691_v14 = vsel %vm5980_vm2, %v5006_v36, %v690_v63  ;;  %v5037_v57 = vld [vmem:[%s5931_s18 + $0x74] sm:$0x1]  ;;  %v5048_v4 = vld [vmem:[%s5931_s18 + $0x78] sm:$0xe] }
  0xb3   : > { %v692_v15 = vrot.slane %v690_v63, 4  ;;  %v581_v1 = vsel %vm6027_vm5, %v576_v47, %v580_v42  ;;  %v683_v3 = vrot.slane %v6510_v16, 5  ;;  %v686_v48 = vrot.slane %v6516_v32, 5  ;;  %5461 = vmatpush3.bf16.msra.mxu0 %v5586_v19  ;;  %v5025_v19 = vld [vmem:[%s5931_s18 + $0x6c] sm:$0xf] }
  0xb4   : > { %v5130_v9 = vcombine.low %v571_v8, %v581_v1  ;;  %1917 = vrot.lane.b32.xlu0 %v5198_v10, %s5847_s12  ;;  %5462 = vmatprep.subr.bf16.mxu0 %v5587_v2  ;;  %v1979_v24 = vsel %vm1975_vm9, %v1958_v0, %v6399_v40  ;;  %v1977_v28 = vsel %vm1975_vm9, %v6575_v61, %v6424_v46  ;;  %v946_v31 = vshrl.u32 %v5027_v13, 16 }
  0xb5   : > { %v694_v22 = vsel %vm5980_vm2, %v692_v15, %v693_v58  ;;  %v684_v32 = vsel %vm5980_vm2, %v5005_v38, %v683_v3  ;;  %v685_v23 = vrot.slane %v683_v3, 4  ;;  %v949_v33 = vshll.u32 %v5027_v13, 16 }
  0xb6   : > { %1551 = vrot.lane.b32.xlu1 %v5130_v9, %s5844_s9  ;;  %v5140_v56 = vcombine.low %v691_v14, %v694_v22  ;;  %v2000_v40 = vsel %vm1996_vm10, %v1979_v24, %v6535_v51  ;;  %v1998_v53 = vsel %vm1996_vm10, %v1977_v28, %v6551_v44  ;;  %v948_v61 = vrot.slane %v946_v31, 4  ;;  %v5047_v22 = vld [vmem:[%s5931_s18 + $0x6c] sm:$0xe] }
  0xb7   : > { %v6639_v34 = vpop.permute.xlu0 %1905  ;;  %v687_v7 = vsel %vm5980_vm2, %v685_v23, %v686_v48  ;;  %5463 = vmatpush3.bf16.msra.mxu0 %v5587_v2  ;;  %v951_v41 = vrot.slane %v949_v33, 5  ;;  %v959_v42 = vshrl.u32 %v6632_v29, 16  ;;  %v2019_v51 = vsel %vm2017_vm11, %v1998_v53, %v6473_v25 }
  0xb8   : > { %v6650_v18 = vpop.permute.xlu1 %1539  ;;  %v5139_v46 = vcombine.low %v684_v32, %v687_v7  ;;  %5464 = vmatprep.subr.bf16.mxu0 %v5590_v60  ;;  %v5150_v44 = vcombine.low %v5027_v13, %v6632_v29  ;;  %v922_v49 = vshrl.u32 %v5025_v19, 16  ;;  %v925_v17 = vshll.u32 %v5025_v19, 16 }
  0xb9   : > { %v935_v21 = vshrl.u32 %v6648_v11, 16  ;;  %v5149_v35 = vcombine.low %v5025_v19, %v6648_v11  ;;  %v952_v52 = vor.u32 %v951_v41, %v948_v61  ;;  %v2021_v25 = vsel %vm2017_vm11, %v2000_v40, %v6512_v27 }
  0xba   : > { %1601 = vrot.lane.b32.xlu1 %v5140_v56, %s5843_s8  ;;  %1599 = vrot.lane.b32.xlu0 %v5139_v46, %s5843_s8  ;;  %v924_v36 = vrot.slane %v922_v49, 4  ;;  %v927_v55 = vrot.slane %v925_v17, 5  ;;  %v2040_v58 = vsel %vm2038_vm12, %v2019_v51, %v6445_v12  ;;  %v955_v47 = vshll.u32 %v6632_v29, 16  ;;  %v5079_v51 = vld [vmem:[%s5931_s18 + $0x84] sm:$0xf] }
  0xbb   : > { %v6664_v26 = vpop.permute.xlu0 %1587  ;;  %5465 = vmatpush3.bf16.msra.mxu0 %v5590_v60  ;;  %v953_v2 = vrot.slane %v952_v52, 4  ;;  %v961_v0 = vrot.slane %v959_v42, 4  ;;  %v965_v38 = vshll.u32 %v5038_v59, 16  ;;  %v931_v27 = vshll.u32 %v6648_v11, 16 }
  0xbc   : > { %v6669_v63 = vpop.permute.xlu1 %1589  ;;  %5466 = vmatprep.subr.bf16.mxu0 %v5592_v43  ;;  %v928_v8 = vor.u32 %v927_v55, %v924_v36  ;;  %v2042_v10 = vsel %vm2038_vm12, %v2021_v25, %v6430_v50  ;;  %v957_v14 = vrot.slane %v955_v47, 5  ;;  %v937_v12 = vrot.slane %v935_v21, 4  ;;  %v6720_v36 = vld [vmem:[%s5931_s18 + $0x7c] sm:$0xf] }
  0xbd   : > { %v941_v15 = vshll.u32 %v5037_v57, 16  ;;  %v2061_v3 = vsel %vm2059_vm13, %v2040_v58, %v6588_v20  ;;  %v933_v13 = vrot.slane %v931_v27, 5  ;;  %v5058_v9 = vrot.slane %v5048_v4, 9  ;;  %v5687_v4 = vld [vmem:[%s5931_s18 + $0x1c] sm:$0xf] }
  0xbe   : > { %1661 = vrot.lane.b32.xlu1 %v5150_v44, %s5840_s22  ;;  %1659 = vrot.lane.b32.xlu0 %v5149_v35, %s5840_s22  ;;  %v929_v48 = vrot.slane %v928_v8, 4  ;;  %v958_v32 = vsel %vm6027_vm5, %v953_v2, %v957_v14  ;;  %v962_v23 = vor.u32 %v961_v0, %v957_v14  ;;  %v967_v50 = vrot.slane %v965_v38, 5  ;;  %v6711_v35 = vld [vmem:[%s5931_s18 + $0x88] sm:$0xf] }
  0xbf   : > { %v6680_v1 = vpop.permute.xlu0 %1647  ;;  %5467 = vmatpush3.bf16.msra.mxu0 %v5592_v43  ;;  %v943_v24 = vrot.slane %v941_v15, 5  ;;  %v938_v28 = vor.u32 %v937_v12, %v933_v13  ;;  %v1074_v20 = vrot.slane %v6632_v29, 5  ;;  %v1077_v31 = vrot.slane %v5038_v59, 5  ;;  %v5077_v59 = vld [vmem:[%s5931_s18 + $0x78] sm:$0xf] }
  0xc0   : > { %v6685_v60 = vpop.permute.xlu1 %1649  ;;  %v934_v56 = vsel %vm6027_vm5, %v929_v48, %v933_v13  ;;  %v963_v33 = vrot.slane %v962_v23, 4  ;;  %v5057_v19 = vrot.slane %v5047_v22, 9  ;;  %v1067_v7 = vrot.slane %v6648_v11, 5  ;;  %v5089_v48 = vld [vmem:[%s5931_s18 + $0x80] sm:$0x1] }
  0xc1   : > { %v1070_v40 = vrot.slane %v5037_v57, 5  ;;  %v939_v53 = vrot.slane %v938_v28, 4  ;;  %v1075_v46 = vsel %vm5980_vm2, %v5058_v9, %v1074_v20  ;;  %v1076_v61 = vrot.slane %v1074_v20, 4 }
  0xc2   : > { %v968_v42 = vsel %vm6027_vm5, %v963_v33, %v967_v50  ;;  %v1068_v29 = vsel %vm5980_vm2, %v5057_v19, %v1067_v7  ;;  %v1069_v43 = vrot.slane %v1067_v7, 4  ;;  %v2082_v11 = vsel %vm2080_vm14, %v2061_v3, %v6610_v45  ;;  %v5100_v19 = vld [vmem:[%s5931_s18 + $0x84] sm:$0xe] }
  0xc3   : > { %v5160_v49 = vcombine.low %v958_v32, %v968_v42  ;;  %v944_v17 = vsel %vm6027_vm5, %v939_v53, %v943_v24  ;;  %v1078_v21 = vsel %vm5980_vm2, %v1076_v61, %v1077_v31  ;;  %v2063_v52 = vsel %vm2059_vm13, %v2042_v10, %v6578_v30  ;;  %5468 = vmatprep.mubr.msk.bf16.mxu0 %vm2137_vm15, %v2082_v11  ;;  %v5686_v30 = vld [vmem:[%s5931_s18 + $0x18] sm:$0xf]  ;;  %v5090_v10 = vld [vmem:[%s5931_s18 + $0x8c] sm:$0x1] }
  0xc4   : > { %v6695_v41 = vpop.permute.xlu1 %1699  ;;  %v5159_v45 = vcombine.low %v934_v56, %v944_v17  ;;  %v1071_v25 = vsel %vm5980_vm2, %v1069_v43, %v1070_v40  ;;  %v5170_v55 = vcombine.low %v1075_v46, %v1078_v21  ;;  %v2084_v57 = vsel %vm2080_vm14, %v2063_v52, %v6639_v34  ;;  %v5099_v42 = vld [vmem:[%s5931_s18 + $0x78] sm:$0xe]  ;;  %v5689_v43 = vld [vmem:[%s5931_s18 + $0x28] sm:$0xf] }
  0xc5   : > { %v6704_v44 = vpop.permute.xlu0 %1697  ;;  %1711 = vrot.lane.b32.xlu1 %v5160_v49, %s5845_s10  ;;  %v1330_v58 = vshrl.u32 %v5079_v51, 16  ;;  %v1333_v2 = vshll.u32 %v5079_v51, 16  ;;  %v5113_v0 = vcombine.low %v5686_v30, %v5687_v4  ;;  %v5169_v38 = vcombine.low %v1068_v29, %v1071_v25  ;;  %5469 = vmatmul.mubr.msk.bf16.vlgmr.msra.gmra.mxu0 %vm2137_vm15, %v2084_v57  ;;  %v5688_v29 = vld [vmem:[%s5931_s18 + $0x24] sm:$0xf] }
  0xc6   : > { %1709 = vrot.lane.b32.xlu0 %v5159_v45, %s5845_s10  ;;  %v1343_v8 = vshrl.u32 %v6711_v35, 16  ;;  %v1306_v27 = vshrl.u32 %v5077_v59, 16  ;;  %v1309_v15 = vshll.u32 %v5077_v59, 16  ;;  %v1319_v3 = vshrl.u32 %v6720_v36, 16 }
  0xc7   : > { %v1332_v34 = vrot.slane %v1330_v58, 4  ;;  %v1335_v12 = vrot.slane %v1333_v2, 5  ;;  %v5180_v13 = vcombine.low %v5079_v51, %v6711_v35  ;;  %v5179_v22 = vcombine.low %v5077_v59, %v6720_v36 }
  0xc8   : > { %v6725_v47 = vpop.permute.xlu1 %1749  ;;  %v1308_v9 = vrot.slane %v1306_v27, 4  ;;  %v1311_v32 = vrot.slane %v1309_v15, 5  ;;  %v1339_v50 = vshll.u32 %v6711_v35, 16  ;;  %v1345_v24 = vrot.slane %v1343_v8, 4 }
  0xc9   : > { %v6733_v14 = vpop.permute.xlu0 %1747  ;;  %1761 = vrot.lane.b32.xlu1 %v5170_v55, %s5842_s25  ;;  %v1336_v23 = vor.u32 %v1335_v12, %v1332_v34  ;;  %v1349_v28 = vshll.u32 %v5090_v10, 16  ;;  %v1315_v20 = vshll.u32 %v6720_v36, 16  ;;  %v1321_v31 = vrot.slane %v1319_v3, 4 }
  0xca   : > { %1759 = vrot.lane.b32.xlu0 %v5169_v38, %s5842_s25  ;;  %v1325_v33 = vshll.u32 %v5089_v48, 16  ;;  %v1932_v40 = vsel %vm1923_vm6, %v5113_v0, %v6608_v6  ;;  %v1341_v46 = vrot.slane %v1339_v50, 5  ;;  %v1312_v61 = vor.u32 %v1311_v32, %v1308_v9 }
  0xcb   : > { %v1337_v53 = vrot.slane %v1336_v23, 4  ;;  %v5114_v11 = vcombine.low %v5688_v29, %v5689_v43  ;;  %v1960_v51 = vsel %vm1954_vm7, %v1932_v40, %v6664_v26  ;;  %v1351_v49 = vrot.slane %v1349_v28, 5 }
  0xcc   : > { %v6741_v56 = vpop.permute.xlu1 %1809  ;;  %v1317_v17 = vrot.slane %v1315_v20, 5  ;;  %v1346_v21 = vor.u32 %v1345_v24, %v1341_v46  ;;  %v1313_v59 = vrot.slane %v1312_v61, 4  ;;  %v1327_v52 = vrot.slane %v1325_v33, 5 }
  0xcd   : > { %v1808_v7 = vpop.permute.xlu0 %1807  ;;  %1821 = vrot.lane.b32.xlu1 %v5180_v13, %s5841_s23  ;;  %v5110_v45 = vrot.slane %v5100_v19, 9  ;;  %v1458_v25 = vrot.slane %v6711_v35, 5  ;;  %v1461_v55 = vrot.slane %v5090_v10, 5  ;;  %v5109_v57 = vrot.slane %v5099_v42, 9 }
  0xce   : > { %1819 = vrot.lane.b32.xlu0 %v5179_v22, %s5841_s23  ;;  %v1322_v6 = vor.u32 %v1321_v31, %v1317_v17  ;;  %v1342_v2 = vsel %vm6027_vm5, %v1337_v53, %v1341_v46  ;;  %v1347_v26 = vrot.slane %v1346_v21, 4  ;;  %v1451_v30 = vrot.slane %v6720_v36, 5 }
  0xcf   : > { %v1454_v4 = vrot.slane %v5089_v48, 5  ;;  %v1318_v38 = vsel %vm6027_vm5, %v1313_v59, %v1317_v17  ;;  %v1981_v27 = vsel %vm1975_vm9, %v1960_v51, %v6680_v1  ;;  %v1460_v34 = vrot.slane %v1458_v25, 4  ;;  %v5691_v17 = vld [vmem:[%s5931_s18 + $0x34] sm:$0xf] }
  0xd0   : > { %v1323_v8 = vrot.slane %v1322_v6, 4  ;;  %v1352_v35 = vsel %vm6027_vm5, %v1347_v26, %v1351_v49  ;;  %v1459_v10 = vsel %vm5980_vm2, %v5110_v45, %v1458_v25  ;;  %v1452_v12 = vsel %vm5980_vm2, %v5109_v57, %v1451_v30  ;;  %v5690_v49 = vld [vmem:[%s5931_s18 + $0x30] sm:$0xf]  ;;  %v5693_v57 = vld [vmem:[%s5931_s18 + $0x40] sm:$0xf] }
  0xd1   : > { %v1860_v58 = vpop.permute.xlu1 %1859  ;;  %v1453_v36 = vrot.slane %v1451_v30, 4  ;;  %v5190_v15 = vcombine.low %v1342_v2, %v1352_v35  ;;  %v1462_v48 = vsel %vm5980_vm2, %v1460_v34, %v1461_v55  ;;  %v2002_v1 = vsel %vm1996_vm10, %v1981_v27, %v6704_v44  ;;  %v5692_v55 = vld [vmem:[%s5931_s18 + $0x3c] sm:$0xf] }
  0xd2   : > { %v1858_v0 = vpop.permute.xlu0 %1857  ;;  %v1328_v3 = vsel %vm6027_vm5, %v1323_v8, %v1327_v52  ;;  %v1935_v13 = vsel %vm1923_vm6, %v5114_v11, %v6650_v18  ;;  %v2023_v32 = vsel %vm2017_vm11, %v2002_v1, %v6733_v14  ;;  %v5200_v24 = vcombine.low %v1459_v10, %v1462_v48 }
  0xd3   : > { %v5189_v9 = vcombine.low %v1318_v38, %v1328_v3  ;;  %v1455_v22 = vsel %vm5980_vm2, %v1453_v36, %v1454_v4  ;;  %v1962_v50 = vsel %vm1954_vm7, %v1935_v13, %v6669_v63  ;;  %1871 = vrot.lane.b32.xlu1 %v5190_v15, %s5846_s11  ;;  %v2044_v28 = vsel %vm2038_vm12, %v2023_v32, %v1808_v7 }
  0xd4   : > { %v1983_v18 = vsel %vm1975_vm9, %v1962_v50, %v6685_v60  ;;  %v5199_v20 = vcombine.low %v1452_v12, %v1455_v22  ;;  %v2065_v31 = vsel %vm2059_vm13, %v2044_v28, %v1858_v0  ;;  %v5119_v63 = vcombine.low %v6501_v5, %v6510_v16 }
  0xd5   : > { %1869 = vrot.lane.b32.xlu0 %v5189_v9, %s5846_s11  ;;  %v2004_v14 = vsel %vm1996_vm10, %v1983_v18, %v6695_v41  ;;  %v5120_v7 = vcombine.low %v6544_v62, %v6549_v54  ;;  %v5115_v21 = vcombine.low %v5690_v49, %v5691_v17 }
  0xd6   : > { %v1908_v23 = vpop.permute.xlu0 %1907  ;;  %v2025_v19 = vsel %vm2017_vm11, %v2004_v14, %v6725_v47 }
  0xd7   : > { %v1542_v44 = vpop.permute.xlu1 %1541  ;;  %v2086_v33 = vsel %vm2080_vm14, %v2065_v31, %v1908_v23  ;;  %1921 = vrot.lane.b32.xlu1 %v5200_v24, %s5847_s12  ;;  %v2046_v60 = vsel %vm2038_vm12, %v2025_v19, %v6741_v56  ;;  %v5695_v31 = vld [vmem:[%s5931_s18 + $0x4c] sm:$0xf] }
  0xd8   : > { %5472 = vmatprep.mubr.msk.bf16.mxu0 %vm2137_vm15, %v2086_v33  ;;  %v2067_v41 = vsel %vm2059_vm13, %v2046_v60, %v1860_v58  ;;  %v1938_v45 = vsel %vm1923_vm6, %v5115_v21, %v1542_v44  ;;  %v5116_v58 = vcombine.low %v5692_v55, %v5693_v57 }
  0xd9   : > { %1919 = vrot.lane.b32.xlu0 %v5199_v20, %s5847_s12  ;;  %v5694_v20 = vld [vmem:[%s5931_s18 + $0x48] sm:$0xf] }
  0xda   : > { %v5117_v14 = vcombine.low %v5694_v20, %v5695_v31 }
  0xdc   : > { %v1910_v40 = vpop.permute.xlu0 %1909 }
  0xdd   : > { %v1544_v53 = vpop.permute.xlu1 %1543  ;;  %v2088_v47 = vsel %vm2080_vm14, %v2067_v41, %v1910_v40 }
  0xde   : > { %5473 = vmatmul.mubr.msk.bf16.gmra.mxu0 %vm2137_vm15, %v2088_v47  ;;  %v1941_v38 = vsel %vm1923_vm6, %v5116_v58, %v1544_v53  ;;  %v5696_v47 = vld [vmem:[%s5931_s18 + $0x54] sm:$0xf] }
  0xe0   : > { %v1592_v46 = vpop.permute.xlu0 %1591 }
  0xe1   : > { %v1594_v61 = vpop.permute.xlu1 %1593  ;;  %v1964_v6 = vsel %vm1954_vm7, %v1938_v45, %v1592_v46  ;;  %v5697_v46 = vld [vmem:[%s5931_s18 + $0x58] sm:$0xf] }
  0xe2   : > { %v1966_v34 = vsel %vm1954_vm7, %v1941_v38, %v1594_v61  ;;  %v5118_v61 = vcombine.low %v5696_v47, %v5697_v46  ;;  %v2478_v47 = vld [vmem:[#allocation2 + $0x18] sm:$0x1] }
  0xe4   : > { %v1652_v42 = vpop.permute.xlu0 %1651 }
  0xe5   : > { %v1654_v29 = vpop.permute.xlu1 %1653  ;;  %v1985_v2 = vsel %vm1975_vm9, %v1964_v6, %v1652_v42 }
  0xe6   : > { %v1987_v12 = vsel %vm1975_vm9, %v1966_v34, %v1654_v29 }
  0xe9   : > { %v1704_v43 = vpop.permute.xlu1 %1703 }
  0xea   : > { %v1702_v11 = vpop.permute.xlu0 %1701  ;;  %v2008_v36 = vsel %vm1996_vm10, %v1987_v12, %v1704_v43 }
  0xeb   : > { %v2006_v30 = vsel %vm1996_vm10, %v1985_v2, %v1702_v11 }
  0xed   : > { %v1754_v56 = vpop.permute.xlu1 %1753 }
  0xee   : > { %v1752_v51 = vpop.permute.xlu0 %1751  ;;  %v2029_v15 = vsel %vm2017_vm11, %v2008_v36, %v1754_v56 }
  0xef   : > { %v2027_v4 = vsel %vm2017_vm11, %v2006_v30, %v1752_v51  ;;  %v2475_v30 = vld [vmem:[#allocation2 + $0xc] sm:$0x1] }
  0xf0   : > { %v2476_v38 = vsel %vm6852_vm3, 0, %v2475_v30 }
  0xf1   : > { %v1814_v59 = vpop.permute.xlu1 %1813  ;;  %2477 = vst [vmem:[#allocation2 + $0xc] sm:$0x1] %v2476_v38 }
  0xf2   : > { %v1812_v52 = vpop.permute.xlu0 %1811  ;;  %v2050_v3 = vsel %vm2038_vm12, %v2029_v15, %v1814_v59  ;;  %v2507_v15 = vld [vmem:[#allocation2 + $0x14] sm:$0x1] }
  0xf3   : > { %v2048_v0 = vsel %vm2038_vm12, %v2027_v4, %v1812_v52 }
  0xf6   : > { %v1864_v25 = vpop.permute.xlu1 %1863 }
  0xf7   : > { %v1862_v26 = vpop.permute.xlu0 %1861  ;;  %v2071_v48 = vsel %vm2059_vm13, %v2050_v3, %v1864_v25  ;;  %v2508_v3 = vsel %vm6860_vm8, 0, %v2507_v15 }
  0xf8   : > { %v2069_v8 = vsel %vm2059_vm13, %v2048_v0, %v1862_v26  ;;  %2509 = vst [vmem:[#allocation2 + $0x14] sm:$0x1] %v2508_v3 }
  0xfb   : > { %v1912_v27 = vpop.permute.xlu0 %1911 }
  0xfc   : > { %v1546_v35 = vpop.permute.xlu1 %1545  ;;  %v2090_v10 = vsel %vm2080_vm14, %v2069_v8, %v1912_v27 }
  0xfd   : > { %5476 = vmatprep.mubr.msk.bf16.mxu0 %vm2137_vm15, %v2090_v10  ;;  %v1944_v60 = vsel %vm1923_vm6, %v5117_v14, %v1546_v35  ;;  %v2472_v35 = vld [vmem:[#allocation2] sm:$0x1] }
  0xfe   : > { %v2473_v12 = vsel %vm6852_vm3, 0, %v2472_v35  ;;  %v2493_v35 = vld [vmem:[#allocation2 + $0x54] sm:$0x1] }
  0xff   : > { %2474 = vst [vmem:[#allocation2] sm:$0x1] %v2473_v12  ;;  %v2494_v15 = vsel %vm6852_vm3, 0, %v2493_v35 }
 0x100   : > { %2495 = vst [vmem:[#allocation2 + $0x54] sm:$0x1] %v2494_v15 }
 0x101   : > { %v1914_v1 = vpop.permute.xlu0 %1913 }
 0x102   : > { %v1548_v13 = vpop.permute.xlu1 %1547  ;;  %v2092_v9 = vsel %vm2080_vm14, %v2071_v48, %v1914_v1  ;;  %v2504_v48 = vld [vmem:[#allocation2 + $0x8] sm:$0x1] }
 0x103   : > { %5477 = vmatmul.mubr.msk.bf16.gmra.mxu0 %vm2137_vm15, %v2092_v9  ;;  %v1947_v49 = vsel %vm1923_vm6, %v5118_v61, %v1548_v13  ;;  %v2505_v13 = vsel %vm6860_vm8, 0, %v2504_v48  ;;  %v2479_v61 = vsel %vm6852_vm3, 0, %v2478_v47 }
 0x104   : > { %2506 = vst [vmem:[#allocation2 + $0x8] sm:$0x1] %v2505_v13  ;;  %2480 = vst [vmem:[#allocation2 + $0x18] sm:$0x1] %v2479_v61  ;;  %v2490_v13 = vld [vmem:[#allocation2 + $0x48] sm:$0x1] }
 0x105   : > { %v1596_v22 = vpop.permute.xlu0 %1595 }
 0x106   : > { %v1598_v32 = vpop.permute.xlu1 %1597  ;;  %v1968_v41 = vsel %vm1954_vm7, %v1944_v60, %v1596_v22 }
 0x107   : > { %v1970_v21 = vsel %vm1954_vm7, %v1947_v49, %v1598_v32  ;;  %v2481_v32 = vld [vmem:[#allocation2 + $0x24] sm:$0x1]  ;;  %v2484_v49 = vld [vmem:[#allocation2 + $0x30] sm:$0x1] }
 0x109   : > { %v1656_v23 = vpop.permute.xlu0 %1655 }
 0x10a   : > { %v1658_v50 = vpop.permute.xlu1 %1657  ;;  %v1989_v40 = vsel %vm1975_vm9, %v1968_v41, %v1656_v23 }
 0x10b   : > { %v1991_v59 = vsel %vm1975_vm9, %v1970_v21, %v1658_v50  ;;  %v2482_v50 = vsel %vm6852_vm3, 0, %v2481_v32  ;;  %v2519_v21 = vld [vmem:[#allocation2 + $0x44] sm:$0x1] }
 0x10c   : > { %2483 = vst [vmem:[#allocation2 + $0x24] sm:$0x1] %v2482_v50 }
 0x10e   : > { %v1708_v24 = vpop.permute.xlu1 %1707 }
 0x10f   : > { %v1706_v28 = vpop.permute.xlu0 %1705  ;;  %v2012_v45 = vsel %vm1996_vm10, %v1991_v59, %v1708_v24  ;;  %v2520_v59 = vsel %vm6860_vm8, 0, %v2519_v21 }
 0x110   : > { %v2010_v42 = vsel %vm1996_vm10, %v1989_v40, %v1706_v28  ;;  %2521 = vst [vmem:[#allocation2 + $0x44] sm:$0x1] %v2520_v59 }
 0x112   : > { %v1758_v44 = vpop.permute.xlu1 %1757 }
 0x113   : > { %v1756_v18 = vpop.permute.xlu0 %1755  ;;  %v2033_v6 = vsel %vm2017_vm11, %v2012_v45, %v1758_v44 }
 0x114   : > { %v2031_v43 = vsel %vm2017_vm11, %v2010_v42, %v1756_v18  ;;  %v2513_v42 = vld [vmem:[#allocation2 + $0x2c] sm:$0x1] }
 0x116   : > { %v1818_v33 = vpop.permute.xlu1 %1817 }
 0x117   : > { %v1816_v19 = vpop.permute.xlu0 %1815  ;;  %v2054_v25 = vsel %vm2038_vm12, %v2033_v6, %v1818_v33  ;;  %v6913_v6 = vld [vmem:[%s7907_s2] ss:$0 sm:$0xff] }
 0x118   : > { %v2052_v11 = vsel %vm2038_vm12, %v2031_v43, %v1816_v19  ;;  %v2510_v43 = vld [vmem:[#allocation2 + $0x20] sm:$0x1] }
 0x11b   : > { %v1868_v29 = vpop.permute.xlu1 %1867 }
 0x11c   : > { %v1866_v53 = vpop.permute.xlu0 %1865  ;;  %v2075_v55 = vsel %vm2059_vm13, %v2054_v25, %v1868_v29  ;;  %v2514_v29 = vsel %vm6860_vm8, 0, %v2513_v42 }
 0x11d   : > { %v2073_v56 = vsel %vm2059_vm13, %v2052_v11, %v1866_v53  ;;  %2515 = vst [vmem:[#allocation2 + $0x2c] sm:$0x1] %v2514_v29  ;;  %v2511_v11 = vsel %vm6860_vm8, 0, %v2510_v43 }
 0x11e   : > { %2512 = vst [vmem:[#allocation2 + $0x20] sm:$0x1] %v2511_v11 }
 0x120   : > { %v1916_v51 = vpop.permute.xlu0 %1915 }
 0x121   : > { %v2094_v17 = vsel %vm2080_vm14, %v2073_v56, %v1916_v51  ;;  %v1550_v52 = vpop.permute.xlu1 %1549  ;;  %v2487_v56 = vld [vmem:[#allocation2 + $0x3c] sm:$0x1] }
 0x122   : > { %5480 = vmatprep.mubr.msk.bf16.mxu0 %vm2137_vm15, %v2094_v17  ;;  %v1950_v28 = vsel %vm1923_vm6, %v5119_v63, %v1550_v52  ;;  %v2488_v51 = vsel %vm6852_vm3, 0, %v2487_v56  ;;  %v2485_v17 = vsel %vm6852_vm3, 0, %v2484_v49  ;;  %v2516_v52 = vld [vmem:[#allocation2 + $0x38] sm:$0x1] }
 0x123   : > { %2489 = vst [vmem:[#allocation2 + $0x3c] sm:$0x1] %v2488_v51  ;;  %2486 = vst [vmem:[#allocation2 + $0x30] sm:$0x1] %v2485_v17  ;;  %v2517_v45 = vsel %vm6860_vm8, 0, %v2516_v52 }
 0x124   : > { %2518 = vst [vmem:[#allocation2 + $0x38] sm:$0x1] %v2517_v45 }
 0x126   : > { %v1918_v57 = vpop.permute.xlu0 %1917 }
 0x127   : > { %v2096_v58 = vsel %vm2080_vm14, %v2075_v55, %v1918_v57  ;;  %v6918_v55 = vld [vmem:[%s7908_s3] ss:$0 sm:$0xff] }
 0x128   : > { %v1552_v2 = vpop.permute.xlu1 %1551  ;;  %5481 = vmatmul.mubr.msk.bf16.gmra.mxu0 %vm2137_vm15, %v2096_v58 }
 0x129   : > { %v1953_v24 = vsel %vm1923_vm6, %v5120_v7, %v1552_v2 }
 0x12c   : > { %v1602_v26 = vpop.permute.xlu1 %1601  ;;  %v1600_v4 = vpop.permute.xlu0 %1599 }
 0x12d   : > { %v1974_v44 = vsel %vm1954_vm7, %v1953_v24, %v1602_v26  ;;  %v1972_v18 = vsel %vm1954_vm7, %v1950_v28, %v1600_v4  ;;  %v2522_v28 = vld [vmem:[#allocation2 + $0x50] sm:$0x1] }
 0x130   : > { %v1662_v8 = vpop.permute.xlu1 %1661  ;;  %v1660_v27 = vpop.permute.xlu0 %1659 }
 0x131   : > { %v1995_v20 = vsel %vm1975_vm9, %v1974_v44, %v1662_v8  ;;  %v1993_v14 = vsel %vm1975_vm9, %v1972_v18, %v1660_v27 }
 0x137   : > { %v1712_v10 = vpop.permute.xlu1 %1711 }
 0x138   : > { %v1710_v36 = vpop.permute.xlu0 %1709  ;;  %v2016_v33 = vsel %vm1996_vm10, %v1995_v20, %v1712_v10  ;;  %v2523_v20 = vsel %vm6860_vm8, 0, %v2522_v28 }
 0x139   : > { %v2014_v62 = vsel %vm1996_vm10, %v1993_v14, %v1710_v36  ;;  %2524 = vst [vmem:[#allocation2 + $0x50] sm:$0x1] %v2523_v20  ;;  %v2810_v20 = vld [vmem:[#allocation2 + $0x14] sm:$0x1] }
 0x13b   : > { %v1762_v1 = vpop.permute.xlu1 %1761 }
 0x13c   : > { %v1760_v9 = vpop.permute.xlu0 %1759  ;;  %v2037_v54 = vsel %vm2017_vm11, %v2016_v33, %v1762_v1 }
 0x13d   : > { %v2035_v5 = vsel %vm2017_vm11, %v2014_v62, %v1760_v9  ;;  %v2491_v9 = vsel %vm6852_vm3, 0, %v2490_v13  ;;  %vm2796_vm11 = vcmask 27648  }
 0x13e   : > { %2492 = vst [vmem:[#allocation2 + $0x48] sm:$0x1] %v2491_v9 }
 0x13f   : > { %v1822_v22 = vpop.permute.xlu1 %1821 }
 0x140   : > { %v1820_v23 = vpop.permute.xlu0 %1819  ;;  %v2058_v16 = vsel %vm2038_vm12, %v2037_v54, %v1822_v22  ;;  %v2525_v22 = vld [vmem:[#allocation2 + $0x5c] sm:$0x1] }
 0x141   : > { %v2056_v63 = vsel %vm2038_vm12, %v2035_v5, %v1820_v23  ;;  %v2526_v23 = vsel %vm6860_vm8, 0, %v2525_v22  ;;  %vm6961_vm12 = vmand %vm2796_vm11, %vm2502_vm4  ;;  %v2499_v22 = vld [vmem:[#allocation2 + $0x6c] sm:$0x1] }
 0x142   : > { %2527 = vst [vmem:[#allocation2 + $0x5c] sm:$0x1] %v2526_v23 }
 0x145   : > { %v1872_v31 = vpop.permute.xlu1 %1871 }
 0x146   : > { %v2079_v7 = vsel %vm2059_vm13, %v2058_v16, %v1872_v31 }
 0x147   : > { %v1870_v19 = vpop.permute.xlu0 %1869 }
 0x148   : > { %v2077_v41 = vsel %vm2059_vm13, %v2056_v63, %v1870_v19  ;;  %vm2594_vm13 = vsmask.f32 4368 }
 0x149   : > { %v1922_v60 = vpop.permute.xlu1 %1921 }
 0x14a   : > { %v2100_v40 = vsel %vm2080_vm14, %v2079_v7, %v1922_v60 }
 0x14b   : > { %v1920_v53 = vpop.permute.xlu0 %1919 }
 0x14c   : > { %v2098_v46 = vsel %vm2080_vm14, %v2077_v41, %v1920_v53  ;;  %vm6970_vm14 = vmor %vm2470_vm1, %vm2594_vm13 }
 0x14d   : > { %5484 = vmatprep.mubr.msk.bf16.mxu0 %vm2137_vm15, %v2098_v46 }
 0x14e   : > { %5485 = vmatmul.mubr.msk.bf16.gmra.mxu0 %vm2137_vm15, %v2100_v40 }
 0x185   : > { %v5470_v25 = vpop.f32.mrf.mxu0 }
 0x186   : > { %v2284_v57 = vmul.f32 %v5470_v25, %v6913_v6 }
 0x187   : > { %v2196_v58 = vpop.f32.mrf.mxu0 }
 0x188   : > { %v2311_v2 = vadd.f32 %v6918_v55, %v2284_v57  ;;  %v2282_v26 = vmul.f32 %v6913_v6, %v2196_v58 }
 0x189   : > { %v5471_v30 = vpop.f32.mrf.mxu0 }
 0x18a   : > { %v5220_v4 = vmul.f32 -1.442695, %v2311_v2  ;;  %v2309_v38 = vadd.f32 %v6918_v55, %v2282_v26  ;;  %v2285_v8 = vmul.f32 %v5471_v30, %v6913_v6 }
 0x18b   : > { %v2199_v27 = vpop.f32.mrf.mxu0 }
 0x18c   : > { %5602 = vpow2.f32 %v5220_v4  ;;  %v5218_v10 = vmul.f32 -1.442695, %v2309_v38  ;;  %v2312_v12 = vadd.f32 %v6918_v55, %v2285_v8  ;;  %v2283_v36 = vmul.f32 %v6913_v6, %v2199_v27 }
 0x18e   : > { %5604 = vpow2.f32 %v5218_v10  ;;  %v5221_v3 = vmul.f32 -1.442695, %v2312_v12  ;;  %v6930_v48 = vadd.f32 %v6918_v55, %v2283_v36 }
 0x190   : > { %5606 = vpow2.f32 %v5221_v3  ;;  %v5219_v1 = vmul.f32 -1.442695, %v6930_v48 }
 0x192   : > { %5608 = vpow2.f32 %v5219_v1  ;;  %v2798_v1 = vld [vmem:[#allocation2] sm:$0xf] }
 0x199   : > { %v5603_v32 = vpop.eup %5602 }
 0x19a   : > { %v2391_v50 = vadd.f32 1.0, %v5603_v32 }
 0x19b   : > { %v5605_v44 = vpop.eup %5604 }
 0x19c   : > { %5610 = vrcp.f32 %v2391_v50  ;;  %v2389_v31 = vadd.f32 1.0, %v5605_v44 }
 0x19d   : > { %v5607_v33 = vpop.eup %5606 }
 0x19e   : > { %v5474_v24 = vpop.f32.mrf.mxu0  ;;  %5612 = vrcp.f32 %v2389_v31  ;;  %v2392_v54 = vadd.f32 1.0, %v5607_v33 }
 0x19f   : > { %v2288_v18 = vmul.f32 %v5474_v24, %v6913_v6  ;;  %v5609_v16 = vpop.eup %5608 }
 0x1a0   : > { %v2212_v14 = vpop.f32.mrf.mxu0  ;;  %5614 = vrcp.f32 %v2392_v54  ;;  %v2390_v41 = vadd.f32 1.0, %v5609_v16 }
 0x1a1   : > { %v6941_v19 = vadd.f32 %v6918_v55, %v2288_v18  ;;  %v2286_v62 = vmul.f32 %v6913_v6, %v2212_v14 }
 0x1a2   : > { %v5475_v5 = vpop.f32.mrf.mxu0 }
 0x1a3   : > { %v5224_v63 = vmul.f32 -1.442695, %v6941_v19  ;;  %v6946_v7 = vadd.f32 %v6918_v55, %v2286_v62  ;;  %v2289_v60 = vmul.f32 %v5475_v5, %v6913_v6  ;;  %v2500_v5 = vsel %vm6852_vm3, 0, %v2499_v22 }
 0x1a4   : > { %v2215_v40 = vpop.f32.mrf.mxu0  ;;  %2501 = vst [vmem:[#allocation2 + $0x6c] sm:$0x1] %v2500_v5 }
 0x1a5   : > { %5616 = vpow2.f32 %v5224_v63  ;;  %v5222_v53 = vmul.f32 -1.442695, %v6946_v7  ;;  %v6951_v47 = vadd.f32 %v6918_v55, %v2289_v60  ;;  %v2287_v46 = vmul.f32 %v6913_v6, %v2215_v40 }
 0x1a6   : > { %5618 = vrcp.f32 %v2390_v41 }
 0x1a7   : > { %5620 = vpow2.f32 %v5222_v53  ;;  %v5225_v61 = vmul.f32 -1.442695, %v6951_v47  ;;  %v6956_v42 = vadd.f32 %v6918_v55, %v2287_v46  ;;  %v2803_v53 = vld [vmem:[#allocation2 + $0x8] sm:$0x1]  ;;  %v2531_v46 = vld [vmem:[#allocation2 + $0x74] sm:$0x1] }
 0x1a9   : > { %5622 = vpow2.f32 %v5225_v61  ;;  %v5223_v29 = vmul.f32 -1.442695, %v6956_v42  ;;  %v5611_v43 = vpop.eup %5610 }
 0x1aa   : > { %v2451_v11 = vmul.f32 %v5611_v43, %v2311_v2 }
 0x1ab   : > { %5624 = vpow2.f32 %v5223_v29  ;;  %v5613_v56 = vpop.eup %5612 }
 0x1ac   : > { %v5414_v51 = vpack.c.bf16 %v2451_v11, %v2451_v11  ;;  %v2449_v49 = vmul.f32 %v5613_v56, %v2309_v38  ;;  %v2806_v38 = vld [vmem:[#allocation2 + $0xc] sm:$0xf]  ;;  %v2532_v11 = vsel %vm6860_vm8, 0, %v2531_v46 }
 0x1ad   : > { %v5615_v17 = vpop.eup %5614  ;;  %2533 = vst [vmem:[#allocation2 + $0x74] sm:$0x1] %v2532_v11 }
 0x1ae   : > { %v2614_v59 = vshrl.u32 %v5414_v51, 16  ;;  %v5412_v52 = vpack.c.bf16 %v2449_v49, %v2449_v49  ;;  %v2452_v45 = vmul.f32 %v5615_v17, %v2312_v12  ;;  %v2617_v30 = vshll.u32 %v5414_v51, 16  ;;  %v2528_v49 = vld [vmem:[#allocation2 + $0x68] sm:$0x1] }
 0x1af   : > { %v2529_v17 = vsel %vm6860_vm8, 0, %v2528_v49 }
 0x1b0   : > { %v2616_v26 = vrot.slane %v2614_v59, 7  ;;  %v2597_v4 = vshrl.u32 %v5412_v52, 16  ;;  %v5415_v8 = vpack.c.bf16 %v2452_v45, %v2452_v45  ;;  %v2600_v15 = vshll.u32 %v5412_v52, 16  ;;  %2530 = vst [vmem:[#allocation2 + $0x68] sm:$0x1] %v2529_v17 }
 0x1b2   : > { %v5617_v21 = vpop.eup %5616  ;;  %v2619_v12 = vor.u32 %v2617_v30, %v2616_v26  ;;  %v2599_v36 = vrot.slane %v2597_v4, 7  ;;  %v2622_v3 = vshrl.u32 %v5415_v8, 16  ;;  %v2625_v28 = vshll.u32 %v5415_v8, 16 }
 0x1b3   : > { %v5619_v25 = vpop.eup %5618  ;;  %v2395_v57 = vadd.f32 1.0, %v5617_v21  ;;  %v2620_v44 = vrot.slane %v2616_v26, 4 }
 0x1b4   : > { %v5621_v58 = vpop.eup %5620  ;;  %v2450_v27 = vmul.f32 %v5619_v25, %v6930_v48  ;;  %v2807_v23 = vsel %vm6961_vm12, %v2619_v12, %v2806_v38  ;;  %v2602_v50 = vor.u32 %v2600_v15, %v2599_v36  ;;  %v2624_v24 = vrot.slane %v2622_v3, 7  ;;  %v2496_v48 = vld [vmem:[#allocation2 + $0x60] sm:$0x1] }
 0x1b5   : > { %5626 = vrcp.f32 %v2395_v57  ;;  %v2393_v35 = vadd.f32 1.0, %v5621_v58  ;;  %2808 = vst [vmem:[#allocation2 + $0xc] sm:$0xf] %v2807_v23  ;;  %v2497_v60 = vsel %vm6852_vm3, 0, %v2496_v48  ;;  %v2603_v61 = vrot.slane %v2599_v36, 4 }
 0x1b6   : > { %v5623_v10 = vpop.eup %5622  ;;  %v5413_v13 = vpack.c.bf16 %v2450_v27, %v2450_v27  ;;  %v2799_v33 = vsel %vm6961_vm12, %v2602_v50, %v2798_v1  ;;  %v2627_v62 = vor.u32 %v2625_v28, %v2624_v24  ;;  %v2629_v54 = vrot.slane %v2624_v24, 4  ;;  %2498 = vst [vmem:[#allocation2 + $0x60] sm:$0x1] %v2497_v60  ;;  %v2813_v48 = vld [vmem:[#allocation2 + $0x18] sm:$0xf] }
 0x1b7   : > { %5628 = vrcp.f32 %v2393_v35  ;;  %v2396_v9 = vadd.f32 1.0, %v5623_v10  ;;  %2800 = vst [vmem:[#allocation2] sm:$0xf] %v2799_v33 }
 0x1b8   : > { %v5625_v32 = vpop.eup %5624  ;;  %v2605_v31 = vshrl.u32 %v5413_v13, 16  ;;  %v2608_v63 = vshll.u32 %v5413_v13, 16  ;;  %v2628_v41 = vsel %vm6970_vm14, %v2620_v44, %v2627_v62  ;;  %v2811_v40 = vsel %vm6852_vm3, %v2629_v54, %v2810_v20  ;;  %v2820_v13 = vld [vmem:[#allocation2 + $0x24] sm:$0xf]  ;;  %v2824_v62 = vld [vmem:[#allocation2 + $0x2c] sm:$0x1] }
 0x1b9   : > { %5630 = vrcp.f32 %v2396_v9  ;;  %v2394_v14 = vadd.f32 1.0, %v5625_v32  ;;  %2809 = vst.msk [vmem:[#allocation2 + $0x10] sm:$0xf] %vm2796_vm11, %v2628_v41  ;;  %2812 = vst [vmem:[#allocation2 + $0x14] sm:$0x1] %v2811_v40 }
 0x1ba   : > { %v2607_v16 = vrot.slane %v2605_v31, 7 }
 0x1bb   : > { %5632 = vrcp.f32 %v2394_v14 }
 0x1bc   : > { %v2610_v29 = vor.u32 %v2608_v63, %v2607_v16  ;;  %v2612_v43 = vrot.slane %v2607_v16, 4 }
 0x1be   : > { %v2611_v56 = vsel %vm6970_vm14, %v2603_v61, %v2610_v29  ;;  %v2804_v51 = vsel %vm6852_vm3, %v2612_v43, %v2803_v53  ;;  %v2817_v43 = vld [vmem:[#allocation2 + $0x20] sm:$0x1] }
 0x1bf   : > { %2802 = vst.msk [vmem:[#allocation2 + $0x4] sm:$0xf] %vm2796_vm11, %v2611_v56  ;;  %2805 = vst [vmem:[#allocation2 + $0x8] sm:$0x1] %v2804_v51 }
 0x1c2   : > { %v5627_v21 = vpop.eup %5626 }
 0x1c3   : > { %v2455_v59 = vmul.f32 %v5627_v21, %v6941_v19  ;;  %v5478_v52 = vpop.f32.mrf.mxu0 }
 0x1c4   : > { %v5629_v45 = vpop.eup %5628  ;;  %v2292_v25 = vmul.f32 %v5478_v52, %v6913_v6 }
 0x1c5   : > { %v5418_v57 = vpack.c.bf16 %v2455_v59, %v2455_v59  ;;  %v2453_v58 = vmul.f32 %v5629_v45, %v6946_v7  ;;  %v2228_v26 = vpop.f32.mrf.mxu0 }
 0x1c6   : > { %v5631_v30 = vpop.eup %5630  ;;  %v6998_v4 = vadd.f32 %v6918_v55, %v2292_v25  ;;  %v2290_v8 = vmul.f32 %v6913_v6, %v2228_v26 }
 0x1c7   : > { %v2648_v34 = vshrl.u32 %v5418_v57, 16  ;;  %v5416_v38 = vpack.c.bf16 %v2453_v58, %v2453_v58  ;;  %v2456_v27 = vmul.f32 %v5631_v30, %v6951_v47  ;;  %v5479_v35 = vpop.f32.mrf.mxu0  ;;  %v2651_v15 = vshll.u32 %v5418_v57, 16 }
 0x1c8   : > { %v5633_v19 = vpop.eup %5632  ;;  %v5228_v10 = vmul.f32 -1.442695, %v6998_v4  ;;  %v7004_v12 = vadd.f32 %v6918_v55, %v2290_v8  ;;  %v2293_v7 = vmul.f32 %v5479_v35, %v6913_v6 }
 0x1c9   : > { %v2650_v36 = vrot.slane %v2648_v34, 7  ;;  %v2631_v3 = vshrl.u32 %v5416_v38, 16  ;;  %v5419_v1 = vpack.c.bf16 %v2456_v27, %v2456_v27  ;;  %v2454_v9 = vmul.f32 %v5633_v19, %v6956_v42  ;;  %v2231_v28 = vpop.f32.mrf.mxu0 }
 0x1ca   : > { %5634 = vpow2.f32 %v5228_v10  ;;  %v5226_v22 = vmul.f32 -1.442695, %v7004_v12  ;;  %v7010_v47 = vadd.f32 %v6918_v55, %v2293_v7  ;;  %v2634_v50 = vshll.u32 %v5416_v38, 16 }
 0x1cb   : > { %v2653_v32 = vor.u32 %v2651_v15, %v2650_v36  ;;  %v2633_v23 = vrot.slane %v2631_v3, 7  ;;  %v2656_v24 = vshrl.u32 %v5419_v1, 16  ;;  %v5417_v44 = vpack.c.bf16 %v2454_v9, %v2454_v9 }
 0x1cc   : > { %5636 = vpow2.f32 %v5226_v22  ;;  %v5229_v20 = vmul.f32 -1.442695, %v7010_v47  ;;  %v2659_v33 = vshll.u32 %v5419_v1, 16  ;;  %v2291_v5 = vmul.f32 %v6913_v6, %v2231_v28 }
 0x1cd   : > { %v2821_v31 = vsel %vm6961_vm12, %v2653_v32, %v2820_v13  ;;  %v2636_v42 = vor.u32 %v2634_v50, %v2633_v23  ;;  %v2658_v14 = vrot.slane %v2656_v24, 7  ;;  %v2639_v54 = vshrl.u32 %v5417_v44, 16  ;;  %v2834_v24 = vld [vmem:[#allocation2 + $0x3c] sm:$0xf] }
 0x1ce   : > { %2822 = vst [vmem:[#allocation2 + $0x24] sm:$0xf] %v2821_v31  ;;  %5638 = vpow2.f32 %v5229_v20  ;;  %v2654_v16 = vrot.slane %v2650_v36, 4  ;;  %v2642_v53 = vshll.u32 %v5417_v44, 16  ;;  %v7019_v46 = vadd.f32 %v6918_v55, %v2291_v5 }
 0x1cf   : > { %v2814_v63 = vsel %vm6961_vm12, %v2636_v42, %v2813_v48  ;;  %v2661_v60 = vor.u32 %v2659_v33, %v2658_v14  ;;  %v2663_v41 = vrot.slane %v2658_v14, 4  ;;  %v2641_v40 = vrot.slane %v2639_v54, 7  ;;  %v2827_v33 = vld [vmem:[#allocation2 + $0x30] sm:$0xf] }
 0x1d0   : > { %2815 = vst [vmem:[#allocation2 + $0x18] sm:$0xf] %v2814_v63  ;;  %v2637_v11 = vrot.slane %v2633_v23, 4  ;;  %v5227_v49 = vmul.f32 -1.442695, %v7019_v46 }
 0x1d1   : > { %v2662_v61 = vsel %vm6970_vm14, %v2654_v16, %v2661_v60  ;;  %v2825_v29 = vsel %vm6852_vm3, %v2663_v41, %v2824_v62  ;;  %v2644_v56 = vor.u32 %v2642_v53, %v2641_v40  ;;  %v2646_v51 = vrot.slane %v2641_v40, 4  ;;  %v2838_v41 = vld [vmem:[#allocation2 + $0x44] sm:$0x1] }
 0x1d2   : > { %2823 = vst.msk [vmem:[#allocation2 + $0x28] sm:$0xf] %vm2796_vm11, %v2662_v61  ;;  %2826 = vst [vmem:[#allocation2 + $0x2c] sm:$0x1] %v2825_v29  ;;  %5640 = vpow2.f32 %v5227_v49 }
 0x1d3   : > { %v2645_v17 = vsel %vm6970_vm14, %v2637_v11, %v2644_v56  ;;  %v2818_v21 = vsel %vm6852_vm3, %v2646_v51, %v2817_v43 }
 0x1d4   : > { %2816 = vst.msk [vmem:[#allocation2 + $0x1c] sm:$0xf] %vm2796_vm11, %v2645_v17  ;;  %2819 = vst [vmem:[#allocation2 + $0x20] sm:$0x1] %v2818_v21 }
 0x1d7   : > { %v5635_v59 = vpop.eup %5634 }
 0x1d8   : > { %v2399_v52 = vadd.f32 1.0, %v5635_v59 }
 0x1d9   : > { %v5637_v45 = vpop.eup %5636 }
 0x1da   : > { %5642 = vrcp.f32 %v2399_v52  ;;  %v2397_v25 = vadd.f32 1.0, %v5637_v45 }
 0x1db   : > { %v5639_v57 = vpop.eup %5638 }
 0x1dc   : > { %5644 = vrcp.f32 %v2397_v25  ;;  %v2400_v58 = vadd.f32 1.0, %v5639_v57  ;;  %v2831_v25 = vld [vmem:[#allocation2 + $0x38] sm:$0x1] }
 0x1de   : > { %5646 = vrcp.f32 %v2400_v58 }
 0x1df   : > { %v5641_v26 = vpop.eup %5640 }
 0x1e0   : > { %v2398_v30 = vadd.f32 1.0, %v5641_v26 }
 0x1e2   : > { %5648 = vrcp.f32 %v2398_v30 }
 0x1e7   : > { %v5643_v8 = vpop.eup %5642 }
 0x1e8   : > { %v2459_v34 = vmul.f32 %v5643_v8, %v6998_v4  ;;  %v5482_v27 = vpop.f32.mrf.mxu0 }
 0x1e9   : > { %v5645_v38 = vpop.eup %5644  ;;  %v2296_v10 = vmul.f32 %v5482_v27, %v6913_v6 }
 0x1ea   : > { %v5422_v35 = vpack.c.bf16 %v2459_v34, %v2459_v34  ;;  %v2457_v19 = vmul.f32 %v5645_v38, %v7004_v12  ;;  %v2244_v36 = vpop.f32.mrf.mxu0 }
 0x1eb   : > { %v5647_v7 = vpop.eup %5646  ;;  %v7037_v13 = vadd.f32 %v6918_v55, %v2296_v10  ;;  %v2294_v9 = vmul.f32 %v6913_v6, %v2244_v36 }
 0x1ec   : > { %v2682_v15 = vshrl.u32 %v5422_v35, 16  ;;  %v5420_v3 = vpack.c.bf16 %v2457_v19, %v2457_v19  ;;  %v2460_v1 = vmul.f32 %v5647_v7, %v7010_v47  ;;  %v5483_v22 = vpop.f32.mrf.mxu0  ;;  %v2685_v32 = vshll.u32 %v5422_v35, 16 }
 0x1ed   : > { %v5232_v12 = vmul.f32 -1.442695, %v7037_v13  ;;  %v7042_v28 = vadd.f32 %v6918_v55, %v2294_v9  ;;  %v2297_v48 = vmul.f32 %v5483_v22, %v6913_v6 }
 0x1ee   : > { %v2684_v4 = vrot.slane %v2682_v15, 7  ;;  %v2665_v23 = vshrl.u32 %v5420_v3, 16  ;;  %v5423_v50 = vpack.c.bf16 %v2460_v1, %v2460_v1  ;;  %v2668_v20 = vshll.u32 %v5420_v3, 16  ;;  %v2247_v42 = vpop.f32.mrf.mxu0 }
 0x1ef   : > { %v5649_v14 = vpop.eup %5648  ;;  %5650 = vpow2.f32 %v5232_v12  ;;  %v5230_v62 = vmul.f32 -1.442695, %v7042_v28  ;;  %v2324_v54 = vadd.f32 %v6918_v55, %v2297_v48  ;;  %v2295_v61 = vmul.f32 %v6913_v6, %v2247_v42 }
 0x1f0   : > { %v2687_v44 = vor.u32 %v2685_v32, %v2684_v4  ;;  %v2667_v47 = vrot.slane %v2665_v23, 7  ;;  %v2690_v31 = vshrl.u32 %v5423_v50, 16  ;;  %v2693_v60 = vshll.u32 %v5423_v50, 16 }
 0x1f1   : > { %v2458_v40 = vmul.f32 %v5649_v14, %v7019_v46  ;;  %5652 = vpow2.f32 %v5230_v62  ;;  %v5233_v53 = vmul.f32 -1.442695, %v2324_v54  ;;  %v2688_v29 = vrot.slane %v2684_v4, 4 }
 0x1f2   : > { %v2835_v5 = vsel %vm6961_vm12, %v2687_v44, %v2834_v24  ;;  %v2670_v16 = vor.u32 %v2668_v20, %v2667_v47  ;;  %v2692_v63 = vrot.slane %v2690_v31, 7  ;;  %v2322_v49 = vadd.f32 %v6918_v55, %v2295_v61 }
 0x1f3   : > { %2836 = vst [vmem:[#allocation2 + $0x3c] sm:$0xf] %v2835_v5  ;;  %v5421_v51 = vpack.c.bf16 %v2458_v40, %v2458_v40  ;;  %5654 = vpow2.f32 %v5233_v53  ;;  %v2671_v57 = vrot.slane %v2667_v47, 4  ;;  %v2841_v53 = vld [vmem:[#allocation2 + $0x48] sm:$0xf] }
 0x1f4   : > { %v2828_v43 = vsel %vm6961_vm12, %v2670_v16, %v2827_v33  ;;  %v2695_v11 = vor.u32 %v2693_v60, %v2692_v63  ;;  %v2697_v56 = vrot.slane %v2692_v63, 4  ;;  %v5231_v59 = vmul.f32 -1.442695, %v2322_v49 }
 0x1f5   : > { %2829 = vst [vmem:[#allocation2 + $0x30] sm:$0xf] %v2828_v43  ;;  %v2673_v21 = vshrl.u32 %v5421_v51, 16  ;;  %v2676_v45 = vshll.u32 %v5421_v51, 16 }
 0x1f6   : > { %v2696_v17 = vsel %vm6970_vm14, %v2688_v29, %v2695_v11  ;;  %v2839_v46 = vsel %vm6852_vm3, %v2697_v56, %v2838_v41  ;;  %5656 = vpow2.f32 %v5231_v59 }
 0x1f7   : > { %2837 = vst.msk [vmem:[#allocation2 + $0x40] sm:$0xf] %vm2796_vm11, %v2696_v17  ;;  %2840 = vst [vmem:[#allocation2 + $0x44] sm:$0x1] %v2839_v46  ;;  %v2675_v52 = vrot.slane %v2673_v21, 7 }
 0x1f8   : > { %v2852_v17 = vld [vmem:[#allocation2 + $0x5c] sm:$0x1] }
 0x1f9   : > { %v2678_v58 = vor.u32 %v2676_v45, %v2675_v52  ;;  %v2680_v26 = vrot.slane %v2675_v52, 4 }
 0x1fb   : > { %v2679_v30 = vsel %vm6970_vm14, %v2671_v57, %v2678_v58  ;;  %v2832_v8 = vsel %vm6852_vm3, %v2680_v26, %v2831_v25 }
 0x1fc   : > { %v5651_v34 = vpop.eup %5650  ;;  %2830 = vst.msk [vmem:[#allocation2 + $0x34] sm:$0xf] %vm2796_vm11, %v2679_v30  ;;  %2833 = vst [vmem:[#allocation2 + $0x38] sm:$0x1] %v2832_v8 }
 0x1fd   : > { %v2403_v38 = vadd.f32 1.0, %v5651_v34 }
 0x1fe   : > { %v5653_v27 = vpop.eup %5652 }
 0x1ff   : > { %5658 = vrcp.f32 %v2403_v38  ;;  %v2401_v35 = vadd.f32 1.0, %v5653_v27  ;;  %v2845_v27 = vld [vmem:[#allocation2 + $0x50] sm:$0x1] }
 0x200   : > { %v5655_v19 = vpop.eup %5654 }
 0x201   : > { %5660 = vrcp.f32 %v2401_v35  ;;  %v2404_v10 = vadd.f32 1.0, %v5655_v19 }
 0x203   : > { %5662 = vrcp.f32 %v2404_v10  ;;  %v5657_v7 = vpop.eup %5656 }
 0x204   : > { %v2402_v36 = vadd.f32 1.0, %v5657_v7 }
 0x206   : > { %5664 = vrcp.f32 %v2402_v36 }
 0x20c   : > { %v5659_v15 = vpop.eup %5658 }
 0x20d   : > { %v2463_v3 = vmul.f32 %v5659_v15, %v7037_v13 }
 0x20e   : > { %v5661_v1 = vpop.eup %5660  ;;  %v5486_v4 = vpop.f32.mrf.mxu0 }
 0x20f   : > { %v5426_v9 = vpack.c.bf16 %v2463_v3, %v2463_v3  ;;  %v2461_v22 = vmul.f32 %v5661_v1, %v7042_v28  ;;  %v2300_v23 = vmul.f32 %v5486_v4, %v6913_v6  ;;  %v2848_v28 = vld [vmem:[#allocation2 + $0x54] sm:$0xf] }
 0x210   : > { %v5663_v32 = vpop.eup %5662  ;;  %v2260_v48 = vpop.f32.mrf.mxu0 }
 0x211   : > { %v2716_v50 = vshrl.u32 %v5426_v9, 16  ;;  %v5424_v24 = vpack.c.bf16 %v2461_v22, %v2461_v22  ;;  %v2464_v12 = vmul.f32 %v5663_v32, %v2324_v54  ;;  %v7068_v44 = vadd.f32 %v6918_v55, %v2300_v23 }
 0x212   : > { %v2298_v47 = vmul.f32 %v6913_v6, %v2260_v48  ;;  %v2719_v31 = vshll.u32 %v5426_v9, 16  ;;  %v5487_v14 = vpop.f32.mrf.mxu0 }
 0x213   : > { %v2718_v20 = vrot.slane %v2716_v50, 7  ;;  %v2699_v13 = vshrl.u32 %v5424_v24, 16  ;;  %v5427_v42 = vpack.c.bf16 %v2464_v12, %v2464_v12  ;;  %v5665_v33 = vpop.eup %5664  ;;  %v5236_v62 = vmul.f32 -1.442695, %v7068_v44 }
 0x214   : > { %v2325_v5 = vadd.f32 %v6918_v55, %v2298_v47  ;;  %v2301_v16 = vmul.f32 %v5487_v14, %v6913_v6  ;;  %v2702_v60 = vshll.u32 %v5424_v24, 16  ;;  %v2263_v40 = vpop.f32.mrf.mxu0  ;;  %v2462_v61 = vmul.f32 %v5665_v33, %v2322_v49 }
 0x215   : > { %v2721_v54 = vor.u32 %v2719_v31, %v2718_v20  ;;  %v2701_v63 = vrot.slane %v2699_v13, 7  ;;  %v2724_v41 = vshrl.u32 %v5427_v42, 16  ;;  %5666 = vpow2.f32 %v5236_v62  ;;  %v2862_v62 = vld [vmem:[#allocation2 + $0x6c] sm:$0xf] }
 0x216   : > { %v5234_v29 = vmul.f32 -1.442695, %v2325_v5  ;;  %v2727_v51 = vshll.u32 %v5427_v42, 16  ;;  %v5425_v46 = vpack.c.bf16 %v2462_v61, %v2462_v61  ;;  %v2328_v21 = vadd.f32 %v6918_v55, %v2301_v16 }
 0x217   : > { %v2849_v43 = vsel %vm6961_vm12, %v2721_v54, %v2848_v28  ;;  %v2704_v11 = vor.u32 %v2702_v60, %v2701_v63  ;;  %v2726_v56 = vrot.slane %v2724_v41, 7  ;;  %v2299_v59 = vmul.f32 %v6913_v6, %v2263_v40  ;;  %v2855_v41 = vld [vmem:[#allocation2 + $0x60] sm:$0xf] }
 0x218   : > { %2850 = vst [vmem:[#allocation2 + $0x54] sm:$0xf] %v2849_v43  ;;  %5668 = vpow2.f32 %v5234_v29  ;;  %v2722_v52 = vrot.slane %v2718_v20, 4  ;;  %v2707_v57 = vshrl.u32 %v5425_v46, 16  ;;  %v5237_v58 = vmul.f32 -1.442695, %v2328_v21 }
 0x219   : > { %v2842_v49 = vsel %vm6961_vm12, %v2704_v11, %v2841_v53  ;;  %v2729_v45 = vor.u32 %v2727_v51, %v2726_v56  ;;  %v2731_v25 = vrot.slane %v2726_v56, 4  ;;  %v2326_v26 = vadd.f32 %v6918_v55, %v2299_v59  ;;  %v2866_v56 = vld [vmem:[#allocation2 + $0x74] sm:$0x1] }
 0x21a   : > { %2843 = vst [vmem:[#allocation2 + $0x48] sm:$0xf] %v2842_v49  ;;  %v2709_v6 = vrot.slane %v2707_v57, 7  ;;  %v2710_v34 = vshll.u32 %v5425_v46, 16  ;;  %5670 = vpow2.f32 %v5237_v58  ;;  %v2705_v35 = vrot.slane %v2701_v63, 4 }
 0x21b   : > { %v2730_v30 = vsel %vm6970_vm14, %v2722_v52, %v2729_v45  ;;  %v2853_v8 = vsel %vm6852_vm3, %v2731_v25, %v2852_v17  ;;  %v5235_v38 = vmul.f32 -1.442695, %v2326_v26  ;;  %v2859_v25 = vld [vmem:[#allocation2 + $0x68] sm:$0x1] }
 0x21c   : > { %2851 = vst.msk [vmem:[#allocation2 + $0x58] sm:$0xf] %vm2796_vm11, %v2730_v30  ;;  %2854 = vst [vmem:[#allocation2 + $0x5c] sm:$0x1] %v2853_v8  ;;  %v2712_v19 = vor.u32 %v2710_v34, %v2709_v6  ;;  %v2714_v10 = vrot.slane %v2709_v6, 4 }
 0x21d   : > { %5672 = vpow2.f32 %v5235_v38 }
 0x21e   : > { %v2713_v55 = vsel %vm6970_vm14, %v2705_v35, %v2712_v19  ;;  %v2846_v7 = vsel %vm6852_vm3, %v2714_v10, %v2845_v27 }
 0x21f   : > { %2844 = vst.msk [vmem:[#allocation2 + $0x4c] sm:$0xf] %vm2796_vm11, %v2713_v55  ;;  %2847 = vst [vmem:[#allocation2 + $0x50] sm:$0x1] %v2846_v7 }
 0x222   : > { %v5667_v36 = vpop.eup %5666 }
 0x223   : > { %v2407_v15 = vadd.f32 1.0, %v5667_v36 }
 0x225   : > { %v5669_v3 = vpop.eup %5668  ;;  %5674 = vrcp.f32 %v2407_v15 }
 0x226   : > { %v2405_v1 = vadd.f32 1.0, %v5669_v3 }
 0x227   : > { %v5671_v9 = vpop.eup %5670 }
 0x228   : > { %5676 = vrcp.f32 %v2405_v1  ;;  %v2408_v22 = vadd.f32 1.0, %v5671_v9 }
 0x22a   : > { %v5673_v4 = vpop.eup %5672  ;;  %5678 = vrcp.f32 %v2408_v22 }
 0x22b   : > { %v2406_v32 = vadd.f32 1.0, %v5673_v4 }
 0x22d   : > { %5680 = vrcp.f32 %v2406_v32 }
 0x232   : > { %v5675_v23 = vpop.eup %5674 }
 0x233   : > { %v2467_v50 = vmul.f32 %v5675_v23, %v7068_v44 }
 0x235   : > { %v5677_v24 = vpop.eup %5676  ;;  %v5430_v12 = vpack.c.bf16 %v2467_v50, %v2467_v50 }
 0x236   : > { %v2465_v48 = vmul.f32 %v5677_v24, %v2325_v5 }
 0x237   : > { %v2750_v47 = vshrl.u32 %v5430_v12, 16  ;;  %v5679_v31 = vpop.eup %5678  ;;  %v2753_v42 = vshll.u32 %v5430_v12, 16 }
 0x238   : > { %v5428_v20 = vpack.c.bf16 %v2465_v48, %v2465_v48  ;;  %v2468_v33 = vmul.f32 %v5679_v31, %v2328_v21 }
 0x239   : > { %v2752_v13 = vrot.slane %v2750_v47, 7 }
 0x23a   : > { %v2733_v14 = vshrl.u32 %v5428_v20, 16  ;;  %v5681_v28 = vpop.eup %5680  ;;  %v2736_v63 = vshll.u32 %v5428_v20, 16  ;;  %v5431_v60 = vpack.c.bf16 %v2468_v33, %v2468_v33 }
 0x23b   : > { %v2755_v16 = vor.u32 %v2753_v42, %v2752_v13  ;;  %v2466_v40 = vmul.f32 %v5681_v28, %v2326_v26  ;;  %v2756_v17 = vrot.slane %v2752_v13, 4 }
 0x23c   : > { %v2735_v54 = vrot.slane %v2733_v14, 7  ;;  %v2758_v5 = vshrl.u32 %v5431_v60, 16  ;;  %v2761_v11 = vshll.u32 %v5431_v60, 16 }
 0x23d   : > { %v2863_v44 = vsel %vm6961_vm12, %v2755_v16, %v2862_v62  ;;  %v5429_v61 = vpack.c.bf16 %v2466_v40, %v2466_v40 }
 0x23e   : > { %v2738_v53 = vor.u32 %v2736_v63, %v2735_v54  ;;  %2864 = vst [vmem:[#allocation2 + $0x6c] sm:$0xf] %v2863_v44  ;;  %v2760_v43 = vrot.slane %v2758_v5, 7  ;;  %v2739_v57 = vrot.slane %v2735_v54, 4 }
 0x23f   : > { %v2741_v51 = vshrl.u32 %v5429_v61, 16  ;;  %v2744_v52 = vshll.u32 %v5429_v61, 16 }
 0x240   : > { %v2856_v29 = vsel %vm6961_vm12, %v2738_v53, %v2855_v41  ;;  %v2763_v46 = vor.u32 %v2761_v11, %v2760_v43  ;;  %v2765_v21 = vrot.slane %v2760_v43, 4 }
 0x241   : > { %2857 = vst [vmem:[#allocation2 + $0x60] sm:$0xf] %v2856_v29  ;;  %v2743_v59 = vrot.slane %v2741_v51, 7 }
 0x242   : > { %v2764_v49 = vsel %vm6970_vm14, %v2756_v17, %v2763_v46  ;;  %v2867_v45 = vsel %vm6852_vm3, %v2765_v21, %v2866_v56  ;;  %2872 = sbr.rel (%p5258_p7) target bundleno = 586 (0x24a), region = 52 }
 0x243   : > { %2865 = vst.msk [vmem:[#allocation2 + $0x70] sm:$0xf] %vm2796_vm11, %v2764_v49  ;;  %2868 = vst [vmem:[#allocation2 + $0x74] sm:$0x1] %v2867_v45  ;;  %v2746_v2 = vor.u32 %v2744_v52, %v2743_v59  ;;  %v2748_v58 = vrot.slane %v2743_v59, 4 }
 0x245   : > { %v2747_v26 = vsel %vm6970_vm14, %v2739_v57, %v2746_v2  ;;  %v2860_v30 = vsel %vm6852_vm3, %v2748_v58, %v2859_v25 }
 0x246   : > { %2858 = vst.msk [vmem:[#allocation2 + $0x64] sm:$0xf] %vm2796_vm11, %v2747_v26  ;;  %2861 = vst [vmem:[#allocation2 + $0x68] sm:$0x1] %v2860_v30 }
 0x247   : > { %v5848_v8 = vmov 0  }
 0x248   : > { %2873 = vst.msk [vmem:[#allocation2] sm:$0xf] %vm2796_vm11, %v5848_v8  ;;  %2874 = vst.msk [vmem:[#allocation2 + $0x4] sm:$0xf] %vm2796_vm11, %v5848_v8 }
 0x249   : > { %2876 = vst.msk [vmem:[#allocation2 + $0x8] sm:$0x1] %vm2469_vm0, %v5848_v8 }
 0x24a PF: > { %p5259_p8 = scmp.ne.s32.totalorder %s5822_s24, 1 }
 0x24c   : > { %2880 = sbr.rel (%p5259_p8) target bundleno = 596 (0x254), region = 56 }
 0x251   : > { %v5849_v18 = vmov 0  }
 0x252   : > { %2882 = vst.msk [vmem:[#allocation2 + $0x6c] sm:$0xf] %vm2796_vm11, %v5849_v18  ;;  %2883 = vst.msk [vmem:[#allocation2 + $0x70] sm:$0xf] %vm2796_vm11, %v5849_v18 }
 0x253   : > { %2885 = vst.msk [vmem:[#allocation2 + $0x74] sm:$0x1] %vm2469_vm0, %v5849_v18 }
 0x254 PF: > { %v3193_v0 = vld [vmem:[#allocation2 + $0x18] sm:$0xf]  ;;  %v7114_v6 = vld [vmem:[#allocation2 + $0x1c] sm:$0xf]  ;;  %v3191_v35 = vld [vmem:[#allocation2 + $0xc] sm:$0xf] }
 0x255   : > { %v5309_v34 = vcombine.low %v3193_v0, %v7114_v6  ;;  %v3240_v38 = vshrl.u32 %v3193_v0, 16  ;;  %v3243_v27 = vshll.u32 %v3193_v0, 16  ;;  %v7117_v19 = vld [vmem:[#allocation2 + $0x10] sm:$0xf]  ;;  %v3216_v55 = vshrl.u32 %v3191_v35, 16  ;;  %s5850_s24 = smov 12  }
 0x256   : > { %v5308_v10 = vcombine.low %v3191_v35, %v7117_v19  ;;  %v3219_v7 = vshll.u32 %v3191_v35, 16  ;;  %v2887_v36 = vld [vmem:[#allocation2 + $0x4] sm:$0xf]  ;;  %v2902_v15 = vld [vmem:[#allocation2 + $0x8] sm:$0x1]  ;;  %v3249_v52 = vshll.u32 %v7114_v6, 16 }
 0x257   : > { %3946 = vrot.lane.b32.xlu1 %v5309_v34, %s5850_s24  ;;  %v3242_v3 = vrot.slane %v3240_v38, 4  ;;  %v3245_v1 = vrot.slane %v3243_v27, 5  ;;  %v2930_v9 = vshll.u32 %v2902_v15, 16  ;;  %v3102_v22 = vld [vmem:[#allocation2] sm:$0xe]  ;;  %v3136_v4 = vrot.slane %v2887_v36, 5 }
 0x258   : > { %3944 = vrot.lane.b32.xlu0 %v5308_v10, %s5850_s24  ;;  %v7122_v32 = vrot.slane %v3216_v55, 4  ;;  %v7124_v23 = vrot.slane %v3219_v7, 5  ;;  %v5260_v50 = vrot.slane %v3102_v22, 9  ;;  %v3139_v24 = vrot.slane %v2902_v15, 5  ;;  %v2889_v12 = vld [vmem:[#allocation2 + $0x10] sm:$0xf] }
 0x259   : > { %v3138_v48 = vrot.slane %v3136_v4, 4  ;;  %v2903_v47 = vld [vmem:[#allocation2 + $0x14] sm:$0x1]  ;;  %v3103_v20 = vld [vmem:[#allocation2 + $0xc] sm:$0xe]  ;;  %v3143_v31 = vrot.slane %v2889_v12, 5  ;;  %v3246_v13 = vor.u32 %v3245_v1, %v3242_v3 }
 0x25a   : > { %v3137_v42 = vsel %vm5980_vm2, %v5260_v50, %v3136_v4  ;;  %v2954_v14 = vshll.u32 %v2903_v47, 16  ;;  %v5261_v33 = vrot.slane %v3103_v20, 9  ;;  %v3146_v28 = vrot.slane %v2903_v47, 5  ;;  %v2886_v62 = vld [vmem:[#allocation2] sm:$0xf]  ;;  %s5851_s16 = smov 4  }
 0x25b   : > { %v3140_v16 = vsel %vm5980_vm2, %v3138_v48, %v3139_v24  ;;  %v3145_v54 = vrot.slane %v3143_v31, 4  ;;  %v2911_v63 = vshrl.u32 %v2886_v62, 16  ;;  %v2914_v60 = vshll.u32 %v2886_v62, 16  ;;  %v3208_v5 = vld [vmem:[#allocation2 + $0x20] sm:$0x1]  ;;  %s5852_s17 = smov 20  }
 0x25c   : > { %v5300_v41 = vcombine.low %v3137_v42, %v3140_v16  ;;  %v3144_v40 = vsel %vm5980_vm2, %v5261_v33, %v3143_v31  ;;  %v2920_v44 = vshll.u32 %v2887_v36, 16  ;;  %v2924_v53 = vshrl.u32 %v2887_v36, 16  ;;  %v2888_v56 = vld [vmem:[#allocation2 + $0xc] sm:$0xf]  ;;  %v3408_v0 = vld [vmem:[#allocation2 + $0x18] sm:$0xe] }
 0x25d   : > { %v3147_v61 = vsel %vm5980_vm2, %v3145_v54, %v3146_v28  ;;  %v2913_v29 = vrot.slane %v2911_v63, 4  ;;  %v2916_v43 = vrot.slane %v2914_v60, 5  ;;  %v2932_v11 = vrot.slane %v2930_v9, 5  ;;  %v3207_v20 = vld [vmem:[#allocation2 + $0x14] sm:$0x1]  ;;  %s5853_s19 = smov 28  }
 0x25e   : > { %3896 = vrot.lane.b32.xlu1 %v5300_v41, %s5844_s9  ;;  %v5301_v51 = vcombine.low %v3144_v40, %v3147_v61  ;;  %v2922_v17 = vrot.slane %v2920_v44, 5  ;;  %v2926_v46 = vrot.slane %v2924_v53, 4  ;;  %v3247_v21 = vrot.slane %v3246_v13, 4  ;;  %v3407_v61 = vld [vmem:[#allocation2 + $0xc] sm:$0xe]  ;;  %v5718_v37 = vld [vmem:[%s7909_s4] sm:$0xff]  }
 0x25f   : > { %v2917_v59 = vor.u32 %v2916_v43, %v2913_v29  ;;  %v3253_v49 = vshrl.u32 %v7114_v6, 16  ;;  %v3259_v45 = vshll.u32 %v3208_v5, 16  ;;  %v2935_v57 = vshrl.u32 %v2888_v56, 16 }
 0x260   : > { %v2927_v25 = vor.u32 %v2926_v46, %v2922_v17  ;;  %v2938_v2 = vshll.u32 %v2888_v56, 16  ;;  %v2944_v58 = vshll.u32 %v2889_v12, 16  ;;  %v3251_v30 = vrot.slane %v3249_v52, 5  ;;  %v7169_v52 = vld [vmem:[#allocation2 + $0x18] sm:$0xf] }
 0x261   : > { %v2918_v26 = vrot.slane %v2917_v59, 4  ;;  %v3255_v8 = vrot.slane %v3253_v49, 4  ;;  %v3261_v18 = vrot.slane %v3259_v45, 5  ;;  %v2937_v38 = vrot.slane %v2935_v57, 4 }
 0x262   : > { %3898 = vrot.lane.b32.xlu1 %v5301_v51, %s5844_s9  ;;  %v2928_v34 = vrot.slane %v2927_v25, 4  ;;  %v2940_v27 = vrot.slane %v2938_v2, 5  ;;  %v2946_v35 = vrot.slane %v2944_v58, 5  ;;  %v3252_v55 = vsel %vm6027_vm5, %v3247_v21, %v3251_v30  ;;  %v7166_v51 = vld [vmem:[#allocation2 + $0x2c] sm:$0x1] }
 0x263   : > { %v2923_v10 = vsel %vm6027_vm5, %v2918_v26, %v2922_v17  ;;  %v3256_v7 = vor.u32 %v3255_v8, %v3251_v30  ;;  %v2948_v36 = vshrl.u32 %v2889_v12, 16  ;;  %v2956_v1 = vrot.slane %v2954_v14, 5  ;;  %v7176_v8 = vld [vmem:[#allocation2 + $0x1c] sm:$0xf] }
 0x264   : > { %v2933_v15 = vsel %vm6027_vm5, %v2928_v34, %v2932_v11  ;;  %v2941_v3 = vor.u32 %v2940_v27, %v2937_v38  ;;  %v5269_v9 = vrot.slane %v3408_v0, 9  ;;  %v3448_v24 = vrot.slane %v7114_v6, 5  ;;  %v3498_v6 = vld [vmem:[#allocation2 + $0x24] sm:$0xf] }
 0x265   : > { %v5292_v22 = vcombine.low %v2923_v10, %v2933_v15  ;;  %v3257_v4 = vrot.slane %v3256_v7, 4  ;;  %v2950_v50 = vrot.slane %v2948_v36, 4  ;;  %v3451_v47 = vrot.slane %v3208_v5, 5 }
 0x266   : > { %v2942_v48 = vrot.slane %v2941_v3, 4  ;;  %v3222_v31 = vor.u32 %v7124_v23, %v7122_v32  ;;  %v3225_v13 = vshll.u32 %v7117_v19, 16  ;;  %v3449_v14 = vsel %vm5980_vm2, %v5269_v9, %v3448_v24  ;;  %v7155_v23 = vld [vmem:[#allocation2 + $0x28] sm:$0xf]  ;;  %v7189_v9 = vld [vmem:[#allocation2 + $0x20] sm:$0x1] }
 0x267   : > { %3856 = vrot.lane.b32.xlu0 %v5292_v22, %s5851_s16  ;;  %v3262_v12 = vsel %vm6027_vm5, %v3257_v4, %v3261_v18  ;;  %v2951_v42 = vor.u32 %v2950_v50, %v2946_v35  ;;  %v3450_v33 = vrot.slane %v3448_v24, 4  ;;  %v3229_v60 = vshrl.u32 %v7117_v19, 16 }
 0x268   : > { %v5317_v28 = vcombine.low %v3252_v55, %v3262_v12  ;;  %v2947_v62 = vsel %vm6027_vm5, %v2942_v48, %v2946_v35  ;;  %v3223_v16 = vrot.slane %v3222_v31, 4  ;;  %v3227_v32 = vrot.slane %v3225_v13, 5  ;;  %v2890_v55 = vld [vmem:[#allocation2 + $0x18] sm:$0xf] }
 0x269   : > { %v2952_v54 = vrot.slane %v2951_v42, 4  ;;  %v3452_v63 = vsel %vm5980_vm2, %v3450_v33, %v3451_v47  ;;  %v3235_v41 = vshll.u32 %v3207_v20, 16  ;;  %v3545_v53 = vshrl.u32 %v3498_v6, 16  ;;  %v7200_v33 = vld [vmem:[#allocation2 + $0x20] sm:$0x1] }
 0x26a   : > { %3986 = vrot.lane.b32.xlu1 %v5317_v28, %s5843_s8  ;;  %v5325_v40 = vcombine.low %v3449_v14, %v3452_v63  ;;  %v3228_v44 = vsel %vm6027_vm5, %v3223_v16, %v3227_v32  ;;  %v3548_v5 = vshll.u32 %v3498_v6, 16  ;;  %v3231_v43 = vrot.slane %v3229_v60, 4 }
 0x26b   : > { %v2957_v29 = vsel %vm6027_vm5, %v2952_v54, %v2956_v1  ;;  %v3237_v11 = vrot.slane %v3235_v41, 5  ;;  %v3558_v56 = vshrl.u32 %v7155_v23, 16  ;;  %v3547_v46 = vrot.slane %v3545_v53, 4  ;;  %v7187_v1 = vld [vmem:[#allocation2 + $0x1c] sm:$0xf] }
 0x26c   : > { %v5293_v17 = vcombine.low %v2947_v62, %v2957_v29  ;;  %v3550_v21 = vrot.slane %v3548_v5, 5  ;;  %v5333_v59 = vcombine.low %v3498_v6, %v7155_v23  ;;  %v3232_v49 = vor.u32 %v3231_v43, %v3227_v32  ;;  %v2892_v32 = vld [vmem:[#allocation2 + $0x24] sm:$0xf] }
 0x26d   : > { %v5268_v45 = vrot.slane %v3407_v61, 9  ;;  %v3441_v25 = vrot.slane %v7117_v19, 5  ;;  %v3444_v57 = vrot.slane %v3207_v20, 5  ;;  %v3554_v58 = vshll.u32 %v7155_v23, 16 }
 0x26e   : > { %3858 = vrot.lane.b32.xlu0 %v5293_v17, %s5851_s16  ;;  %4026 = vrot.lane.b32.xlu1 %v5325_v40, %s5852_s17  ;;  %v3551_v2 = vor.u32 %v3550_v21, %v3547_v46  ;;  %v3560_v26 = vrot.slane %v3558_v56, 4  ;;  %v3564_v30 = vshll.u32 %v7166_v51, 16  ;;  %v3233_v18 = vrot.slane %v3232_v49, 4  ;;  %v2893_v40 = vld [vmem:[#allocation2 + $0x28] sm:$0xf] }
 0x26f   : > { %v3442_v0 = vsel %vm5980_vm2, %v5268_v45, %v3441_v25  ;;  %v3443_v34 = vrot.slane %v3441_v25, 4  ;;  %v3521_v19 = vshrl.u32 %v7169_v52, 16  ;;  %v3556_v27 = vrot.slane %v3554_v58, 5  ;;  %v2905_v56 = vld [vmem:[#allocation2 + $0x2c] sm:$0x1] }
 0x270   : > { %v3552_v38 = vrot.slane %v3551_v2, 4  ;;  %v3566_v35 = vrot.slane %v3564_v30, 5  ;;  %v3524_v10 = vshll.u32 %v7169_v52, 16  ;;  %v3238_v7 = vsel %vm6027_vm5, %v3233_v18, %v3237_v11  ;;  %v3712_v49 = vld [vmem:[#allocation2 + $0x18] sm:$0xe] }
 0x271   : > { %v3445_v36 = vsel %vm5980_vm2, %v3443_v34, %v3444_v57  ;;  %v3523_v15 = vrot.slane %v3521_v19, 4  ;;  %v3534_v3 = vshrl.u32 %v7176_v8, 16  ;;  %v5316_v22 = vcombine.low %v3228_v44, %v3238_v7 }
 0x272   : > { %4074 = vrot.lane.b32.xlu1 %v5333_v59, %s5840_s22  ;;  %v5324_v4 = vcombine.low %v3442_v0, %v3445_v36  ;;  %v3557_v50 = vsel %vm6027_vm5, %v3552_v38, %v3556_v27  ;;  %v3561_v24 = vor.u32 %v3560_v26, %v3556_v27  ;;  %v3526_v48 = vrot.slane %v3524_v10, 5  ;;  %v3105_v0 = vld [vmem:[#allocation2 + $0x24] sm:$0xe] }
 0x273   : > { %v5332_v47 = vcombine.low %v7169_v52, %v7176_v8  ;;  %v2959_v20 = vshrl.u32 %v2890_v55, 16  ;;  %v2962_v31 = vshll.u32 %v2890_v55, 16  ;;  %3984 = vrot.lane.b32.xlu0 %v5316_v22, %s5843_s8  ;;  %v2968_v12 = vshll.u32 %v7187_v1, 16  ;;  %v3713_v36 = vld [vmem:[#allocation2 + $0x24] sm:$0xe] }
 0x274   : > { %v3562_v13 = vrot.slane %v3561_v24, 4  ;;  %v2972_v42 = vshrl.u32 %v7187_v1, 16  ;;  %v2978_v14 = vshll.u32 %v7189_v9, 16  ;;  %v3527_v62 = vor.u32 %v3526_v48, %v3523_v15 }
 0x275   : > { %v2961_v6 = vrot.slane %v2959_v20, 4  ;;  %v2964_v28 = vrot.slane %v2962_v31, 5  ;;  %v3530_v16 = vshll.u32 %v7176_v8, 16  ;;  %v2970_v63 = vrot.slane %v2968_v12, 5  ;;  %v7222_v20 = vld [vmem:[#allocation2 + $0x30] sm:$0xf] }
 0x276   : > { %v3567_v54 = vsel %vm6027_vm5, %v3562_v13, %v3566_v35  ;;  %v2974_v60 = vrot.slane %v2972_v42, 4  ;;  %v2980_v41 = vrot.slane %v2978_v14, 5  ;;  %v3528_v5 = vrot.slane %v3527_v62, 4  ;;  %v7224_v42 = vld [vmem:[#allocation2 + $0x34] sm:$0xf] }
 0x277   : > { %v5341_v44 = vcombine.low %v3557_v50, %v3567_v54  ;;  %v2965_v53 = vor.u32 %v2964_v28, %v2961_v6  ;;  %v3532_v61 = vrot.slane %v3530_v16, 5  ;;  %4024 = vrot.lane.b32.xlu0 %v5324_v4, %s5852_s17  ;;  %v3536_v43 = vrot.slane %v3534_v3, 4  ;;  %v3104_v62 = vld [vmem:[#allocation2 + $0x18] sm:$0xe] }
 0x278   : > { %v2975_v29 = vor.u32 %v2974_v60, %v2970_v63  ;;  %v3540_v11 = vshll.u32 %v7200_v33, 16  ;;  %v2983_v17 = vshrl.u32 %v2892_v32, 16  ;;  %v2986_v59 = vshll.u32 %v2892_v32, 16 }
 0x279   : > { %4114 = vrot.lane.b32.xlu1 %v5341_v44, %s5853_s19  ;;  %v2966_v46 = vrot.slane %v2965_v53, 4  ;;  %v3533_v21 = vsel %vm6027_vm5, %v3528_v5, %v3532_v61  ;;  %v2992_v52 = vshll.u32 %v2893_v40, 16  ;;  %v3537_v25 = vor.u32 %v3536_v43, %v3532_v61  ;;  %v3210_v61 = vld [vmem:[#allocation2 + $0x38] sm:$0x1] }
 0x27a   : > { %v2976_v45 = vrot.slane %v2975_v29, 4  ;;  %v3542_v57 = vrot.slane %v3540_v11, 5  ;;  %v2985_v2 = vrot.slane %v2983_v17, 4  ;;  %v2988_v26 = vrot.slane %v2986_v59, 5  ;;  %v3410_v17 = vld [vmem:[#allocation2 + $0x30] sm:$0xe] }
 0x27b   : > { %v2971_v58 = vsel %vm6027_vm5, %v2966_v46, %v2970_v63  ;;  %v2994_v30 = vrot.slane %v2992_v52, 5  ;;  %v2996_v18 = vshrl.u32 %v2893_v40, 16  ;;  %4072 = vrot.lane.b32.xlu0 %v5332_v47, %s5840_s22  ;;  %v3538_v19 = vrot.slane %v3537_v25, 4  ;;  %v3195_v52 = vld [vmem:[#allocation2 + $0x24] sm:$0xf] }
 0x27c   : > { %v2981_v34 = vsel %vm6027_vm5, %v2976_v45, %v2980_v41  ;;  %v3002_v38 = vshll.u32 %v2905_v56, 16  ;;  %v5276_v27 = vrot.slane %v3712_v49, 9  ;;  %v2989_v10 = vor.u32 %v2988_v26, %v2985_v2 }
 0x27d   : > { %v5294_v35 = vcombine.low %v2971_v58, %v2981_v34  ;;  %v2998_v55 = vrot.slane %v2996_v18, 4  ;;  %v3746_v7 = vrot.slane %v7176_v8, 5  ;;  %v3543_v15 = vsel %vm6027_vm5, %v3538_v19, %v3542_v57 }
 0x27e   : > { %v3004_v3 = vrot.slane %v3002_v38, 5  ;;  %v3749_v22 = vrot.slane %v7200_v33, 5  ;;  %v5263_v4 = vrot.slane %v3105_v0, 9  ;;  %v5340_v50 = vcombine.low %v3533_v21, %v3543_v15 }
 0x27f   : > { %3860 = vrot.lane.b32.xlu1 %v5294_v35, %s5851_s16  ;;  %v2990_v24 = vrot.slane %v2989_v10, 4  ;;  %v2999_v48 = vor.u32 %v2998_v55, %v2994_v30  ;;  %v3747_v47 = vsel %vm5980_vm2, %v5276_v27, %v3746_v7  ;;  %v3748_v31 = vrot.slane %v3746_v7, 4  ;;  %v3209_v10 = vld [vmem:[#allocation2 + $0x2c] sm:$0x1] }
 0x280   : > { %v3157_v8 = vrot.slane %v2893_v40, 5  ;;  %v3160_v13 = vrot.slane %v2905_v56, 5  ;;  %v5277_v12 = vrot.slane %v3713_v36, 9  ;;  %4112 = vrot.lane.b32.xlu0 %v5340_v50, %s5853_s19  ;;  %v3753_v6 = vrot.slane %v7155_v23, 5 }
 0x281   : > { %v2995_v14 = vsel %vm6027_vm5, %v2990_v24, %v2994_v30  ;;  %v3000_v33 = vrot.slane %v2999_v48, 4  ;;  %v3756_v28 = vrot.slane %v7166_v51, 5  ;;  %v3750_v16 = vsel %vm5980_vm2, %v3748_v31, %v3749_v22  ;;  %v7265_v22 = vld [vmem:[#allocation2 + $0x3c] sm:$0xf] }
 0x282   : > { %v3158_v32 = vsel %vm5980_vm2, %v5263_v4, %v3157_v8  ;;  %v3159_v54 = vrot.slane %v3157_v8, 4  ;;  %v5311_v63 = vcombine.low %v7222_v20, %v7224_v42  ;;  %v5348_v41 = vcombine.low %v3747_v47, %v3750_v16 }
 0x283   : > { %v3005_v60 = vsel %vm6027_vm5, %v3000_v33, %v3004_v3  ;;  %v3754_v23 = vsel %vm5980_vm2, %v5277_v12, %v3753_v6  ;;  %v3755_v40 = vrot.slane %v3753_v6, 4  ;;  %v5262_v53 = vrot.slane %v3104_v62, 9 }
 0x284   : > { %v5295_v51 = vcombine.low %v2995_v14, %v3005_v60  ;;  %v3161_v44 = vsel %vm5980_vm2, %v3159_v54, %v3160_v13  ;;  %v3150_v5 = vrot.slane %v7187_v1, 5  ;;  %4152 = vrot.lane.b32.xlu0 %v5348_v41, %s5845_s10  ;;  %v3153_v11 = vrot.slane %v7189_v9, 5  ;;  %v7255_v9 = vld [vmem:[#allocation2 + $0x28] sm:$0xf]  ;;  %v7275_v14 = vld [vmem:[#allocation2 + $0x40] sm:$0xf] }
 0x285   : > { %v5303_v29 = vcombine.low %v3158_v32, %v3161_v44  ;;  %v3757_v43 = vsel %vm5980_vm2, %v3755_v40, %v3756_v28  ;;  %v3288_v56 = vshrl.u32 %v7222_v20, 16  ;;  %v3291_v1 = vshll.u32 %v7222_v20, 16  ;;  %v3409_v32 = vld [vmem:[#allocation2 + $0x24] sm:$0xe] }
 0x286   : > { %3862 = vrot.lane.b32.xlu1 %v5295_v51, %s5851_s16  ;;  %v5349_v46 = vcombine.low %v3754_v23, %v3757_v43  ;;  %v3151_v21 = vsel %vm5980_vm2, %v5262_v53, %v3150_v5  ;;  %v3152_v59 = vrot.slane %v3150_v5, 4  ;;  %v3297_v45 = vshll.u32 %v7224_v42, 16  ;;  %v7285_v53 = vld [vmem:[#allocation2 + $0x44] sm:$0x1] }
 0x287   : > { %v3290_v49 = vrot.slane %v3288_v56, 4  ;;  %v3301_v25 = vshrl.u32 %v7224_v42, 16  ;;  %v3307_v57 = vshll.u32 %v3210_v61, 16  ;;  %v3293_v58 = vrot.slane %v3291_v1, 5 }
 0x288   : > { %v3154_v2 = vsel %vm5980_vm2, %v3152_v59, %v3153_v11  ;;  %v5310_v26 = vcombine.low %v3195_v52, %v7255_v9  ;;  %v5271_v30 = vrot.slane %v3410_v17, 9  ;;  %4154 = vrot.lane.b32.xlu0 %v5349_v46, %s5845_s10  ;;  %v3299_v0 = vrot.slane %v3297_v45, 5  ;;  %v3500_v11 = vld [vmem:[#allocation2 + $0x30] sm:$0xf]  ;;  %v7294_v59 = vld [vmem:[#allocation2 + $0x34] sm:$0xf] }
 0x289   : > { %v5302_v18 = vcombine.low %v3151_v21, %v3154_v2  ;;  %v3303_v34 = vrot.slane %v3301_v25, 4  ;;  %v3309_v19 = vrot.slane %v3307_v57, 5  ;;  %v3294_v38 = vor.u32 %v3293_v58, %v3290_v49  ;;  %v2894_v58 = vld [vmem:[#allocation2 + $0x30] sm:$0xf] }
 0x28a   : > { %3902 = vrot.lane.b32.xlu1 %v5303_v29, %s5844_s9  ;;  %v3462_v27 = vrot.slane %v7224_v42, 5  ;;  %v3465_v35 = vrot.slane %v3210_v61, 5  ;;  %v3264_v55 = vshrl.u32 %v3195_v52, 16  ;;  %v3267_v36 = vshll.u32 %v3195_v52, 16 }
 0x28b   : > { %v3304_v7 = vor.u32 %v3303_v34, %v3299_v0  ;;  %v3273_v15 = vshll.u32 %v7255_v9, 16  ;;  %v3277_v3 = vshrl.u32 %v7255_v9, 16  ;;  %v3295_v4 = vrot.slane %v3294_v38, 4  ;;  %v7305_v34 = vld [vmem:[#allocation2 + $0x34] sm:$0xf] }
 0x28c   : > { %v3463_v50 = vsel %vm5980_vm2, %v5271_v30, %v3462_v27  ;;  %v3464_v24 = vrot.slane %v3462_v27, 4  ;;  %v3266_v48 = vrot.slane %v3264_v55, 4  ;;  %3900 = vrot.lane.b32.xlu0 %v5302_v18, %s5844_s9  ;;  %v3269_v20 = vrot.slane %v3267_v36, 5 }
 0x28d   : > { %v3305_v47 = vrot.slane %v3304_v7, 4  ;;  %v3275_v31 = vrot.slane %v3273_v15, 5  ;;  %v3279_v8 = vrot.slane %v3277_v3, 4  ;;  %v3300_v13 = vsel %vm6027_vm5, %v3295_v4, %v3299_v0  ;;  %v7311_v3 = vld [vmem:[#allocation2 + $0x38] sm:$0x1] }
 0x28e   : > { %3950 = vrot.lane.b32.xlu1 %v5311_v63, %s5850_s24  ;;  %v3466_v12 = vsel %vm5980_vm2, %v3464_v24, %v3465_v35  ;;  %v3283_v42 = vshll.u32 %v3209_v10, 16  ;;  %v3593_v33 = vshrl.u32 %v7265_v22, 16  ;;  %v3270_v62 = vor.u32 %v3269_v20, %v3266_v48 }
 0x28f   : > { %v3310_v6 = vsel %vm6027_vm5, %v3305_v47, %v3309_v19  ;;  %v5327_v28 = vcombine.low %v3463_v50, %v3466_v12  ;;  %v3280_v16 = vor.u32 %v3279_v8, %v3275_v31  ;;  %v3596_v41 = vshll.u32 %v7265_v22, 16  ;;  %v7307_v19 = vld [vmem:[#allocation2 + $0x38] sm:$0x1]  ;;  %v7316_v47 = vld [vmem:[#allocation2 + $0x40] sm:$0xf] }
 0x290   : > { %v5319_v54 = vcombine.low %v3300_v13, %v3310_v6  ;;  %v3285_v63 = vrot.slane %v3283_v42, 5  ;;  %v3595_v60 = vrot.slane %v3593_v33, 4  ;;  %3948 = vrot.lane.b32.xlu0 %v5310_v26, %s5850_s24  ;;  %v3271_v23 = vrot.slane %v3270_v62, 4 }
 0x291   : > { %v3281_v40 = vrot.slane %v3280_v16, 4  ;;  %v3606_v51 = vshrl.u32 %v7275_v14, 16  ;;  %v5335_v44 = vcombine.low %v7265_v22, %v7275_v14  ;;  %v3598_v5 = vrot.slane %v3596_v41, 5  ;;  %v2896_v22 = vld [vmem:[#allocation2 + $0x3c] sm:$0xf] }
 0x292   : > { %3990 = vrot.lane.b32.xlu1 %v5319_v54, %s5843_s8  ;;  %v5270_v61 = vrot.slane %v3409_v32, 9  ;;  %v3455_v29 = vrot.slane %v7255_v9, 5  ;;  %v3458_v43 = vrot.slane %v3209_v10, 5  ;;  %v3276_v56 = vsel %vm6027_vm5, %v3271_v23, %v3275_v31  ;;  %v2907_v41 = vld [vmem:[#allocation2 + $0x44] sm:$0x1] }
 0x293   : > { %v3286_v17 = vsel %vm6027_vm5, %v3281_v40, %v3285_v63  ;;  %v3602_v46 = vshll.u32 %v7275_v14, 16  ;;  %v3608_v21 = vrot.slane %v3606_v51, 4  ;;  %v3599_v45 = vor.u32 %v3598_v5, %v3595_v60 }
 0x294   : > { %v5318_v1 = vcombine.low %v3276_v56, %v3286_v17  ;;  %v3456_v52 = vsel %vm5980_vm2, %v5270_v61, %v3455_v29  ;;  %v3457_v49 = vrot.slane %v3455_v29, 4  ;;  %v3612_v57 = vshll.u32 %v7285_v53, 16  ;;  %v3714_v61 = vld [vmem:[#allocation2 + $0x30] sm:$0xe] }
 0x295   : > { %v3604_v25 = vrot.slane %v3602_v46, 5  ;;  %v3569_v9 = vshrl.u32 %v3500_v11, 16  ;;  %v3572_v2 = vshll.u32 %v3500_v11, 16  ;;  %v3600_v30 = vrot.slane %v3599_v45, 4 }
 0x296   : > { %4030 = vrot.lane.b32.xlu1 %v5327_v28, %s5852_s17  ;;  %3988 = vrot.lane.b32.xlu0 %v5318_v1, %s5843_s8  ;;  %v3459_v26 = vsel %vm5980_vm2, %v3457_v49, %v3458_v43  ;;  %v3582_v18 = vshrl.u32 %v7294_v59, 16  ;;  %v5334_v0 = vcombine.low %v3500_v11, %v7294_v59  ;;  %v3614_v35 = vrot.slane %v3612_v57, 5 }
 0x297   : > { %v5326_v38 = vcombine.low %v3456_v52, %v3459_v26  ;;  %v3609_v27 = vor.u32 %v3608_v21, %v3604_v25  ;;  %v3571_v10 = vrot.slane %v3569_v9, 4  ;;  %v3605_v55 = vsel %vm6027_vm5, %v3600_v30, %v3604_v25  ;;  %v3107_v52 = vld [vmem:[#allocation2 + $0x3c] sm:$0xe] }
 0x298   : > { %v3574_v7 = vrot.slane %v3572_v2, 5  ;;  %v3007_v36 = vshrl.u32 %v2894_v58, 16  ;;  %v3010_v15 = vshll.u32 %v2894_v58, 16  ;;  %v3016_v50 = vshll.u32 %v7305_v34, 16  ;;  %v3715_v30 = vld [vmem:[#allocation2 + $0x3c] sm:$0xe] }
 0x299   : > { %v3610_v4 = vrot.slane %v3609_v27, 4  ;;  %v3020_v24 = vshrl.u32 %v7305_v34, 16  ;;  %v3026_v48 = vshll.u32 %v7307_v19, 16  ;;  %v3578_v13 = vshll.u32 %v7294_v59, 16 }
 0x29a   : > { %4078 = vrot.lane.b32.xlu1 %v5335_v44, %s5840_s22  ;;  %4028 = vrot.lane.b32.xlu0 %v5326_v38, %s5852_s17  ;;  %v3009_v20 = vrot.slane %v3007_v36, 4  ;;  %v3012_v31 = vrot.slane %v3010_v15, 5  ;;  %v3575_v8 = vor.u32 %v3574_v7, %v3571_v10  ;;  %v3018_v42 = vrot.slane %v3016_v50, 5  ;;  %v7341_v36 = vld [vmem:[#allocation2 + $0x48] sm:$0xf] }
 0x29b   : > { %v3615_v12 = vsel %vm6027_vm5, %v3610_v4, %v3614_v35  ;;  %v3022_v33 = vrot.slane %v3020_v24, 4  ;;  %v3028_v6 = vrot.slane %v3026_v48, 5  ;;  %v3580_v32 = vrot.slane %v3578_v13, 5  ;;  %v7344_v50 = vld [vmem:[#allocation2 + $0x4c] sm:$0xf] }
 0x29c   : > { %v5343_v28 = vcombine.low %v3605_v55, %v3615_v12  ;;  %v3013_v62 = vor.u32 %v3012_v31, %v3009_v20  ;;  %v3576_v16 = vrot.slane %v3575_v8, 4  ;;  %v3584_v63 = vrot.slane %v3582_v18, 4  ;;  %v3106_v31 = vld [vmem:[#allocation2 + $0x30] sm:$0xe] }
 0x29d   : > { %v3023_v54 = vor.u32 %v3022_v33, %v3018_v42  ;;  %v3588_v60 = vshll.u32 %v7311_v3, 16  ;;  %v3031_v23 = vshrl.u32 %v2896_v22, 16  ;;  %v3034_v44 = vshll.u32 %v2896_v22, 16 }
 0x29e   : > { %4118 = vrot.lane.b32.xlu1 %v5343_v28, %s5853_s19  ;;  %4076 = vrot.lane.b32.xlu0 %v5334_v0, %s5840_s22  ;;  %v3014_v40 = vrot.slane %v3013_v62, 4  ;;  %v3581_v51 = vsel %vm6027_vm5, %v3576_v16, %v3580_v32  ;;  %v3040_v5 = vshll.u32 %v7316_v47, 16  ;;  %v3585_v43 = vor.u32 %v3584_v63, %v3580_v32 }
 0x29f   : > { %v3024_v29 = vrot.slane %v3023_v54, 4  ;;  %v3590_v11 = vrot.slane %v3588_v60, 5  ;;  %v3033_v56 = vrot.slane %v3031_v23, 4  ;;  %v3036_v46 = vrot.slane %v3034_v44, 5  ;;  %v3212_v54 = vld [vmem:[#allocation2 + $0x50] sm:$0x1] }
 0x2a0   : > { %v3019_v17 = vsel %vm6027_vm5, %v3014_v40, %v3018_v42  ;;  %v3042_v21 = vrot.slane %v3040_v5, 5  ;;  %v3044_v1 = vshrl.u32 %v7316_v47, 16  ;;  %v3586_v45 = vrot.slane %v3585_v43, 4  ;;  %v3412_v40 = vld [vmem:[#allocation2 + $0x48] sm:$0xe] }
 0x2a1   : > { %v3029_v49 = vsel %vm6027_vm5, %v3024_v29, %v3028_v6  ;;  %v3050_v25 = vshll.u32 %v2907_v41, 16  ;;  %v5278_v57 = vrot.slane %v3714_v61, 9  ;;  %v3037_v2 = vor.u32 %v3036_v46, %v3033_v56  ;;  %v3199_v61 = vld [vmem:[#allocation2 + $0x3c] sm:$0xf] }
 0x2a2   : > { %v5296_v9 = vcombine.low %v3019_v17, %v3029_v49  ;;  %v3046_v58 = vrot.slane %v3044_v1, 4  ;;  %v3760_v26 = vrot.slane %v7294_v59, 5  ;;  %v3591_v18 = vsel %vm6027_vm5, %v3586_v45, %v3590_v11 }
 0x2a3   : > { %v3052_v0 = vrot.slane %v3050_v25, 5  ;;  %v3763_v38 = vrot.slane %v7311_v3, 5  ;;  %v5265_v27 = vrot.slane %v3107_v52, 9  ;;  %v5342_v35 = vcombine.low %v3581_v51, %v3591_v18 }
 0x2a4   : > { %3864 = vrot.lane.b32.xlu1 %v5296_v9, %s5851_s16  ;;  %v3038_v10 = vrot.slane %v3037_v2, 4  ;;  %v3047_v55 = vor.u32 %v3046_v58, %v3042_v21  ;;  %v3761_v7 = vsel %vm5980_vm2, %v5278_v57, %v3760_v26  ;;  %v3762_v15 = vrot.slane %v3760_v26, 4  ;;  %v3211_v58 = vld [vmem:[#allocation2 + $0x44] sm:$0x1] }
 0x2a5   : > { %v3171_v59 = vrot.slane %v7316_v47, 5  ;;  %v3174_v22 = vrot.slane %v2907_v41, 5  ;;  %v5279_v4 = vrot.slane %v3715_v30, 9  ;;  %4116 = vrot.lane.b32.xlu0 %v5342_v35, %s5853_s19  ;;  %v3767_v48 = vrot.slane %v7275_v14, 5 }
 0x2a6   : > { %v3043_v3 = vsel %vm6027_vm5, %v3038_v10, %v3042_v21  ;;  %v3048_v24 = vrot.slane %v3047_v55, 4  ;;  %v3770_v20 = vrot.slane %v7285_v53, 5  ;;  %v3764_v8 = vsel %vm5980_vm2, %v3762_v15, %v3763_v38 }
 0x2a7   : > { %v3172_v13 = vsel %vm5980_vm2, %v5265_v27, %v3171_v59  ;;  %v3173_v12 = vrot.slane %v3171_v59, 4  ;;  %v5313_v42 = vcombine.low %v7341_v36, %v7344_v50  ;;  %v5350_v6 = vcombine.low %v3761_v7, %v3764_v8  ;;  %v7385_v27 = vld [vmem:[#allocation2 + $0x54] sm:$0xf] }
 0x2a8   : > { %v3053_v33 = vsel %vm6027_vm5, %v3048_v24, %v3052_v0  ;;  %v3768_v14 = vsel %vm5980_vm2, %v5279_v4, %v3767_v48  ;;  %v3769_v28 = vrot.slane %v3767_v48, 4  ;;  %v5264_v16 = vrot.slane %v3106_v31, 9  ;;  %v7395_v24 = vld [vmem:[#allocation2 + $0x58] sm:$0xf] }
 0x2a9   : > { %v5297_v53 = vcombine.low %v3043_v3, %v3053_v33  ;;  %v3175_v62 = vsel %vm5980_vm2, %v3173_v12, %v3174_v22  ;;  %v3164_v32 = vrot.slane %v7305_v34, 5  ;;  %4156 = vrot.lane.b32.xlu0 %v5350_v6, %s5845_s10  ;;  %v3167_v41 = vrot.slane %v7307_v19, 5  ;;  %v7375_v19 = vld [vmem:[#allocation2 + $0x40] sm:$0xf]  ;;  %v3411_v12 = vld [vmem:[#allocation2 + $0x3c] sm:$0xe] }
 0x2aa   : > { %v5305_v63 = vcombine.low %v3172_v13, %v3175_v62  ;;  %v3771_v60 = vsel %vm5980_vm2, %v3769_v28, %v3770_v20  ;;  %v3336_v23 = vshrl.u32 %v7341_v36, 16  ;;  %v3339_v34 = vshll.u32 %v7341_v36, 16 }
 0x2ab   : > { %3866 = vrot.lane.b32.xlu1 %v5297_v53, %s5851_s16  ;;  %v5351_v51 = vcombine.low %v3768_v14, %v3771_v60  ;;  %v3165_v44 = vsel %vm5980_vm2, %v5264_v16, %v3164_v32  ;;  %v3166_v5 = vrot.slane %v3164_v32, 4  ;;  %v3345_v43 = vshll.u32 %v7344_v50, 16  ;;  %v7405_v32 = vld [vmem:[#allocation2 + $0x5c] sm:$0x1] }
 0x2ac   : > { %v3338_v29 = vrot.slane %v3336_v23, 4  ;;  %v3349_v11 = vshrl.u32 %v7344_v50, 16  ;;  %v3355_v56 = vshll.u32 %v3212_v54, 16  ;;  %v3341_v46 = vrot.slane %v3339_v34, 5  ;;  %v3504_v23 = vld [vmem:[#allocation2 + $0x48] sm:$0xf] }
 0x2ad   : > { %v3168_v17 = vsel %vm5980_vm2, %v3166_v5, %v3167_v41  ;;  %v5312_v21 = vcombine.low %v3199_v61, %v7375_v19  ;;  %v5273_v1 = vrot.slane %v3412_v40, 9  ;;  %4158 = vrot.lane.b32.xlu0 %v5351_v51, %s5845_s10  ;;  %v3347_v49 = vrot.slane %v3345_v43, 5  ;;  %v7414_v34 = vld [vmem:[#allocation2 + $0x4c] sm:$0xf] }
 0x2ae   : > { %v5304_v52 = vcombine.low %v3165_v44, %v3168_v17  ;;  %v3351_v45 = vrot.slane %v3349_v11, 4  ;;  %v3357_v25 = vrot.slane %v3355_v56, 5  ;;  %v3342_v57 = vor.u32 %v3341_v46, %v3338_v29 }
 0x2af   : > { %3906 = vrot.lane.b32.xlu1 %v5305_v63, %s5844_s9  ;;  %v3476_v9 = vrot.slane %v7344_v50, 5  ;;  %v3479_v2 = vrot.slane %v3212_v54, 5  ;;  %v3312_v26 = vshrl.u32 %v3199_v61, 16  ;;  %v3315_v18 = vshll.u32 %v3199_v61, 16 }
 0x2b0   : > { %v3352_v30 = vor.u32 %v3351_v45, %v3347_v49  ;;  %v3321_v0 = vshll.u32 %v7375_v19, 16  ;;  %v3325_v38 = vshrl.u32 %v7375_v19, 16  ;;  %v3343_v35 = vrot.slane %v3342_v57, 4  ;;  %v7429_v57 = vld [vmem:[#allocation2 + $0x50] sm:$0x1] }
 0x2b1   : > { %v3477_v10 = vsel %vm5980_vm2, %v5273_v1, %v3476_v9  ;;  %v3478_v55 = vrot.slane %v3476_v9, 4  ;;  %v3314_v7 = vrot.slane %v3312_v26, 4  ;;  %3904 = vrot.lane.b32.xlu0 %v5304_v52, %s5844_s9  ;;  %v3317_v15 = vrot.slane %v3315_v18, 5 }
 0x2b2   : > { %v3353_v36 = vrot.slane %v3352_v30, 4  ;;  %v3323_v59 = vrot.slane %v3321_v0, 5  ;;  %v3327_v22 = vrot.slane %v3325_v38, 4  ;;  %v3348_v4 = vsel %vm6027_vm5, %v3343_v35, %v3347_v49 }
 0x2b3   : > { %3954 = vrot.lane.b32.xlu1 %v5313_v42, %s5850_s24  ;;  %v3480_v50 = vsel %vm5980_vm2, %v3478_v55, %v3479_v2  ;;  %v3331_v3 = vshll.u32 %v3211_v58, 16  ;;  %v3641_v48 = vshrl.u32 %v7385_v27, 16  ;;  %v3318_v8 = vor.u32 %v3317_v15, %v3314_v7  ;;  %v7438_v7 = vld [vmem:[#allocation2 + $0x50] sm:$0x1] }
 0x2b4   : > { %v3358_v20 = vsel %vm6027_vm5, %v3353_v36, %v3357_v25  ;;  %v5329_v31 = vcombine.low %v3477_v10, %v3480_v50  ;;  %v3328_v13 = vor.u32 %v3327_v22, %v3323_v59  ;;  %v3644_v14 = vshll.u32 %v7385_v27, 16  ;;  %v7427_v25 = vld [vmem:[#allocation2 + $0x4c] sm:$0xf] }
 0x2b5   : > { %v5321_v33 = vcombine.low %v3348_v4, %v3358_v20  ;;  %v3333_v42 = vrot.slane %v3331_v3, 5  ;;  %v3643_v6 = vrot.slane %v3641_v48, 4  ;;  %3952 = vrot.lane.b32.xlu0 %v5312_v21, %s5850_s24  ;;  %v3319_v28 = vrot.slane %v3318_v8, 4  ;;  %v7419_v21 = vld [vmem:[#allocation2 + $0x48] sm:$0xf] }
 0x2b6   : > { %v3329_v53 = vrot.slane %v3328_v13, 4  ;;  %v3654_v62 = vshrl.u32 %v7395_v24, 16  ;;  %v5337_v16 = vcombine.low %v7385_v27, %v7395_v24  ;;  %v3646_v54 = vrot.slane %v3644_v14, 5  ;;  %v7443_v4 = vld [vmem:[#allocation2 + $0x54] sm:$0xf] }
 0x2b7   : > { %3994 = vrot.lane.b32.xlu1 %v5321_v33, %s5843_s8  ;;  %v5272_v63 = vrot.slane %v3411_v12, 9  ;;  %v3469_v60 = vrot.slane %v7375_v19, 5  ;;  %v3472_v41 = vrot.slane %v3211_v58, 5  ;;  %v3324_v40 = vsel %vm6027_vm5, %v3319_v28, %v3323_v59  ;;  %v2909_v28 = vld [vmem:[#allocation2 + $0x5c] sm:$0x1] }
 0x2b8   : > { %v3334_v51 = vsel %vm6027_vm5, %v3329_v53, %v3333_v42  ;;  %v3650_v44 = vshll.u32 %v7395_v24, 16  ;;  %v3656_v5 = vrot.slane %v3654_v62, 4  ;;  %v3647_v11 = vor.u32 %v3646_v54, %v3643_v6 }
 0x2b9   : > { %v5320_v61 = vcombine.low %v3324_v40, %v3334_v51  ;;  %v3470_v29 = vsel %vm5980_vm2, %v5272_v63, %v3469_v60  ;;  %v3471_v43 = vrot.slane %v3469_v60, 4  ;;  %v3660_v19 = vshll.u32 %v7405_v32, 16  ;;  %v3716_v60 = vld [vmem:[#allocation2 + $0x48] sm:$0xe] }
 0x2ba   : > { %v3652_v56 = vrot.slane %v3650_v44, 5  ;;  %v3617_v17 = vshrl.u32 %v3504_v23, 16  ;;  %v3620_v46 = vshll.u32 %v3504_v23, 16  ;;  %v3648_v52 = vrot.slane %v3647_v11, 4 }
 0x2bb   : > { %4034 = vrot.lane.b32.xlu1 %v5329_v31, %s5852_s17  ;;  %3992 = vrot.lane.b32.xlu0 %v5320_v61, %s5843_s8  ;;  %v3473_v1 = vsel %vm5980_vm2, %v3471_v43, %v3472_v41  ;;  %v3630_v49 = vshrl.u32 %v7414_v34, 16  ;;  %v5336_v45 = vcombine.low %v3504_v23, %v7414_v34  ;;  %v3662_v58 = vrot.slane %v3660_v19, 5  ;;  %v7447_v31 = vld [vmem:[#allocation2 + $0x58] sm:$0xf]  ;;  %v3109_v43 = vld [vmem:[#allocation2 + $0x54] sm:$0xe] }
 0x2bc   : > { %v5328_v9 = vcombine.low %v3470_v29, %v3473_v1  ;;  %v3657_v2 = vor.u32 %v3656_v5, %v3652_v56  ;;  %v3619_v26 = vrot.slane %v3617_v17, 4  ;;  %v3653_v30 = vsel %vm6027_vm5, %v3648_v52, %v3652_v56 }
 0x2bd   : > { %v3622_v18 = vrot.slane %v3620_v46, 5  ;;  %v3055_v0 = vshrl.u32 %v7419_v21, 16  ;;  %v3058_v38 = vshll.u32 %v7419_v21, 16  ;;  %v3064_v35 = vshll.u32 %v7427_v25, 16 }
 0x2be   : > { %v3658_v27 = vrot.slane %v3657_v2, 4  ;;  %v3068_v10 = vshrl.u32 %v7427_v25, 16  ;;  %v3074_v55 = vshll.u32 %v7429_v57, 16  ;;  %v3626_v22 = vshll.u32 %v7414_v34, 16 }
 0x2bf   : > { %4082 = vrot.lane.b32.xlu1 %v5337_v16, %s5840_s22  ;;  %4032 = vrot.lane.b32.xlu0 %v5328_v9, %s5852_s17  ;;  %v3057_v36 = vrot.slane %v3055_v0, 4  ;;  %v3060_v15 = vrot.slane %v3058_v38, 5  ;;  %v3623_v59 = vor.u32 %v3622_v18, %v3619_v26  ;;  %v3066_v3 = vrot.slane %v3064_v35, 5 }
 0x2c0   : > { %v3663_v50 = vsel %vm6027_vm5, %v3658_v27, %v3662_v58  ;;  %v3070_v48 = vrot.slane %v3068_v10, 4  ;;  %v3076_v20 = vrot.slane %v3074_v55, 5  ;;  %v3628_v33 = vrot.slane %v3626_v22, 5  ;;  %v7469_v27 = vld [vmem:[#allocation2 + $0x60] sm:$0xf] }
 0x2c1   : > { %v5345_v8 = vcombine.low %v3653_v30, %v3663_v50  ;;  %v3061_v13 = vor.u32 %v3060_v15, %v3057_v36  ;;  %v3624_v12 = vrot.slane %v3623_v59, 4  ;;  %v3632_v6 = vrot.slane %v3630_v49, 4  ;;  %v7472_v36 = vld [vmem:[#allocation2 + $0x64] sm:$0xf] }
 0x2c2   : > { %v3071_v42 = vor.u32 %v3070_v48, %v3066_v3  ;;  %v3636_v14 = vshll.u32 %v7438_v7, 16  ;;  %v3079_v53 = vshrl.u32 %v7443_v4, 16  ;;  %v3082_v54 = vshll.u32 %v7443_v4, 16 }
 0x2c3   : > { %4122 = vrot.lane.b32.xlu1 %v5345_v8, %s5853_s19  ;;  %4080 = vrot.lane.b32.xlu0 %v5336_v45, %s5840_s22  ;;  %v3062_v62 = vrot.slane %v3061_v13, 4  ;;  %v3629_v16 = vsel %vm6027_vm5, %v3624_v12, %v3628_v33  ;;  %v3088_v63 = vshll.u32 %v7447_v31, 16  ;;  %v3633_v23 = vor.u32 %v3632_v6, %v3628_v33  ;;  %v3717_v45 = vld [vmem:[#allocation2 + $0x54] sm:$0xe] }
 0x2c4   : > { %v3072_v41 = vrot.slane %v3071_v42, 4  ;;  %v3638_v40 = vrot.slane %v3636_v14, 5  ;;  %v3081_v51 = vrot.slane %v3079_v53, 4  ;;  %v3084_v5 = vrot.slane %v3082_v54, 5  ;;  %v3214_v53 = vld [vmem:[#allocation2 + $0x68] sm:$0x1] }
 0x2c5   : > { %v3067_v44 = vsel %vm6027_vm5, %v3062_v62, %v3066_v3  ;;  %v3090_v61 = vrot.slane %v3088_v63, 5  ;;  %v3092_v29 = vshrl.u32 %v7447_v31, 16  ;;  %v3634_v56 = vrot.slane %v3633_v23, 4  ;;  %v3108_v3 = vld [vmem:[#allocation2 + $0x48] sm:$0xe] }
 0x2c6   : > { %v3077_v11 = vsel %vm6027_vm5, %v3072_v41, %v3076_v20  ;;  %v3098_v19 = vshll.u32 %v2909_v28, 16  ;;  %v5280_v17 = vrot.slane %v3716_v60, 9  ;;  %v3085_v1 = vor.u32 %v3084_v5, %v3081_v51  ;;  %v3414_v60 = vld [vmem:[#allocation2 + $0x60] sm:$0xe] }
 0x2c7   : > { %v5298_v46 = vcombine.low %v3067_v44, %v3077_v11  ;;  %v3094_v52 = vrot.slane %v3092_v29, 4  ;;  %v3774_v49 = vrot.slane %v7414_v34, 5  ;;  %v3639_v9 = vsel %vm6027_vm5, %v3634_v56, %v3638_v40  ;;  %v3203_v44 = vld [vmem:[#allocation2 + $0x54] sm:$0xf]  ;;  %v7507_v11 = vld [vmem:[#allocation2 + $0x58] sm:$0xf] }
 0x2c8   : > { %v3100_v2 = vrot.slane %v3098_v19, 5  ;;  %v3777_v58 = vrot.slane %v7438_v7, 5  ;;  %v5267_v26 = vrot.slane %v3109_v43, 9  ;;  %v5344_v30 = vcombine.low %v3629_v16, %v3639_v9 }
 0x2c9   : > { %3868 = vrot.lane.b32.xlu1 %v5298_v46, %s5851_s16  ;;  %v3086_v18 = vrot.slane %v3085_v1, 4  ;;  %v3095_v0 = vor.u32 %v3094_v52, %v3090_v61  ;;  %v3775_v38 = vsel %vm5980_vm2, %v5280_v17, %v3774_v49  ;;  %v3776_v35 = vrot.slane %v3774_v49, 4  ;;  %v7474_v15 = vpop.permute.xlu1 %3946 }
 0x2ca   : > { %v3185_v34 = vrot.slane %v7447_v31, 5  ;;  %v3188_v10 = vrot.slane %v2909_v28, 5  ;;  %v5281_v55 = vrot.slane %v3717_v45, 9  ;;  %4120 = vrot.lane.b32.xlu0 %v5344_v30, %s5853_s19  ;;  %v3781_v22 = vrot.slane %v7395_v24, 5 }
 0x2cb   : > { %v3091_v7 = vsel %vm6027_vm5, %v3086_v18, %v3090_v61  ;;  %v3096_v59 = vrot.slane %v3095_v0, 4  ;;  %v3784_v50 = vrot.slane %v7405_v32, 5  ;;  %v3778_v48 = vsel %vm5980_vm2, %v3776_v35, %v3777_v58  ;;  %v7517_v18 = vpop.permute.xlu0 %3944 }
 0x2cc   : > { %v3186_v20 = vsel %vm5980_vm2, %v5267_v26, %v3185_v34  ;;  %v3187_v8 = vrot.slane %v3185_v34, 4  ;;  %v5315_v13 = vcombine.low %v7469_v27, %v7472_v36  ;;  %v5352_v33 = vcombine.low %v3775_v38, %v3778_v48  ;;  %v7515_v26 = vld [vmem:[#allocation2 + $0x5c] sm:$0x1]  ;;  %v7521_v34 = vld [vmem:[#allocation2 + $0x6c] sm:$0xf] }
 0x2cd   : > { %v3101_v12 = vsel %vm6027_vm5, %v3096_v59, %v3100_v2  ;;  %v3782_v24 = vsel %vm5980_vm2, %v5281_v55, %v3781_v22  ;;  %v3783_v42 = vrot.slane %v3781_v22, 4  ;;  %v5266_v14 = vrot.slane %v3108_v3, 9 }
 0x2ce   : > { %v5299_v32 = vcombine.low %v3091_v7, %v3101_v12  ;;  %v3189_v6 = vsel %vm5980_vm2, %v3187_v8, %v3188_v10  ;;  %v3178_v28 = vrot.slane %v7427_v25, 5  ;;  %4160 = vrot.lane.b32.xlu0 %v5352_v33, %s5845_s10  ;;  %v3181_v54 = vrot.slane %v7429_v57, 5  ;;  %v7534_v33 = vld [vmem:[#allocation2 + $0x70] sm:$0xf] }
 0x2cf   : > { %v5307_v62 = vcombine.low %v3186_v20, %v3189_v6  ;;  %v3785_v16 = vsel %vm5980_vm2, %v3783_v42, %v3784_v50  ;;  %v3384_v63 = vshrl.u32 %v7469_v27, 16  ;;  %v3387_v51 = vshll.u32 %v7469_v27, 16 }
 0x2d0   : > { %3870 = vrot.lane.b32.xlu1 %v5299_v32, %s5851_s16  ;;  %v5353_v41 = vcombine.low %v3782_v24, %v3785_v16  ;;  %v3179_v23 = vsel %vm5980_vm2, %v5266_v14, %v3178_v28  ;;  %v3180_v40 = vrot.slane %v3178_v28, 4  ;;  %v7503_v5 = vpop.permute.xlu1 %3896  ;;  %v3393_v29 = vshll.u32 %v7472_v36, 16  ;;  %v3413_v14 = vld [vmem:[#allocation2 + $0x54] sm:$0xe] }
 0x2d1   : > { %v3386_v61 = vrot.slane %v3384_v63, 4  ;;  %v3397_v57 = vshrl.u32 %v7472_v36, 16  ;;  %v3403_v43 = vshll.u32 %v3214_v53, 16  ;;  %v3389_v19 = vrot.slane %v3387_v51, 5 }
 0x2d2   : > { %v3182_v56 = vsel %vm5980_vm2, %v3180_v40, %v3181_v54  ;;  %v5314_v17 = vcombine.low %v3203_v44, %v7507_v11  ;;  %v5275_v46 = vrot.slane %v3414_v60, 9  ;;  %4162 = vrot.lane.b32.xlu0 %v5353_v41, %s5845_s10  ;;  %v3395_v52 = vrot.slane %v3393_v29, 5  ;;  %v3508_v29 = vld [vmem:[#allocation2 + $0x60] sm:$0xf] }
 0x2d3   : > { %v5306_v1 = vcombine.low %v3179_v23, %v3182_v56  ;;  %v3399_v49 = vrot.slane %v3397_v57, 4  ;;  %v3405_v45 = vrot.slane %v3403_v43, 5  ;;  %v3390_v9 = vor.u32 %v3389_v19, %v3386_v61  ;;  %v3519_v23 = vld [vmem:[#allocation2 + $0x74] sm:$0x1] }
 0x2d4   : > { %3910 = vrot.lane.b32.xlu1 %v5307_v62, %s5844_s9  ;;  %v3490_v2 = vrot.slane %v7472_v36, 5  ;;  %v3493_v58 = vrot.slane %v3214_v53, 5  ;;  %v3360_v30 = vshrl.u32 %v3203_v44, 16  ;;  %v3363_v38 = vshll.u32 %v3203_v44, 16  ;;  %v7525_v59 = vpop.permute.xlu1 %3898 }
 0x2d5   : > { %v3400_v0 = vor.u32 %v3399_v49, %v3395_v52  ;;  %v3369_v27 = vshll.u32 %v7507_v11, 16  ;;  %v3373_v35 = vshrl.u32 %v7507_v11, 16  ;;  %v3391_v10 = vrot.slane %v3390_v9, 4 }
 0x2d6   : > { %v3491_v55 = vsel %vm5980_vm2, %v5275_v46, %v3490_v2  ;;  %v3492_v7 = vrot.slane %v3490_v2, 4  ;;  %v3362_v36 = vrot.slane %v3360_v30, 4  ;;  %3908 = vrot.lane.b32.xlu0 %v5306_v1, %s5844_s9  ;;  %v3365_v50 = vrot.slane %v3363_v38, 5  ;;  %v7554_v46 = vld [vmem:[#allocation2 + $0x64] sm:$0xf] }
 0x2d7   : > { %v3401_v22 = vrot.slane %v3400_v0, 4  ;;  %v3371_v3 = vrot.slane %v3369_v27, 5  ;;  %v3375_v48 = vrot.slane %v3373_v35, 4  ;;  %v3396_v20 = vsel %vm6027_vm5, %v3391_v10, %v3395_v52  ;;  %v3719_v27 = vld [vmem:[#allocation2 + $0x6c] sm:$0xe] }
 0x2d8   : > { %3958 = vrot.lane.b32.xlu1 %v5315_v13, %s5850_s24  ;;  %v3494_v8 = vsel %vm5980_vm2, %v3492_v7, %v3493_v58  ;;  %v3379_v12 = vshll.u32 %v7515_v26, 16  ;;  %v3689_v24 = vshrl.u32 %v7521_v34, 16  ;;  %v3366_v32 = vor.u32 %v3365_v50, %v3362_v36 }
 0x2d9   : > { %v3406_v42 = vsel %vm6027_vm5, %v3401_v22, %v3405_v45  ;;  %v3376_v6 = vor.u32 %v3375_v48, %v3371_v3  ;;  %v3692_v62 = vshll.u32 %v7521_v34, 16  ;;  %v7540_v16 = vpop.permute.xlu0 %3856  ;;  %v5331_v54 = vcombine.low %v3491_v55, %v3494_v8 }
 0x2da   : > { %v5323_v28 = vcombine.low %v3396_v20, %v3406_v42  ;;  %v3381_v13 = vrot.slane %v3379_v12, 5  ;;  %v3691_v53 = vrot.slane %v3689_v24, 4  ;;  %3956 = vrot.lane.b32.xlu0 %v5314_v17, %s5850_s24  ;;  %v3367_v63 = vrot.slane %v3366_v32, 4  ;;  %v3518_v12 = vld [vmem:[#allocation2 + $0x68] sm:$0x1] }
 0x2db   : > { %v3377_v60 = vrot.slane %v3376_v6, 4  ;;  %v3702_v41 = vshrl.u32 %v7534_v33, 16  ;;  %v3694_v40 = vrot.slane %v3692_v62, 5  ;;  %v5274_v51 = vrot.slane %v3413_v14, 9 }
 0x2dc   : > { %3998 = vrot.lane.b32.xlu1 %v5323_v28, %s5843_s8  ;;  %v3483_v44 = vrot.slane %v7507_v11, 5  ;;  %v3486_v61 = vrot.slane %v7515_v26, 5  ;;  %v7547_v57 = vpop.permute.xlu1 %3986  ;;  %v3372_v43 = vsel %vm6027_vm5, %v3367_v63, %v3371_v3  ;;  %v3698_v19 = vshll.u32 %v7534_v33, 16 }
 0x2dd   : > { %v3382_v56 = vsel %vm6027_vm5, %v3377_v60, %v3381_v13  ;;  %v3704_v17 = vrot.slane %v3702_v41, 4  ;;  %v3695_v49 = vor.u32 %v3694_v40, %v3691_v53  ;;  %v3708_v9 = vshll.u32 %v3519_v23, 16  ;;  %v5790_v40 = vld [vmem:[#allocation2] sm:$0xf] }
 0x2de   : > { %v5322_v1 = vcombine.low %v3372_v43, %v3382_v56  ;;  %v3484_v11 = vsel %vm5980_vm2, %v5274_v51, %v3483_v44  ;;  %v3485_v52 = vrot.slane %v3483_v44, 4  ;;  %v3700_v45 = vrot.slane %v3698_v19, 5 }
 0x2df   : > { %v3665_v2 = vshrl.u32 %v3508_v29, 16  ;;  %v3668_v58 = vshll.u32 %v3508_v29, 16  ;;  %v5339_v26 = vcombine.low %v7521_v34, %v7534_v33  ;;  %v3696_v0 = vrot.slane %v3695_v49, 4 }
 0x2e0   : > { %4038 = vrot.lane.b32.xlu1 %v5331_v54, %s5852_s17  ;;  %3996 = vrot.lane.b32.xlu0 %v5322_v1, %s5843_s8  ;;  %v3487_v30 = vsel %vm5980_vm2, %v3485_v52, %v3486_v61  ;;  %v3678_v38 = vshrl.u32 %v7554_v46, 16  ;;  %v3859_v35 = vpop.permute.xlu0 %3858  ;;  %v7565_v10 = vpop.permute.xlu1 %4026  ;;  %v3705_v7 = vor.u32 %v3704_v17, %v3700_v45  ;;  %v3710_v36 = vrot.slane %v3708_v9, 5  ;;  %v5791_v17 = vld [vmem:[#allocation2 + $0x10] sm:$0xf]  ;;  %v5792_v1 = vld [vmem:[#allocation2 + $0xc] sm:$0xf] }
 0x2e1   : > { %v5330_v55 = vcombine.low %v3484_v11, %v3487_v30  ;;  %v3667_v22 = vrot.slane %v3665_v2, 4  ;;  %v3701_v50 = vsel %vm6027_vm5, %v3696_v0, %v3700_v45  ;;  %v3670_v3 = vrot.slane %v3668_v58, 5  ;;  %v5716_v45 = vld [vmem:[%s7909_s4 + $0x10] ss:$0 sps:$4 sm:$0x33]   ;;  %v5717_v58 = vld [vmem:[%s7909_s4 + $0x8] sm:$0xff]  }
 0x2e2   : > { %v3706_v48 = vrot.slane %v3705_v7, 4  ;;  %v5283_v34 = vrot.slane %v3719_v27, 9  ;;  %v3795_v20 = vrot.slane %v7534_v33, 5  ;;  %v3798_v8 = vrot.slane %v3519_v23, 5  ;;  %v3718_v33 = vld [vmem:[#allocation2 + $0x60] sm:$0xe] }
 0x2e3   : > { %v5338_v24 = vcombine.low %v3508_v29, %v7554_v46  ;;  %v3671_v42 = vor.u32 %v3670_v3, %v3667_v22  ;;  %v3674_v32 = vshll.u32 %v7554_v46, 16  ;;  %v3680_v6 = vrot.slane %v3678_v38, 4  ;;  %v5789_v23 = vld [vmem:[#allocation2 + $0x4] sm:$0xf] }
 0x2e4   : > { %4086 = vrot.lane.b32.xlu1 %v5339_v26, %s5840_s22  ;;  %4036 = vrot.lane.b32.xlu0 %v5330_v55, %s5852_s17  ;;  %v3711_v14 = vsel %vm6027_vm5, %v3706_v48, %v3710_v36  ;;  %v3796_v28 = vsel %vm5980_vm2, %v5283_v34, %v3795_v20  ;;  %v3797_v13 = vrot.slane %v3795_v20, 4  ;;  %v3684_v63 = vshll.u32 %v3518_v12, 16  ;;  %v7578_v41 = vpop.permute.xlu1 %4074 }
 0x2e5   : > { %v5347_v53 = vcombine.low %v3701_v50, %v3711_v14  ;;  %v3672_v62 = vrot.slane %v3671_v42, 4  ;;  %v3676_v54 = vrot.slane %v3674_v32, 5  ;;  %v3985_v60 = vpop.permute.xlu0 %3984  ;;  %v5284_v51 = vcombine.low %v5790_v40, %v5789_v23 }
 0x2e6   : > { %v3799_v44 = vsel %vm5980_vm2, %v3797_v13, %v3798_v8  ;;  %v3788_v61 = vrot.slane %v7554_v46, 5  ;;  %v3686_v56 = vrot.slane %v3684_v63, 5  ;;  %v5282_v19 = vrot.slane %v3718_v33, 9 }
 0x2e7   : > { %v5355_v29 = vcombine.low %v3796_v28, %v3799_v44  ;;  %v3681_v43 = vor.u32 %v3680_v6, %v3676_v54  ;;  %vm4168_vm15 = vcmask 31744   ;;  %v5285_v11 = vcombine.low %v5792_v1, %v5791_v17 }
 0x2e8   : > { %4126 = vrot.lane.b32.xlu1 %v5347_v53, %s5853_s19  ;;  %4084 = vrot.lane.b32.xlu0 %v5338_v24, %s5840_s22  ;;  %v3790_v52 = vrot.slane %v3788_v61, 4  ;;  %v3791_v49 = vrot.slane %v3518_v12, 5  ;;  %v3677_v46 = vsel %vm6027_vm5, %v3672_v62, %v3676_v54  ;;  %vm4345_vm0 = vcmask 1041408  }
 0x2e9   : > { %v3682_v9 = vrot.slane %v3681_v43, 4  ;;  %v4025_v2 = vpop.permute.xlu0 %4024  ;;  %v4171_v26 = vsel %vm4168_vm15, %v5284_v51, %v7540_v16  ;;  %v3789_v0 = vsel %vm5980_vm2, %v5282_v19, %v3788_v61  ;;  %v4174_v7 = vsel %vm4168_vm15, %v5285_v11, %v3859_v35  ;;  %5511 = vmatprep.subr.msk.bf16.mxu1 %vm4345_vm0, %v5716_v45  ;;  %v5793_v61 = vld [vmem:[#allocation2 + $0x24] sm:$0xf]  ;;  %v5795_v43 = vld [vmem:[#allocation2 + $0x18] sm:$0xf] }
 0x2ea   : > { %v3792_v38 = vsel %vm5980_vm2, %v3790_v52, %v3791_v49  ;;  %v4347_v36 = vsel %vm4345_vm0, %v5716_v45, 0  ;;  %v4194_v16 = vsel %vm1923_vm6, %v4171_v26, %v7503_v5  ;;  %v4196_v3 = vsel %vm1923_vm6, %v4174_v7, %v7525_v59 }
 0x2eb   : > { %v3687_v30 = vsel %vm6027_vm5, %v3682_v9, %v3686_v56  ;;  %v4115_v27 = vpop.permute.xlu1 %4114  ;;  %5489 = vmatpush3.bf16.msra.mxu1 %v4347_v36  ;;  %v5354_v50 = vcombine.low %v3789_v0, %v3792_v38  ;;  %vm4209_vm2 = vcmask 97280   ;;  %v5291_v35 = vcombine.low %v7443_v4, %v7447_v31  ;;  %v5796_v56 = vld [vmem:[#allocation2 + $0x1c] sm:$0xf] }
 0x2ec   : > { %4166 = vrot.lane.b32.xlu1 %v5355_v29, %s5845_s10  ;;  %v5346_v55 = vcombine.low %v3677_v46, %v3687_v30  ;;  %5490 = vmatprep.subr.bf16.mxu1 %v5717_v58  ;;  %v5290_v48 = vcombine.low %v7419_v21, %v7427_v25  ;;  %v4211_v5 = vsel %vm4209_vm2, %v4194_v16, %v7517_v18  ;;  %vm4242_vm1 = vcmask 162816   ;;  %v5794_v29 = vld [vmem:[#allocation2 + $0x28] sm:$0xf] }
 0x2ed   : > { %v4073_v22 = vpop.permute.xlu0 %4072  ;;  %v4213_v20 = vsel %vm4209_vm2, %v4196_v3, %v7474_v15  ;;  %v4227_v59 = vsel %vm1954_vm7, %v4211_v5, %v3985_v60  ;;  %vm4275_vm3 = vcmask 228352   ;;  %vm4328_vm4 = vcmask 293888  }
 0x2ee   : > { %4124 = vrot.lane.b32.xlu0 %v5346_v55, %s5853_s19  ;;  %v4244_v12 = vsel %vm4242_vm1, %v4227_v59, %v4025_v2  ;;  %v4229_v24 = vsel %vm1954_vm7, %v4213_v20, %v7547_v57  ;;  %v5286_v19 = vcombine.low %v5795_v43, %v5796_v56 }
 0x2ef   : > { %5491 = vmatpush3.bf16.msra.mxu1 %v5717_v58  ;;  %v4260_v42 = vsel %vm1975_vm9, %v4244_v12, %v4073_v22  ;;  %v4246_v14 = vsel %vm4242_vm1, %v4229_v24, %v7565_v10 }
 0x2f0   : > { %5492 = vmatprep.subr.bf16.mxu1 %v5718_v37  ;;  %v4262_v28 = vsel %vm1975_vm9, %v4246_v14, %v7578_v41  ;;  %v5287_v41 = vcombine.low %v5793_v61, %v5794_v29  ;;  %v5799_v14 = vld [vmem:[#allocation2 + $0x34] sm:$0xf] }
 0x2f1   : > { %v3861_v34 = vpop.permute.xlu1 %3860  ;;  %v4279_v57 = vsel %vm4275_vm3, %v4262_v28, %v4115_v27 }
 0x2f2   : > { %4164 = vrot.lane.b32.xlu0 %v5354_v50, %s5845_s10  ;;  %v4113_v8 = vpop.permute.xlu0 %4112  ;;  %v4177_v11 = vsel %vm4168_vm15, %v5286_v19, %v3861_v34 }
 0x2f3   : > { %5493 = vmatpush3.bf16.msra.mxu1 %v5718_v37  ;;  %v4277_v18 = vsel %vm4275_vm3, %v4260_v42, %v4113_v8 }
 0x2f6   : > { %v4153_v32 = vpop.permute.xlu0 %4152 }
 0x2f7   : > { %v4293_v15 = vsel %vm1996_vm10, %v4277_v18, %v4153_v32  ;;  %v5797_v18 = vld [vmem:[#allocation2 + $0x3c] sm:$0xf] }
 0x2f8   : > { %v3863_v6 = vpop.permute.xlu1 %3862  ;;  %5494 = vmatprep.mubr.msk.bf16.mxu1 %vm4328_vm4, %v4293_v15  ;;  %v5798_v15 = vld [vmem:[#allocation2 + $0x30] sm:$0xf] }
 0x2f9   : > { %v4180_v1 = vsel %vm4168_vm15, %v5287_v41, %v3863_v6  ;;  %v5289_v6 = vcombine.low %v5797_v18, %v7316_v47  ;;  %v5288_v28 = vcombine.low %v5798_v15, %v5799_v14 }
 0x2fa   : > { %v4155_v13 = vpop.permute.xlu0 %4154 }
 0x2fb   : > { %v4295_v53 = vsel %vm1996_vm10, %v4279_v57, %v4155_v13 }
 0x2fc   : > { %v3903_v33 = vpop.permute.xlu1 %3902  ;;  %5495 = vmatmul.mubr.msk.bf16.vlgmr.msra.gmra.mxu1 %vm4328_vm4, %v4295_v53 }
 0x2fd   : > { %v4200_v9 = vsel %vm1923_vm6, %v4180_v1, %v3903_v33 }
 0x2fe   : > { %v3901_v62 = vpop.permute.xlu0 %3900 }
 0x2ff   : > { %v4198_v52 = vsel %vm1923_vm6, %v4177_v11, %v3901_v62 }
 0x300   : > { %v3951_v54 = vpop.permute.xlu1 %3950 }
 0x301   : > { %v4217_v30 = vsel %vm4209_vm2, %v4200_v9, %v3951_v54 }
 0x302   : > { %v3949_v63 = vpop.permute.xlu0 %3948 }
 0x303   : > { %v4215_v45 = vsel %vm4209_vm2, %v4198_v52, %v3949_v63 }
 0x304   : > { %v3991_v60 = vpop.permute.xlu1 %3990 }
 0x305   : > { %v4233_v27 = vsel %vm1954_vm7, %v4217_v30, %v3991_v60 }
 0x308   : > { %v4031_v23 = vpop.permute.xlu1 %4030  ;;  %v3989_v40 = vpop.permute.xlu0 %3988 }
 0x309   : > { %v4231_v2 = vsel %vm1954_vm7, %v4215_v45, %v3989_v40  ;;  %v4250_v36 = vsel %vm4242_vm1, %v4233_v27, %v4031_v23 }
 0x30c   : > { %v4079_v10 = vpop.permute.xlu1 %4078  ;;  %v4029_v51 = vpop.permute.xlu0 %4028 }
 0x30d   : > { %v4248_v58 = vsel %vm4242_vm1, %v4231_v2, %v4029_v51  ;;  %v4266_v22 = vsel %vm1975_vm9, %v4250_v36, %v4079_v10 }
 0x310   : > { %v4119_v44 = vpop.permute.xlu1 %4118  ;;  %v4077_v17 = vpop.permute.xlu0 %4076 }
 0x311   : > { %v4264_v26 = vsel %vm1975_vm9, %v4248_v58, %v4077_v17  ;;  %v4283_v16 = vsel %vm4275_vm3, %v4266_v22, %v4119_v44 }
 0x316   : > { %v3865_v49 = vpop.permute.xlu1 %3864 }
 0x317   : > { %v4117_v46 = vpop.permute.xlu0 %4116  ;;  %v4183_v33 = vsel %vm4168_vm15, %v5288_v28, %v3865_v49 }
 0x318   : > { %v4281_v0 = vsel %vm4275_vm3, %v4264_v26, %v4117_v46 }
 0x31b   : > { %v4157_v38 = vpop.permute.xlu0 %4156 }
 0x31c   : > { %v4297_v7 = vsel %vm1996_vm10, %v4281_v0, %v4157_v38 }
 0x31d   : > { %v3867_v55 = vpop.permute.xlu1 %3866  ;;  %5498 = vmatprep.mubr.msk.bf16.mxu1 %vm4328_vm4, %v4297_v7 }
 0x31e   : > { %v4186_v13 = vsel %vm4168_vm15, %v5289_v6, %v3867_v55 }
 0x31f   : > { %v4159_v50 = vpop.permute.xlu0 %4158 }
 0x320   : > { %v4299_v3 = vsel %vm1996_vm10, %v4283_v16, %v4159_v50 }
 0x321   : > { %v3907_v37 = vpop.permute.xlu1 %3906  ;;  %5499 = vmatmul.mubr.msk.bf16.gmra.mxu1 %vm4328_vm4, %v4299_v3 }
 0x322   : > { %v4204_v60 = vsel %vm1923_vm6, %v4186_v13, %v3907_v37 }
 0x323   : > { %v3905_v34 = vpop.permute.xlu0 %3904 }
 0x324   : > { %v4202_v53 = vsel %vm1923_vm6, %v4183_v33, %v3905_v34 }
 0x325   : > { %v3955_v5 = vpop.permute.xlu1 %3954 }
 0x326   : > { %v4221_v10 = vsel %vm4209_vm2, %v4204_v60, %v3955_v5  ;;  %v5388_v60 = vld [vmem:[%s5931_s18 + $0x24] sm:$0xf] }
 0x327   : > { %v3953_v20 = vpop.permute.xlu0 %3952 }
 0x328   : > { %v4219_v54 = vsel %vm4209_vm2, %v4202_v53, %v3953_v20 }
 0x329   : > { %v3995_v8 = vpop.permute.xlu1 %3994 }
 0x32a   : > { %v4237_v61 = vsel %vm1954_vm7, %v4221_v10, %v3995_v8  ;;  %v7699_v8 = vld [vmem:[%s7910_s5] ss:$0 sm:$0xff]  ;;  %v5389_v10 = vld [vmem:[%s5931_s18 + $0x28] sm:$0xf] }
 0x32d   : > { %v4035_v59 = vpop.permute.xlu1 %4034  ;;  %v3993_v12 = vpop.permute.xlu0 %3992 }
 0x32e   : > { %v4235_v23 = vsel %vm1954_vm7, %v4219_v54, %v3993_v12  ;;  %v4254_v43 = vsel %vm4242_vm1, %v4237_v61, %v4035_v59  ;;  %v7704_v12 = vld [vmem:[%s7911_s6] ss:$0 sm:$0xff]  ;;  %v5386_v61 = vld [vmem:[%s5931_s18 + $0x1c] sm:$0xf] }
 0x331   : > { %v4083_v24 = vpop.permute.xlu1 %4082  ;;  %v4033_v42 = vpop.permute.xlu0 %4032 }
 0x332   : > { %v4252_v47 = vsel %vm4242_vm1, %v4235_v23, %v4033_v42  ;;  %v4270_v56 = vsel %vm1975_vm9, %v4254_v43, %v4083_v24  ;;  %v5385_v23 = vld [vmem:[%s5931_s18 + $0x18] sm:$0xf] }
 0x335   : > { %v4123_v32 = vpop.permute.xlu1 %4122  ;;  %v4081_v57 = vpop.permute.xlu0 %4080 }
 0x336   : > { %v4268_v40 = vsel %vm1975_vm9, %v4252_v47, %v4081_v57  ;;  %v4287_v19 = vsel %vm4275_vm3, %v4270_v56, %v4123_v32  ;;  %v4653_v47 = vshrl.u32 %v5388_v60, 16  ;;  %v4662_v56 = vshll.u32 %v5389_v10, 16 }
 0x33b   : > { %v3869_v62 = vpop.permute.xlu1 %3868 }
 0x33c   : > { %v4121_v63 = vpop.permute.xlu0 %4120  ;;  %v4189_v55 = vsel %vm4168_vm15, %v5290_v48, %v3869_v62 }
 0x33d   : > { %v4285_v51 = vsel %vm4275_vm3, %v4268_v40, %v4121_v63  ;;  %v4656_v40 = vshll.u32 %v5388_v60, 16 }
 0x33f   : > { %v4658_v43 = vrot.slane %v4656_v40, 5 }
 0x340   : > { %v4161_v44 = vpop.permute.xlu0 %4160 }
 0x341   : > { %v4301_v41 = vsel %vm1996_vm10, %v4285_v51, %v4161_v44  ;;  %v4629_v51 = vshrl.u32 %v5385_v23, 16  ;;  %v4632_v44 = vshll.u32 %v5385_v23, 16 }
 0x342   : > { %v3871_v29 = vpop.permute.xlu1 %3870  ;;  %5502 = vmatprep.mubr.msk.bf16.mxu1 %vm4328_vm4, %v4301_v41  ;;  %v4655_v41 = vrot.slane %v4653_v47, 4 }
 0x343   : > { %v4192_v0 = vsel %vm4168_vm15, %v5291_v35, %v3871_v29 }
 0x344   : > { %v4163_v17 = vpop.permute.xlu0 %4162 }
 0x345   : > { %v4303_v11 = vsel %vm1996_vm10, %v4287_v19, %v4163_v17  ;;  %v4666_v19 = vshrl.u32 %v5389_v10, 16 }
 0x346   : > { %v3911_v1 = vpop.permute.xlu1 %3910  ;;  %5503 = vmatmul.mubr.msk.bf16.gmra.mxu1 %vm4328_vm4, %v4303_v11  ;;  %v4631_v11 = vrot.slane %v4629_v51, 4 }
 0x347   : > { %v4208_v27 = vsel %vm1923_vm6, %v4192_v0, %v3911_v1  ;;  %v5390_v0 = vld [vmem:[%s5931_s18 + $0x2c] sm:$0x1] }
 0x348   : > { %v3909_v52 = vpop.permute.xlu0 %3908 }
 0x349   : > { %v4206_v7 = vsel %vm1923_vm6, %v4189_v55, %v3909_v52  ;;  %v4634_v52 = vrot.slane %v4632_v44, 5 }
 0x34a   : > { %v3959_v49 = vpop.permute.xlu1 %3958 }
 0x34b   : > { %v4225_v16 = vsel %vm4209_vm2, %v4208_v27, %v3959_v49  ;;  %v4638_v49 = vshll.u32 %v5386_v61, 16  ;;  %v4635_v27 = vor.u32 %v4634_v52, %v4631_v11 }
 0x34c   : > { %v3957_v45 = vpop.permute.xlu0 %3956 }
 0x34d   : > { %v4223_v36 = vsel %vm4209_vm2, %v4206_v7, %v3957_v45  ;;  %v4642_v45 = vshrl.u32 %v5386_v61, 16  ;;  %v4640_v55 = vrot.slane %v4638_v49, 5  ;;  %v5394_v49 = vld [vmem:[%s5931_s18 + $0x3c] sm:$0xf] }
 0x34e   : > { %v3999_v46 = vpop.permute.xlu1 %3998 }
 0x34f   : > { %v4241_v4 = vsel %vm1954_vm7, %v4225_v16, %v3999_v46  ;;  %v4644_v7 = vrot.slane %v4642_v45, 4  ;;  %v5391_v45 = vld [vmem:[%s5931_s18 + $0x30] sm:$0xf] }
 0x352   : > { %v4039_v9 = vpop.permute.xlu1 %4038  ;;  %v3997_v2 = vpop.permute.xlu0 %3996 }
 0x353   : > { %v4239_v50 = vsel %vm1954_vm7, %v4223_v36, %v3997_v2  ;;  %v4258_v35 = vsel %vm4242_vm1, %v4241_v4, %v4039_v9  ;;  %v4659_v2 = vor.u32 %v4658_v43, %v4655_v41  ;;  %v4672_v4 = vshll.u32 %v5390_v0, 16 }
 0x355   : > { %v4660_v16 = vrot.slane %v4659_v2, 4  ;;  %v5395_v2 = vld [vmem:[%s5931_s18 + $0x40] sm:$0xf] }
 0x356   : > { %v4037_v58 = vpop.permute.xlu0 %4036  ;;  %v4087_v26 = vpop.permute.xlu1 %4086 }
 0x357   : > { %v4256_v31 = vsel %vm4242_vm1, %v4239_v50, %v4037_v58  ;;  %v4274_v25 = vsel %vm1975_vm9, %v4258_v35, %v4087_v26  ;;  %v4664_v58 = vrot.slane %v4662_v56, 5  ;;  %v4668_v26 = vrot.slane %v4666_v19, 4 }
 0x358   : > { %v4645_v35 = vor.u32 %v4644_v7, %v4640_v55  ;;  %v4714_v7 = vshrl.u32 %v5395_v2, 16 }
 0x359   : > { %v4669_v50 = vor.u32 %v4668_v26, %v4664_v58  ;;  %v4680_v26 = vshll.u32 %v5391_v45, 16 }
 0x35a   : > { %v4085_v30 = vpop.permute.xlu0 %4084  ;;  %v4127_v38 = vpop.permute.xlu1 %4126 }
 0x35b   : > { %v4272_v37 = vsel %vm1975_vm9, %v4256_v31, %v4085_v30  ;;  %v4291_v34 = vsel %vm4275_vm3, %v4274_v25, %v4127_v38  ;;  %v4636_v31 = vrot.slane %v4635_v27, 4  ;;  %v4670_v25 = vrot.slane %v4669_v50, 4 }
 0x35c   : > { %v4682_v50 = vrot.slane %v4680_v26, 5 }
 0x35e   : > { %v4167_v21 = vpop.permute.xlu1 %4166 }
 0x35f   : > { %v4307_v20 = vsel %vm1996_vm10, %v4291_v34, %v4167_v21  ;;  %v4665_v21 = vsel %vm6027_vm5, %v4660_v16, %v4664_v58  ;;  %v4646_v34 = vrot.slane %v4645_v35, 4  ;;  %v4677_v58 = vshrl.u32 %v5391_v45, 16 }
 0x360   : > { %v4125_v22 = vpop.permute.xlu0 %4124 }
 0x361   : > { %v4289_v48 = vsel %vm4275_vm3, %v4272_v37, %v4125_v22  ;;  %v5387_v22 = vld [vmem:[%s5931_s18 + $0x20] sm:$0x1]  ;;  %v4679_v16 = vrot.slane %v4677_v58, 4 }
 0x362   : > { %v4648_v37 = vshll.u32 %v5387_v22, 16 }
 0x364   : > { %v4165_v3 = vpop.permute.xlu0 %4164 }
 0x365   : > { %v4305_v5 = vsel %vm1996_vm10, %v4289_v48, %v4165_v3  ;;  %v4674_v48 = vrot.slane %v4672_v4, 5  ;;  %v4641_v3 = vsel %vm6027_vm5, %v4636_v31, %v4640_v55  ;;  %v4710_v55 = vshll.u32 %v5395_v2, 16 }
 0x366   : > { %5506 = vmatprep.mubr.msk.bf16.mxu1 %vm4328_vm4, %v4305_v5  ;;  %v4650_v5 = vrot.slane %v4648_v37, 5 }
 0x367   : > { %5507 = vmatmul.mubr.msk.bf16.gmra.mxu1 %vm4328_vm4, %v4307_v20  ;;  %v4838_v20 = vunpack.c.l.bf16 %v4665_v21 }
 0x3bc   : > { %v5496_v59 = vpop.f32.mrf.mxu1 }
 0x3bd   : > { %v4455_v24 = vmul.f32 %v5496_v59, %v7699_v8 }
 0x3be   : > { %v4383_v42 = vpop.f32.mrf.mxu1 }
 0x3bf   : > { %v7708_v32 = vadd.f32 %v7704_v12, %v4455_v24  ;;  %v4453_v18 = vmul.f32 %v7699_v8, %v4383_v42  ;;  %v4675_v24 = vsel %vm6027_vm5, %v4670_v25, %v4674_v48  ;;  %v4712_v25 = vrot.slane %v4710_v55, 5 }
 0x3c0   : > { %v5497_v6 = vpop.f32.mrf.mxu1  ;;  %v4716_v48 = vrot.slane %v4714_v7, 4 }
 0x3c1   : > { %v5371_v15 = vmul.f32 -1.442695, %v7708_v32  ;;  %v7713_v14 = vadd.f32 %v7704_v12, %v4453_v18  ;;  %v4456_v28 = vmul.f32 %v5497_v6, %v7699_v8  ;;  %v4836_v18 = vunpack.c.l.bf16 %v4641_v3 }
 0x3c2   : > { %v4386_v57 = vpop.f32.mrf.mxu1 }
 0x3c3   : > { %5725 = vpow2.f32 %v5371_v15  ;;  %v5369_v13 = vmul.f32 -1.442695, %v7713_v14  ;;  %v7718_v33 = vadd.f32 %v7704_v12, %v4456_v28  ;;  %v4454_v53 = vmul.f32 %v7699_v8, %v4386_v57 }
 0x3c4   : > { %v4651_v28 = vsel %vm6027_vm5, %v4646_v34, %v4650_v5  ;;  %v5396_v34 = vld [vmem:[%s5931_s18 + $0x44] sm:$0x1] }
 0x3c5   : > { %5727 = vpow2.f32 %v5369_v13  ;;  %v5372_v62 = vmul.f32 -1.442695, %v7718_v33  ;;  %v7723_v54 = vadd.f32 %v7704_v12, %v4454_v53  ;;  %v4837_v10 = vunpack.c.l.bf16 %v4651_v28 }
 0x3c6   : > { %v4720_v28 = vshll.u32 %v5396_v34, 16 }
 0x3c7   : > { %5729 = vpow2.f32 %v5372_v62  ;;  %v5370_v63 = vmul.f32 -1.442695, %v7723_v54  ;;  %v4839_v62 = vunpack.c.l.bf16 %v4675_v24 }
 0x3c9   : > { %5731 = vpow2.f32 %v5370_v63 }
 0x3d0   : > { %v5726_v29 = vpop.eup %5725 }
 0x3d1   : > { %v4542_v17 = vadd.f32 1.0, %v5726_v29 }
 0x3d2   : > { %v5728_v1 = vpop.eup %5727 }
 0x3d3   : > { %5733 = vrcp.f32 %v4542_v17  ;;  %v4540_v46 = vadd.f32 1.0, %v5728_v1 }
 0x3d4   : > { %v5730_v9 = vpop.eup %5729 }
 0x3d5   : > { %5735 = vrcp.f32 %v4540_v46  ;;  %v4543_v30 = vadd.f32 1.0, %v5730_v9  ;;  %v4701_v46 = vshrl.u32 %v5394_v49, 16  ;;  %v4704_v9 = vshll.u32 %v5394_v49, 16 }
 0x3d6   : > { %v5732_v38 = vpop.eup %5731 }
 0x3d7   : > { %5737 = vrcp.f32 %v4543_v30  ;;  %v4541_v36 = vadd.f32 1.0, %v5732_v38  ;;  %v5392_v30 = vld [vmem:[%s5931_s18 + $0x34] sm:$0xf]  ;;  %v4703_v38 = vrot.slane %v4701_v46, 4  ;;  %v4706_v27 = vrot.slane %v4704_v9, 5 }
 0x3d8   : > { %v4686_v4 = vshll.u32 %v5392_v30, 16  ;;  %v4690_v31 = vshrl.u32 %v5392_v30, 16 }
 0x3d9   : > { %5739 = vrcp.f32 %v4541_v36  ;;  %v4707_v21 = vor.u32 %v4706_v27, %v4703_v38 }
 0x3da   : > { %v4692_v24 = vrot.slane %v4690_v31, 4  ;;  %v5397_v31 = vld [vmem:[%s5931_s18 + $0x48] sm:$0xf] }
 0x3e0   : > { %v5734_v59 = vpop.eup %5733 }
 0x3e1   : > { %v4590_v42 = vmul.f32 %v5734_v59, %v7708_v32  ;;  %v5500_v6 = vpop.f32.mrf.mxu1  ;;  %v4688_v59 = vrot.slane %v4686_v4, 5  ;;  %v5400_v4 = vld [vmem:[%s5931_s18 + $0x54] sm:$0xf] }
 0x3e2   : > { %v5736_v15 = vpop.eup %5735  ;;  %v4459_v57 = vmul.f32 %v5500_v6, %v7699_v8  ;;  %v4708_v6 = vrot.slane %v4707_v21, 4  ;;  %v5401_v21 = vld [vmem:[%s5931_s18 + $0x58] sm:$0xf] }
 0x3e3   : > { %v4854_v13 = vadd.f32 %v4838_v20, %v4590_v42  ;;  %v4588_v53 = vmul.f32 %v5736_v15, %v7713_v14  ;;  %v4399_v63 = vpop.f32.mrf.mxu1  ;;  %v4683_v20 = vor.u32 %v4682_v50, %v4679_v16  ;;  %v4717_v15 = vor.u32 %v4716_v48, %v4712_v25 }
 0x3e4   : > { %v5738_v60 = vpop.eup %5737  ;;  %v7744_v23 = vadd.f32 %v7704_v12, %v4459_v57  ;;  %v4457_v32 = vmul.f32 %v7699_v8, %v4399_v63  ;;  %v4728_v48 = vshll.u32 %v5397_v31, 16 }
 0x3e5   : > { %4870 = vst.msk [vmem:[%s5936_s21 + $0x10] sm:$0xff] %vm1923_vm6, %v4854_v13  ;;  %v4852_v47 = vadd.f32 %v4836_v18, %v4588_v53  ;;  %v4591_v40 = vmul.f32 %v5738_v60, %v7718_v33  ;;  %v5501_v51 = vpop.f32.mrf.mxu1  ;;  %v5393_v18 = vld [vmem:[%s5931_s18 + $0x38] sm:$0x1]  ;;  %v4684_v57 = vrot.slane %v4683_v20, 4  ;;  %v4693_v13 = vor.u32 %v4692_v24, %v4688_v59 }
 0x3e6   : > { %v5740_v44 = vpop.eup %5739  ;;  %v5375_v61 = vmul.f32 -1.442695, %v7744_v23  ;;  %v7752_v14 = vadd.f32 %v7704_v12, %v4457_v32  ;;  %v4460_v29 = vmul.f32 %v5501_v51, %v7699_v8  ;;  %v4696_v53 = vshll.u32 %v5393_v18, 16 }
 0x3e7   : > { %4868 = vst.msk [vmem:[%s5936_s21] sm:$0xff] %vm1923_vm6, %v4852_v47  ;;  %v4855_v41 = vadd.f32 %v4839_v62, %v4591_v40  ;;  %v4589_v43 = vmul.f32 %v5740_v44, %v7723_v54  ;;  %v4402_v56 = vpop.f32.mrf.mxu1  ;;  %v4713_v62 = vsel %vm6027_vm5, %v4708_v6, %v4712_v25  ;;  %v4718_v63 = vrot.slane %v4717_v15, 4 }
 0x3e8   : > { %5741 = vpow2.f32 %v5375_v61  ;;  %v5373_v33 = vmul.f32 -1.442695, %v7752_v14  ;;  %v7760_v19 = vadd.f32 %v7704_v12, %v4460_v29  ;;  %v4458_v17 = vmul.f32 %v7699_v8, %v4402_v56 }
 0x3e9   : > { %4871 = vst.msk [vmem:[%s5936_s21 + $0x18] sm:$0xff] %vm1923_vm6, %v4855_v41  ;;  %v4853_v1 = vadd.f32 %v4837_v10, %v4589_v43  ;;  %v4722_v60 = vrot.slane %v4720_v28, 5  ;;  %v4689_v32 = vsel %vm6027_vm5, %v4684_v57, %v4688_v59  ;;  %v4694_v47 = vrot.slane %v4693_v13, 4 }
 0x3ea   : > { %5743 = vpow2.f32 %v5373_v33  ;;  %v5376_v11 = vmul.f32 -1.442695, %v7760_v19  ;;  %v7767_v54 = vadd.f32 %v7704_v12, %v4458_v17  ;;  %v4698_v40 = vrot.slane %v4696_v53, 5 }
 0x3eb   : > { %4869 = vst.msk [vmem:[%s5936_s21 + $0x8] sm:$0xff] %vm1923_vm6, %v4853_v1  ;;  %v4842_v10 = vunpack.c.l.bf16 %v4713_v62  ;;  %v4723_v44 = vsel %vm6027_vm5, %v4718_v63, %v4722_v60  ;;  %v4840_v29 = vunpack.c.l.bf16 %v4689_v32  ;;  %v4725_v25 = vshrl.u32 %v5397_v31, 16 }
 0x3ec   : > { %5745 = vpow2.f32 %v5376_v11  ;;  %v5374_v52 = vmul.f32 -1.442695, %v7767_v54  ;;  %v4699_v56 = vsel %vm6027_vm5, %v4694_v47, %v4698_v40  ;;  %v4843_v11 = vunpack.c.l.bf16 %v4723_v44  ;;  %v5402_v47 = vld [vmem:[%s5931_s18 + $0x5c] sm:$0x1] }
 0x3ed   : > { %v4841_v2 = vunpack.c.l.bf16 %v4699_v56  ;;  %v4758_v59 = vshll.u32 %v5401_v21, 16  ;;  %v4762_v24 = vshrl.u32 %v5401_v21, 16  ;;  %v4727_v6 = vrot.slane %v4725_v25, 4 }
 0x3ee   : > { %5747 = vpow2.f32 %v5374_v52  ;;  %v4730_v15 = vrot.slane %v4728_v48, 5  ;;  %v4768_v56 = vshll.u32 %v5402_v47, 16 }
 0x3ef   : > { %v4760_v63 = vrot.slane %v4758_v59, 5  ;;  %v4764_v60 = vrot.slane %v4762_v24, 4 }
 0x3f5   : > { %v5742_v0 = vpop.eup %5741 }
 0x3f6   : > { %v4546_v36 = vadd.f32 1.0, %v5742_v0 }
 0x3f7   : > { %v5744_v22 = vpop.eup %5743 }
 0x3f8   : > { %5749 = vrcp.f32 %v4546_v36  ;;  %v4544_v35 = vadd.f32 1.0, %v5744_v22 }
 0x3f9   : > { %v5746_v37 = vpop.eup %5745 }
 0x3fa   : > { %5751 = vrcp.f32 %v4544_v35  ;;  %v4547_v3 = vadd.f32 1.0, %v5746_v37  ;;  %v4749_v35 = vshrl.u32 %v5400_v4, 16  ;;  %v4752_v37 = vshll.u32 %v5400_v4, 16 }
 0x3fb   : > { %v5748_v5 = vpop.eup %5747 }
 0x3fc   : > { %5753 = vrcp.f32 %v4547_v3  ;;  %v4545_v42 = vadd.f32 1.0, %v5748_v5  ;;  %v5398_v3 = vld [vmem:[%s5931_s18 + $0x4c] sm:$0xf]  ;;  %v4751_v5 = vrot.slane %v4749_v35, 4  ;;  %v4754_v20 = vrot.slane %v4752_v37, 5 }
 0x3fd   : > { %v4734_v28 = vshll.u32 %v5398_v3, 16  ;;  %v4738_v57 = vshrl.u32 %v5398_v3, 16 }
 0x3fe   : > { %5755 = vrcp.f32 %v4545_v42  ;;  %v4755_v62 = vor.u32 %v4754_v20, %v4751_v5 }
 0x3ff   : > { %v4740_v44 = vrot.slane %v4738_v57, 4  ;;  %v5403_v57 = vld [vmem:[%s5931_s18 + $0x60] sm:$0xf] }
 0x405   : > { %v5750_v51 = vpop.eup %5749 }
 0x406   : > { %v4594_v61 = vmul.f32 %v5750_v51, %v7744_v23  ;;  %v5504_v41 = vpop.f32.mrf.mxu1  ;;  %v4736_v51 = vrot.slane %v4734_v28, 5  ;;  %v5406_v28 = vld [vmem:[%s5931_s18 + $0x6c] sm:$0xf] }
 0x407   : > { %v5752_v43 = vpop.eup %5751  ;;  %v4463_v33 = vmul.f32 %v5504_v41, %v7699_v8  ;;  %v4756_v41 = vrot.slane %v4755_v62, 4  ;;  %v4773_v62 = vshrl.u32 %v5403_v57, 16 }
 0x408   : > { %v4858_v17 = vadd.f32 %v4842_v10, %v4594_v61  ;;  %v4592_v1 = vmul.f32 %v5752_v43, %v7752_v14  ;;  %v4415_v52 = vpop.f32.mrf.mxu1  ;;  %v4731_v10 = vor.u32 %v4730_v15, %v4727_v6  ;;  %v4765_v43 = vor.u32 %v4764_v60, %v4760_v63  ;;  %v5404_v60 = vld [vmem:[%s5931_s18 + $0x64] sm:$0xf] }
 0x409   : > { %v5754_v49 = vpop.eup %5753  ;;  %v7790_v45 = vadd.f32 %v7704_v12, %v4463_v33  ;;  %v4461_v23 = vmul.f32 %v7699_v8, %v4415_v52 }
 0x40a   : > { %4874 = vst.msk [vmem:[%s5936_s21 + $0x30] sm:$0xff] %vm1923_vm6, %v4858_v17  ;;  %v4856_v46 = vadd.f32 %v4840_v29, %v4592_v1  ;;  %v4595_v9 = vmul.f32 %v5754_v49, %v7760_v19  ;;  %v5505_v58 = vpop.f32.mrf.mxu1  ;;  %v5399_v29 = vld [vmem:[%s5931_s18 + $0x50] sm:$0x1]  ;;  %v4732_v33 = vrot.slane %v4731_v10, 4  ;;  %v4741_v17 = vor.u32 %v4740_v44, %v4736_v51 }
 0x40b   : > { %v5756_v26 = vpop.eup %5755  ;;  %v5379_v30 = vmul.f32 -1.442695, %v7790_v45  ;;  %v7798_v14 = vadd.f32 %v7704_v12, %v4461_v23  ;;  %v4464_v0 = vmul.f32 %v5505_v58, %v7699_v8  ;;  %v4744_v1 = vshll.u32 %v5399_v29, 16 }
 0x40c   : > { %4872 = vst.msk [vmem:[%s5936_s21 + $0x20] sm:$0xff] %vm1923_vm6, %v4856_v46  ;;  %v4859_v38 = vadd.f32 %v4843_v11, %v4595_v9  ;;  %v4593_v27 = vmul.f32 %v5756_v26, %v7767_v54  ;;  %v4418_v55 = vpop.f32.mrf.mxu1  ;;  %v4761_v11 = vsel %vm6027_vm5, %v4756_v41, %v4760_v63  ;;  %v4766_v52 = vrot.slane %v4765_v43, 4 }
 0x40d   : > { %5757 = vpow2.f32 %v5379_v30  ;;  %v5377_v19 = vmul.f32 -1.442695, %v7798_v14  ;;  %v7806_v7 = vadd.f32 %v7704_v12, %v4464_v0  ;;  %v4462_v36 = vmul.f32 %v7699_v8, %v4418_v55 }
 0x40e   : > { %4875 = vst.msk [vmem:[%s5936_s21 + $0x38] sm:$0xff] %vm1923_vm6, %v4859_v38  ;;  %v4857_v22 = vadd.f32 %v4841_v2, %v4593_v27  ;;  %v4770_v49 = vrot.slane %v4768_v56, 5  ;;  %v4737_v46 = vsel %vm6027_vm5, %v4732_v33, %v4736_v51  ;;  %v4742_v9 = vrot.slane %v4741_v17, 4 }
 0x40f   : > { %5759 = vpow2.f32 %v5377_v19  ;;  %v5380_v16 = vmul.f32 -1.442695, %v7806_v7  ;;  %v7813_v54 = vadd.f32 %v7704_v12, %v4462_v36  ;;  %v4746_v2 = vrot.slane %v4744_v1, 5 }
 0x410   : > { %4873 = vst.msk [vmem:[%s5936_s21 + $0x28] sm:$0xff] %vm1923_vm6, %v4857_v22  ;;  %v4846_v26 = vunpack.c.l.bf16 %v4761_v11  ;;  %v4771_v38 = vsel %vm6027_vm5, %v4766_v52, %v4770_v49  ;;  %v4844_v36 = vunpack.c.l.bf16 %v4737_v46  ;;  %v4776_v63 = vshll.u32 %v5403_v57, 16  ;;  %v5408_v49 = vld [vmem:[%s5931_s18 + $0x74] sm:$0x1] }
 0x411   : > { %5761 = vpow2.f32 %v5380_v16  ;;  %v5378_v50 = vmul.f32 -1.442695, %v7813_v54  ;;  %v4847_v25 = vunpack.c.l.bf16 %v4771_v38  ;;  %v4782_v41 = vshll.u32 %v5404_v60, 16 }
 0x412   : > { %v4778_v29 = vrot.slane %v4776_v63, 5  ;;  %v4786_v43 = vshrl.u32 %v5404_v60, 16  ;;  %v4816_v38 = vshll.u32 %v5408_v49, 16 }
 0x413   : > { %5763 = vpow2.f32 %v5378_v50  ;;  %v4747_v50 = vsel %vm6027_vm5, %v4742_v9, %v4746_v2  ;;  %v4784_v9 = vrot.slane %v4782_v41, 5 }
 0x414   : > { %v4845_v59 = vunpack.c.l.bf16 %v4747_v50  ;;  %v4788_v2 = vrot.slane %v4786_v43, 4  ;;  %v4818_v50 = vrot.slane %v4816_v38, 5 }
 0x41a   : > { %v5758_v34 = vpop.eup %5757 }
 0x41b   : > { %v4550_v42 = vadd.f32 1.0, %v5758_v34 }
 0x41c   : > { %v5760_v18 = vpop.eup %5759 }
 0x41d   : > { %5765 = vrcp.f32 %v4550_v42  ;;  %v4548_v13 = vadd.f32 1.0, %v5760_v18 }
 0x41e   : > { %v5762_v53 = vpop.eup %5761 }
 0x41f   : > { %5767 = vrcp.f32 %v4548_v13  ;;  %v4551_v32 = vadd.f32 1.0, %v5762_v53  ;;  %v4797_v13 = vshrl.u32 %v5406_v28, 16  ;;  %v5407_v53 = vld [vmem:[%s5931_s18 + $0x70] sm:$0xf] }
 0x420   : > { %v5764_v40 = vpop.eup %5763  ;;  %v4810_v10 = vshrl.u32 %v5407_v53, 16 }
 0x421   : > { %5769 = vrcp.f32 %v4551_v32  ;;  %v4549_v61 = vadd.f32 1.0, %v5764_v40  ;;  %v4799_v47 = vrot.slane %v4797_v13, 4  ;;  %v4806_v40 = vshll.u32 %v5407_v53, 16 }
 0x422   : > { %v4812_v11 = vrot.slane %v4810_v10, 4 }
 0x423   : > { %5771 = vrcp.f32 %v4549_v61  ;;  %v4775_v61 = vrot.slane %v4773_v62, 4  ;;  %v4808_v1 = vrot.slane %v4806_v40, 5 }
 0x425   : > { %v4779_v46 = vor.u32 %v4778_v29, %v4775_v61 }
 0x427   : > { %v5508_v23 = vpop.f32.mrf.mxu1 }
 0x428   : > { %v4467_v58 = vmul.f32 %v5508_v23, %v7699_v8 }
 0x429   : > { %v4431_v30 = vpop.f32.mrf.mxu1 }
 0x42a   : > { %v5766_v0 = vpop.eup %5765  ;;  %v7832_v27 = vadd.f32 %v7704_v12, %v4467_v58  ;;  %v4465_v55 = vmul.f32 %v7699_v8, %v4431_v30 }
 0x42b   : > { %v4598_v19 = vmul.f32 %v5766_v0, %v7790_v45  ;;  %v5509_v22 = vpop.f32.mrf.mxu1  ;;  %v4813_v0 = vor.u32 %v4812_v11, %v4808_v1 }
 0x42c   : > { %v5768_v16 = vpop.eup %5767  ;;  %v5383_v4 = vmul.f32 -1.442695, %v7832_v27  ;;  %v7840_v31 = vadd.f32 %v7704_v12, %v4465_v55  ;;  %v4468_v35 = vmul.f32 %v5509_v22, %v7699_v8  ;;  %v4780_v55 = vrot.slane %v4779_v46, 4 }
 0x42d   : > { %v4862_v37 = vadd.f32 %v4846_v26, %v4598_v19  ;;  %v4596_v21 = vmul.f32 %v5768_v16, %v7798_v14  ;;  %v4434_v45 = vpop.f32.mrf.mxu1  ;;  %v5405_v26 = vld [vmem:[%s5931_s18 + $0x68] sm:$0x1]  ;;  %v4789_v19 = vor.u32 %v4788_v2, %v4784_v9  ;;  %v4814_v16 = vrot.slane %v4813_v0, 4 }
 0x42e   : > { %v5770_v48 = vpop.eup %5769  ;;  %5773 = vpow2.f32 %v5383_v4  ;;  %v5381_v3 = vmul.f32 -1.442695, %v7840_v31  ;;  %v7846_v34 = vadd.f32 %v7704_v12, %v4468_v35  ;;  %v4466_v5 = vmul.f32 %v7699_v8, %v4434_v45 }
 0x42f   : > { %4878 = vst.msk [vmem:[%s5936_s21 + $0x50] sm:$0xff] %vm1923_vm6, %v4862_v37  ;;  %v4860_v20 = vadd.f32 %v4844_v36, %v4596_v21  ;;  %v4599_v14 = vmul.f32 %v5770_v48, %v7806_v7  ;;  %v4792_v36 = vshll.u32 %v5405_v26, 16  ;;  %v4785_v4 = vsel %vm6027_vm5, %v4780_v55, %v4784_v9 }
 0x430   : > { %v5772_v24 = vpop.eup %5771  ;;  %5775 = vpow2.f32 %v5381_v3  ;;  %v5384_v42 = vmul.f32 -1.442695, %v7846_v34  ;;  %v7854_v18 = vadd.f32 %v7704_v12, %v4466_v5  ;;  %v4800_v12 = vshll.u32 %v5406_v28, 16 }
 0x431   : > { %4876 = vst.msk [vmem:[%s5936_s21 + $0x40] sm:$0xff] %vm1923_vm6, %v4860_v20  ;;  %v4863_v8 = vadd.f32 %v4847_v25, %v4599_v14  ;;  %v4597_v6 = vmul.f32 %v5772_v24, %v7813_v54  ;;  %v4790_v35 = vrot.slane %v4789_v19, 4  ;;  %v4794_v37 = vrot.slane %v4792_v36, 5 }
 0x432   : > { %5777 = vpow2.f32 %v5384_v42  ;;  %v5382_v15 = vmul.f32 -1.442695, %v7854_v18  ;;  %v4802_v54 = vrot.slane %v4800_v12, 5  ;;  %v4819_v45 = vsel %vm6027_vm5, %v4814_v16, %v4818_v50 }
 0x433   : > { %4879 = vst.msk [vmem:[%s5936_s21 + $0x58] sm:$0xff] %vm1923_vm6, %v4863_v8  ;;  %v4861_v7 = vadd.f32 %v4845_v59, %v4597_v6  ;;  %v4848_v3 = vunpack.c.l.bf16 %v4785_v4  ;;  %v4795_v20 = vsel %vm6027_vm5, %v4790_v35, %v4794_v37  ;;  %v4851_v24 = vunpack.c.l.bf16 %v4819_v45 }
 0x434   : > { %5779 = vpow2.f32 %v5382_v15  ;;  %v4803_v17 = vor.u32 %v4802_v54, %v4799_v47  ;;  %v4849_v15 = vunpack.c.l.bf16 %v4795_v20 }
 0x435   : > { %4877 = vst.msk [vmem:[%s5936_s21 + $0x48] sm:$0xff] %vm1923_vm6, %v4861_v7 }
 0x436   : > { %v4804_v30 = vrot.slane %v4803_v17, 4 }
 0x438   : > { %v4809_v22 = vsel %vm6027_vm5, %v4804_v30, %v4808_v1 }
 0x439   : > { %v4850_v21 = vunpack.c.l.bf16 %v4809_v22 }
 0x43b   : > { %v5774_v32 = vpop.eup %5773 }
 0x43c   : > { %v4554_v51 = vadd.f32 1.0, %v5774_v32 }
 0x43d   : > { %v5776_v44 = vpop.eup %5775 }
 0x43e   : > { %5781 = vrcp.f32 %v4554_v51  ;;  %v4552_v56 = vadd.f32 1.0, %v5776_v44 }
 0x43f   : > { %v5778_v33 = vpop.eup %5777 }
 0x440   : > { %5783 = vrcp.f32 %v4552_v56  ;;  %v4555_v52 = vadd.f32 1.0, %v5778_v33 }
 0x441   : > { %v5780_v23 = vpop.eup %5779 }
 0x442   : > { %5785 = vrcp.f32 %v4555_v52  ;;  %v4553_v58 = vadd.f32 1.0, %v5780_v23 }
 0x444   : > { %5787 = vrcp.f32 %v4553_v58 }
 0x44b   : > { %v5782_v25 = vpop.eup %5781 }
 0x44c   : > { %v4602_v48 = vmul.f32 %v5782_v25, %v7832_v27 }
 0x44d   : > { %v5784_v5 = vpop.eup %5783 }
 0x44e   : > { %v4866_v14 = vadd.f32 %v4850_v21, %v4602_v48  ;;  %v4600_v59 = vmul.f32 %v5784_v5, %v7840_v31 }
 0x44f   : > { %v5786_v42 = vpop.eup %5785 }
 0x450   : > { %4882 = vst.msk [vmem:[%s5936_s21 + $0x70] sm:$0xff] %vm1923_vm6, %v4866_v14  ;;  %v4864_v8 = vadd.f32 %v4848_v3, %v4600_v59  ;;  %v4603_v6 = vmul.f32 %v5786_v42, %v7846_v34 }
 0x451   : > { %v5788_v7 = vpop.eup %5787 }
 0x452   : > { %4880 = vst.msk [vmem:[%s5936_s21 + $0x60] sm:$0xff] %vm1923_vm6, %v4864_v8  ;;  %v4867_v27 = vadd.f32 %v4851_v24, %v4603_v6  ;;  %v4601_v28 = vmul.f32 %v5788_v7, %v7854_v18 }
 0x454   : > { %4883 = vst.msk [vmem:[%s5936_s21 + $0x78] sm:$0xff] %vm1923_vm6, %v4867_v27  ;;  %v4865_v39 = vadd.f32 %v4849_v15, %v4601_v28 }
 0x456   : > { %4881 = vst.msk [vmem:[%s5936_s21 + $0x68] sm:$0xff] %vm1923_vm6, %v4865_v39 }
 0x457 PF: > { %s17_s28 = sadd.s32 1, %s5838_s28   ;;  %s7925_s24 = smov %s5830_s26 }
 0x458   : > { %p14_p9 = scmp.ge.s32.totalorder %s17_s28, 6   ;;  %s7926_s25 = smov %s5834_s27 }
 0x459   : > { %s7927_s26 = smov %s7930_s29  ;;  %s7928_s27 = smov %s7934_s30 }
 0x45a   :  { %16 = sbr.rel (!%p14_p9) target bundleno = 3 (0x3), region = 92 }

</bundles_post_ra>
